<compile_context>
chip_gen: v7x
topology: tpu7x:2x2x1
jax: 0.10.0
libtpu: 0.0.40
codegen_flags: <defaults>
</compile_context>

<pallas_src>
import jax
import jax.numpy as jnp
from jax.experimental import pallas as pl
from jax.experimental.pallas import tpu as pltpu

LEAKY_SLOPE = 0.01     # PyTorch nn.LeakyReLU default
LN_EPS = 1e-5          # PyTorch nn.LayerNorm default
K = 5                  # conv kernel size
PAD = 2                # "same" padding for the 5x5 convs
KK = K * K             # 25 taps


def _leaky(x):
    return jnp.where(x > 0, x, LEAKY_SLOPE * x)


def _pick_block_batch(B):
    """Samples per grid step: batch when B is large, keep >=4 steps if possible."""
    bb = 1
    for cand in (2, 4, 8):
        if B % cand == 0 and B // cand >= 4:
            bb = cand
    return bb


def _make_hccsa_kernel(H, W, C, CR, Bb):
    """Fused HCCSA forward; one grid step processes Bb samples."""
    S = H * W
    B0 = PAD * W + PAD          # halo length at each end of the flat padded buffer
    Lx = S + 2 * B0             # flat padded spatial length

    def kernel(x_ref, masks_ref, w1_ref, b1_ref, g1_ref, be1_ref,
               wca1_ref, bca1_ref, wca2_ref, bca2_ref,
               w2_ref, b2_ref, g2_ref, be2_ref,
               out_ref, xpad_ref, sapad_ref, stack_ref):
        # Zero only the halos, once per grid step (interior is fully overwritten
        # per sample).  Kept per-step so "parallel" megacore sharding stays safe.
        xpad_ref[:, 0:B0] = jnp.zeros((C, B0), jnp.bfloat16)
        xpad_ref[:, B0 + S:Lx] = jnp.zeros((C, B0), jnp.bfloat16)
        sapad_ref[:, 0:B0] = jnp.zeros((CR, B0), jnp.float32)
        sapad_ref[:, B0 + S:Lx] = jnp.zeros((CR, B0), jnp.float32)

        for bi in range(Bb):
            x_f32 = x_ref[bi]                                    # (C, S) f32
            # bf16 cast happens once, on the scratch write (not per tap).
            xpad_ref[:, B0:B0 + S] = x_f32.astype(jnp.bfloat16)

            # ---- spatial_attention1: 5x5 conv (C -> CR) as 25 shifted bf16 MXU
            #      dots with f32 accumulation into a tiny (CR, S) accumulator.
            acc1 = jnp.zeros((CR, S), jnp.float32) + b1_ref[...]
            for dx in range(K):
                mk = None if dx == PAD else masks_ref[dx:dx + 1, :]   # (1, S) bf16
                for dy in range(K):
                    k = dy * K + dx
                    off = dy * W + dx
                    sl = xpad_ref[:, off:off + S]                # (C, S) bf16
                    if mk is not None:
                        sl = sl * mk                             # kill h-wrap taps
                    acc1 = acc1 + jnp.dot(w1_ref[k * CR:(k + 1) * CR, :], sl,
                                          preferred_element_type=jnp.float32)

            # LayerNorm over all (CR, H, W) elements of this sample (two-pass).
            n1 = float(CR * S)
            mean1 = jnp.sum(acc1) / n1
            cen1 = acc1 - mean1
            var1 = jnp.sum(cen1 * cen1) / n1
            sa1 = _leaky(cen1 * jax.lax.rsqrt(var1 + LN_EPS)
                         * g1_ref[...] + be1_ref[...])           # (CR, S) f32

            # ---- channel attention: global avg pool -> 1x1 conv -> LeakyReLU.
            # pooled projection computed as a real matmul + lane reduction
            # (avoids a degenerate N=1 matmul and any transpose).
            ca_rows = jnp.dot(wca1_ref[...], x_f32,
                              preferred_element_type=jnp.float32)    # (CR, S)
            ca1 = _leaky(jnp.sum(ca_rows, axis=1, keepdims=True) * (1.0 / S)
                         + bca1_ref[...])                        # (CR, 1)

            # 1x1 conv (CR -> C) + sigmoid as a single small MXU dot.
            f3 = jax.nn.sigmoid(
                jnp.dot(wca2_ref[...], ca1 * sa1,
                        preferred_element_type=jnp.float32) + bca2_ref[...])

            # ---- spatial_attention2: zero-pad sa1 (flat), stack the 25 shifted
            #      (CR, S) slices and contract them in ONE (C, 25*CR) matmul.
            sapad_ref[:, B0:B0 + S] = sa1
            for dx in range(K):
                mk = None if dx == PAD else masks_ref[dx:dx + 1, :]
                for dy in range(K):
                    k = dy * K + dx
                    off = dy * W + dx
                    sl = sapad_ref[:, off:off + S]               # (CR, S) f32
                    if mk is not None:
                        sl = sl * mk
                    stack_ref[k * CR:(k + 1) * CR, :] = sl
            acc2 = jnp.dot(w2_ref[...], stack_ref[...],
                           preferred_element_type=jnp.float32) + b2_ref[...]

            n2 = float(C * S)
            mean2 = jnp.sum(acc2) / n2
            cen2 = acc2 - mean2
            var2 = jnp.sum(cen2 * cen2) / n2
            f4 = jax.nn.sigmoid(cen2 * jax.lax.rsqrt(var2 + LN_EPS)
                                * g2_ref[...] + be2_ref[...])    # (C, S)

            # out = x * f3 * f4, already (C, S): lane-dense store, no transpose.
            out_ref[bi] = x_f32 * f3 * f4

    return kernel


def hccsa_pallas(x_nchw, params):
    """HCCSA forward.  x_nchw: (B, C, H, W); params in native PyTorch layouts."""
    B, C, H, W = x_nchw.shape
    CR = params["conv1_w"].shape[0]
    S = H * W
    B0 = PAD * W + PAD
    Lx = S + 2 * B0
    Bb = _pick_block_batch(B)

    x_flat = x_nchw.astype(jnp.float32).reshape(B, C, S)    # metadata-only reshape

    # ---- parameter prep (once): PyTorch OIHW conv weights, (C,H,W) LN affine.
    # conv1: (CR, C, 5, 5) -> per-tap (CR, C) rows stacked as (25*CR, C), bf16.
    w1 = jnp.transpose(params["conv1_w"], (2, 3, 0, 1)).reshape(KK * CR, C)
    w1 = w1.astype(jnp.bfloat16)
    b1 = params["conv1_b"].astype(jnp.float32).reshape(CR, 1)
    # LN affine already channel-major: (CR,H,W)->(CR,S), (C,H,W)->(C,S) are free.
    g1 = params["ln1_w"].astype(jnp.float32).reshape(CR, S)
    be1 = params["ln1_b"].astype(jnp.float32).reshape(CR, S)
    wca1 = params["ca1_w"].astype(jnp.float32).reshape(CR, C)
    bca1 = params["ca1_b"].astype(jnp.float32).reshape(CR, 1)
    wca2 = params["ca2_w"].astype(jnp.float32).reshape(C, CR)
    bca2 = params["ca2_b"].astype(jnp.float32).reshape(C, 1)
    # conv2: (C, CR, 5, 5) -> folded (C, 25*CR) with column order k*CR + i.
    w2 = jnp.transpose(params["conv2_w"], (0, 2, 3, 1)).reshape(C, KK * CR)
    w2 = w2.astype(jnp.float32)
    b2 = params["conv2_b"].astype(jnp.float32).reshape(C, 1)
    g2 = params["ln2_w"].astype(jnp.float32).reshape(C, S)
    be2 = params["ln2_b"].astype(jnp.float32).reshape(C, S)

    # Per-dx horizontal validity masks for the flat (vertical-pad-only) layout:
    # tap (dy, dx) contributes at output column x iff 0 <= x + dx - PAD < W.
    col = jnp.arange(S, dtype=jnp.int32) % W
    masks = jnp.stack(
        [((col >= PAD - dx) & (col < W + PAD - dx)).astype(jnp.bfloat16)
         for dx in range(K)], axis=0)                           # (K, S) bf16

    def full(shape):
        nd = len(shape)
        return pl.BlockSpec(shape, lambda b: (0,) * nd)

    batched = pl.BlockSpec((Bb, C, S), lambda b: (b, 0, 0))

    out_flat = pl.pallas_call(
        _make_hccsa_kernel(H, W, C, CR, Bb),
        out_shape=jax.ShapeDtypeStruct((B, C, S), jnp.float32),
        grid=(B // Bb,),
        in_specs=[batched,
                  full((K, S)),
                  full((KK * CR, C)), full((CR, 1)), full((CR, S)), full((CR, S)),
                  full((CR, C)), full((CR, 1)), full((C, CR)), full((C, 1)),
                  full((C, KK * CR)), full((C, 1)), full((C, S)), full((C, S))],
        out_specs=batched,
        scratch_shapes=[pltpu.VMEM((C, Lx), jnp.bfloat16),       # padded x (flat)
                        pltpu.VMEM((CR, Lx), jnp.float32),       # padded sa1
                        pltpu.VMEM((KK * CR, S), jnp.float32)],  # stage-2 stack
        compiler_params=pltpu.CompilerParams(
            dimension_semantics=("parallel",)),
    )(x_flat, masks, w1, b1, g1, be1, wca1, bca1, wca2, bca2, w2, b2, g2, be2)

    return out_flat.reshape(B, C, H, W)


# ---------------------------------------------------------------------------
# Pure-JAX reference mirroring the PyTorch module exactly (NCHW / OIHW / LN).
# ---------------------------------------------------------------------------
def hccsa_reference(x, p):
    x = x.astype(jnp.float32)

    def conv(inp, w, b, pad):
        y = jax.lax.conv_general_dilated(
            inp, w, window_strides=(1, 1), padding=pad,
            dimension_numbers=("NCHW", "OIHW", "NCHW"))
        return y + b[None, :, None, None]

    def layernorm(y, g, bta):
        mean = jnp.mean(y, axis=(1, 2, 3), keepdims=True)
        var = jnp.mean((y - mean) ** 2, axis=(1, 2, 3), keepdims=True)
        return (y - mean) * jax.lax.rsqrt(var + LN_EPS) * g[None] + bta[None]

    same = ((PAD, PAD), (PAD, PAD))
    sa1 = _leaky(layernorm(conv(x, p["conv1_w"], p["conv1_b"], same),
                           p["ln1_w"], p["ln1_b"]))
    pooled = jnp.mean(x, axis=(2, 3), keepdims=True)
    ca1 = _leaky(conv(pooled, p["ca1_w"], p["ca1_b"], "VALID"))
    f3 = jax.nn.sigmoid(conv(ca1 * sa1, p["ca2_w"], p["ca2_b"], "VALID"))
    f4 = jax.nn.sigmoid(layernorm(conv(sa1, p["conv2_w"], p["conv2_b"], same),
                                  p["ln2_w"], p["ln2_b"]))
    return x * f3 * f4


if __name__ == "__main__":
    B, C, H, W = 2, 32, 16, 16
    R = 16
    CR = C // R          # = 2

    key = jax.random.PRNGKey(0)
    ks = jax.random.split(key, 16)
    # Parameters in native PyTorch layouts (Conv2d OIHW, LayerNorm (C, H, W)).
    params = {
        "conv1_w": 0.05 * jax.random.normal(ks[0], (CR, C, K, K), jnp.float32),
        "conv1_b": 0.10 * jax.random.normal(ks[1], (CR,), jnp.float32),
        "ln1_w":   1.0 + 0.3 * jax.random.normal(ks[2], (CR, H, W), jnp.float32),
        "ln1_b":   0.30 * jax.random.normal(ks[3], (CR, H, W), jnp.float32),
        "ca1_w":   0.20 * jax.random.normal(ks[4], (CR, C, 1, 1), jnp.float32),
        "ca1_b":   0.10 * jax.random.normal(ks[5], (CR,), jnp.float32),
        "ca2_w":   0.20 * jax.random.normal(ks[6], (C, CR, 1, 1), jnp.float32),
        "ca2_b":   0.10 * jax.random.normal(ks[7], (C,), jnp.float32),
        "conv2_w": 0.05 * jax.random.normal(ks[8], (C, CR, K, K), jnp.float32),
        "conv2_b": 0.10 * jax.random.normal(ks[9], (C,), jnp.float32),
        "ln2_w":   1.0 + 0.3 * jax.random.normal(ks[10], (C, H, W), jnp.float32),
        "ln2_b":   0.30 * jax.random.normal(ks[11], (C, H, W), jnp.float32),
    }
    x = jax.random.normal(ks[12], (B, C, H, W), jnp.float32)

    out = jax.block_until_ready(jax.jit(hccsa_pallas)(x, params))
    ref = jax.jit(hccsa_reference)(x, params)

    assert out.shape == (B, C, H, W)
    max_err = float(jnp.max(jnp.abs(out - ref)))
    # Conv1 deliberately feeds the MXU with bf16 operands (f32 accumulation);
    # everything else is f32 (or f32-accumulated small-K matmuls).  Typical
    # error is a few 1e-3; 2e-2 still catches layout / permutation bugs.
    assert max_err < 2e-2, f"max abs error vs reference too large: {max_err}"

    print("KERNEL_OK")
</pallas_src>

<mosaic_0001>
module attributes {stable_mosaic.version = 11 : i64} {
  func.func @kernel(%arg0: i32, %arg1: memref<1x32x256xf32, #tpu.memory_space<vmem>>, %arg2: memref<5x256xbf16, #tpu.memory_space<vmem>>, %arg3: memref<50x32xbf16, #tpu.memory_space<vmem>>, %arg4: memref<2x1xf32, #tpu.memory_space<vmem>>, %arg5: memref<2x256xf32, #tpu.memory_space<vmem>>, %arg6: memref<2x256xf32, #tpu.memory_space<vmem>>, %arg7: memref<2x32xf32, #tpu.memory_space<vmem>>, %arg8: memref<2x1xf32, #tpu.memory_space<vmem>>, %arg9: memref<32x2xf32, #tpu.memory_space<vmem>>, %arg10: memref<32x1xf32, #tpu.memory_space<vmem>>, %arg11: memref<32x50xf32, #tpu.memory_space<vmem>>, %arg12: memref<32x1xf32, #tpu.memory_space<vmem>>, %arg13: memref<32x256xf32, #tpu.memory_space<vmem>>, %arg14: memref<32x256xf32, #tpu.memory_space<vmem>>, %arg15: memref<1x32x256xf32, #tpu.memory_space<vmem>>, %arg16: memref<32x324xbf16, #tpu.memory_space<vmem>>, %arg17: memref<2x324xf32, #tpu.memory_space<vmem>>, %arg18: memref<50x256xf32, #tpu.memory_space<vmem>>) attributes {dimension_semantics = [#tpu.dimension_semantics<parallel>], iteration_bounds = array<i64: 2>, scalar_prefetch = 0 : i64, scratch_operands = 3 : i64, tpu.core_type = #tpu.core_type<tc>, window_params = [{transform_indices = @transform_0, window_bounds = array<i64: 1, 32, 256>}, {pipeline_mode = #tpu.pipeline_mode<synchronous>, transform_indices = @transform_1, window_bounds = array<i64: 5, 256>}, {pipeline_mode = #tpu.pipeline_mode<synchronous>, transform_indices = @transform_2, window_bounds = array<i64: 50, 32>}, {pipeline_mode = #tpu.pipeline_mode<synchronous>, transform_indices = @transform_3, window_bounds = array<i64: 2, 1>}, {pipeline_mode = #tpu.pipeline_mode<synchronous>, transform_indices = @transform_4, window_bounds = array<i64: 2, 256>}, {pipeline_mode = #tpu.pipeline_mode<synchronous>, transform_indices = @transform_5, window_bounds = array<i64: 2, 256>}, {pipeline_mode = #tpu.pipeline_mode<synchronous>, transform_indices = @transform_6, window_bounds = array<i64: 2, 32>}, {pipeline_mode = #tpu.pipeline_mode<synchronous>, transform_indices = @transform_7, window_bounds = array<i64: 2, 1>}, {pipeline_mode = #tpu.pipeline_mode<synchronous>, transform_indices = @transform_8, window_bounds = array<i64: 32, 2>}, {pipeline_mode = #tpu.pipeline_mode<synchronous>, transform_indices = @transform_9, window_bounds = array<i64: 32, 1>}, {pipeline_mode = #tpu.pipeline_mode<synchronous>, transform_indices = @transform_10, window_bounds = array<i64: 32, 50>}, {pipeline_mode = #tpu.pipeline_mode<synchronous>, transform_indices = @transform_11, window_bounds = array<i64: 32, 1>}, {pipeline_mode = #tpu.pipeline_mode<synchronous>, transform_indices = @transform_12, window_bounds = array<i64: 32, 256>}, {pipeline_mode = #tpu.pipeline_mode<synchronous>, transform_indices = @transform_13, window_bounds = array<i64: 32, 256>}, {transform_indices = @transform_14, window_bounds = array<i64: 1, 32, 256>}]} {
    %cst = arith.constant 0.000000e+00 : bf16
    %0 = vector.broadcast %cst : bf16 to vector<32x34xbf16>
    %c0 = arith.constant 0 : index
    %c0_0 = arith.constant 0 : index
    %1 = vector.load %arg16[%c0, %c0_0] : memref<32x324xbf16, #tpu.memory_space<vmem>>, vector<32x34xbf16>
    tpu.vector_store %arg16[%c0, %c0_0], %0 {strides = array<i32>} : memref<32x324xbf16, #tpu.memory_space<vmem>>, vector<32x34xbf16>,
    %cst_1 = arith.constant 0.000000e+00 : bf16
    %2 = vector.broadcast %cst_1 : bf16 to vector<32x34xbf16>
    %c0_2 = arith.constant 0 : index
    %c290 = arith.constant 290 : index
    %3 = vector.load %arg16[%c0_2, %c290] : memref<32x324xbf16, #tpu.memory_space<vmem>>, vector<32x34xbf16>
    tpu.vector_store %arg16[%c0_2, %c290], %2 {strides = array<i32>} : memref<32x324xbf16, #tpu.memory_space<vmem>>, vector<32x34xbf16>,
    %cst_3 = arith.constant 0.000000e+00 : f32
    %4 = vector.broadcast %cst_3 : f32 to vector<2x34xf32>
    %c0_4 = arith.constant 0 : index
    %c0_5 = arith.constant 0 : index
    %5 = vector.load %arg17[%c0_4, %c0_5] : memref<2x324xf32, #tpu.memory_space<vmem>>, vector<2x34xf32>
    tpu.vector_store %arg17[%c0_4, %c0_5], %4 {strides = array<i32>} : memref<2x324xf32, #tpu.memory_space<vmem>>, vector<2x34xf32>,
    %cst_6 = arith.constant 0.000000e+00 : f32
    %6 = vector.broadcast %cst_6 : f32 to vector<2x34xf32>
    %c0_7 = arith.constant 0 : index
    %c290_8 = arith.constant 290 : index
    %7 = vector.load %arg17[%c0_7, %c290_8] : memref<2x324xf32, #tpu.memory_space<vmem>>, vector<2x34xf32>
    tpu.vector_store %arg17[%c0_7, %c290_8], %6 {strides = array<i32>} : memref<2x324xf32, #tpu.memory_space<vmem>>, vector<2x34xf32>,
    %c0_9 = arith.constant 0 : index
    %c0_10 = arith.constant 0 : index
    %c0_11 = arith.constant 0 : index
    %8 = vector.load %arg1[%c0_9, %c0_10, %c0_11] : memref<1x32x256xf32, #tpu.memory_space<vmem>>, vector<1x32x256xf32>
    %9 = vector.shape_cast %8 : vector<1x32x256xf32> to vector<32x256xf32>
    %10 = arith.truncf %9 : vector<32x256xf32> to vector<32x256xbf16>
    %c0_12 = arith.constant 0 : index
    %c34 = arith.constant 34 : index
    %11 = vector.load %arg16[%c0_12, %c34] : memref<32x324xbf16, #tpu.memory_space<vmem>>, vector<32x256xbf16>
    tpu.vector_store %arg16[%c0_12, %c34], %10 {strides = array<i32>} : memref<32x324xbf16, #tpu.memory_space<vmem>>, vector<32x256xbf16>,
    %cst_13 = arith.constant 0.000000e+00 : f32
    %12 = vector.broadcast %cst_13 : f32 to vector<2x256xf32>
    %c0_14 = arith.constant 0 : index
    %c0_15 = arith.constant 0 : index
    %13 = vector.load %arg4[%c0_14, %c0_15] : memref<2x1xf32, #tpu.memory_space<vmem>>, vector<2x1xf32>
    %14 = vector.broadcast %13 : vector<2x1xf32> to vector<2x256xf32>
    %15 = arith.addf %12, %14 : vector<2x256xf32>
    %c0_16 = arith.constant 0 : index
    %c0_17 = arith.constant 0 : index
    %16 = vector.load %arg2[%c0_16, %c0_17] : memref<5x256xbf16, #tpu.memory_space<vmem>>, vector<1x256xbf16>
    %c0_18 = arith.constant 0 : index
    %c0_19 = arith.constant 0 : index
    %17 = vector.load %arg16[%c0_18, %c0_19] : memref<32x324xbf16, #tpu.memory_space<vmem>>, vector<32x256xbf16>
    %18 = vector.broadcast %16 : vector<1x256xbf16> to vector<32x256xbf16>
    %19 = arith.mulf %17, %18 : vector<32x256xbf16>
    %c0_20 = arith.constant 0 : index
    %c0_21 = arith.constant 0 : index
    %20 = vector.load %arg3[%c0_20, %c0_21] : memref<50x32xbf16, #tpu.memory_space<vmem>>, vector<2x32xbf16>
    %cst_22 = arith.constant dense<0.000000e+00> : vector<2x256xf32>
    %21 = tpu.matmul %20, %19, %cst_22 {dimension_numbers = #tpu.dot_dimension_numbers<[1], [0], [0], [1], [0, 0, 1, 1], [], []>} : vector<2x32xbf16>, vector<32x256xbf16>, vector<2x256xf32> -> vector<2x256xf32>
    %22 = arith.addf %15, %21 : vector<2x256xf32>
    %c0_23 = arith.constant 0 : index
    %c16 = arith.constant 16 : index
    %23 = vector.load %arg16[%c0_23, %c16] : memref<32x324xbf16, #tpu.memory_space<vmem>>, vector<32x256xbf16>
    %24 = vector.broadcast %16 : vector<1x256xbf16> to vector<32x256xbf16>
    %25 = arith.mulf %23, %24 : vector<32x256xbf16>
    %c10 = arith.constant 10 : index
    %c0_24 = arith.constant 0 : index
    %26 = vector.load %arg3[%c10, %c0_24] : memref<50x32xbf16, #tpu.memory_space<vmem>>, vector<2x32xbf16>
    %cst_25 = arith.constant dense<0.000000e+00> : vector<2x256xf32>
    %27 = tpu.matmul %26, %25, %cst_25 {dimension_numbers = #tpu.dot_dimension_numbers<[1], [0], [0], [1], [0, 0, 1, 1], [], []>} : vector<2x32xbf16>, vector<32x256xbf16>, vector<2x256xf32> -> vector<2x256xf32>
    %28 = arith.addf %22, %27 : vector<2x256xf32>
    %c0_26 = arith.constant 0 : index
    %c32 = arith.constant 32 : index
    %29 = vector.load %arg16[%c0_26, %c32] : memref<32x324xbf16, #tpu.memory_space<vmem>>, vector<32x256xbf16>
    %30 = vector.broadcast %16 : vector<1x256xbf16> to vector<32x256xbf16>
    %31 = arith.mulf %29, %30 : vector<32x256xbf16>
    %c20 = arith.constant 20 : index
    %c0_27 = arith.constant 0 : index
    %32 = vector.load %arg3[%c20, %c0_27] : memref<50x32xbf16, #tpu.memory_space<vmem>>, vector<2x32xbf16>
    %cst_28 = arith.constant dense<0.000000e+00> : vector<2x256xf32>
    %33 = tpu.matmul %32, %31, %cst_28 {dimension_numbers = #tpu.dot_dimension_numbers<[1], [0], [0], [1], [0, 0, 1, 1], [], []>} : vector<2x32xbf16>, vector<32x256xbf16>, vector<2x256xf32> -> vector<2x256xf32>
    %34 = arith.addf %28, %33 : vector<2x256xf32>
    %c0_29 = arith.constant 0 : index
    %c48 = arith.constant 48 : index
    %35 = vector.load %arg16[%c0_29, %c48] : memref<32x324xbf16, #tpu.memory_space<vmem>>, vector<32x256xbf16>
    %36 = vector.broadcast %16 : vector<1x256xbf16> to vector<32x256xbf16>
    %37 = arith.mulf %35, %36 : vector<32x256xbf16>
    %c30 = arith.constant 30 : index
    %c0_30 = arith.constant 0 : index
    %38 = vector.load %arg3[%c30, %c0_30] : memref<50x32xbf16, #tpu.memory_space<vmem>>, vector<2x32xbf16>
    %cst_31 = arith.constant dense<0.000000e+00> : vector<2x256xf32>
    %39 = tpu.matmul %38, %37, %cst_31 {dimension_numbers = #tpu.dot_dimension_numbers<[1], [0], [0], [1], [0, 0, 1, 1], [], []>} : vector<2x32xbf16>, vector<32x256xbf16>, vector<2x256xf32> -> vector<2x256xf32>
    %40 = arith.addf %34, %39 : vector<2x256xf32>
    %c0_32 = arith.constant 0 : index
    %c64 = arith.constant 64 : index
    %41 = vector.load %arg16[%c0_32, %c64] : memref<32x324xbf16, #tpu.memory_space<vmem>>, vector<32x256xbf16>
    %42 = vector.broadcast %16 : vector<1x256xbf16> to vector<32x256xbf16>
    %43 = arith.mulf %41, %42 : vector<32x256xbf16>
    %c40 = arith.constant 40 : index
    %c0_33 = arith.constant 0 : index
    %44 = vector.load %arg3[%c40, %c0_33] : memref<50x32xbf16, #tpu.memory_space<vmem>>, vector<2x32xbf16>
    %cst_34 = arith.constant dense<0.000000e+00> : vector<2x256xf32>
    %45 = tpu.matmul %44, %43, %cst_34 {dimension_numbers = #tpu.dot_dimension_numbers<[1], [0], [0], [1], [0, 0, 1, 1], [], []>} : vector<2x32xbf16>, vector<32x256xbf16>, vector<2x256xf32> -> vector<2x256xf32>
    %46 = arith.addf %40, %45 : vector<2x256xf32>
    %c1 = arith.constant 1 : index
    %c0_35 = arith.constant 0 : index
    %47 = vector.load %arg2[%c1, %c0_35] : memref<5x256xbf16, #tpu.memory_space<vmem>>, vector<1x256xbf16>
    %c0_36 = arith.constant 0 : index
    %c1_37 = arith.constant 1 : index
    %48 = vector.load %arg16[%c0_36, %c1_37] : memref<32x324xbf16, #tpu.memory_space<vmem>>, vector<32x256xbf16>
    %49 = vector.broadcast %47 : vector<1x256xbf16> to vector<32x256xbf16>
    %50 = arith.mulf %48, %49 : vector<32x256xbf16>
    %c2 = arith.constant 2 : index
    %c0_38 = arith.constant 0 : index
    %51 = vector.load %arg3[%c2, %c0_38] : memref<50x32xbf16, #tpu.memory_space<vmem>>, vector<2x32xbf16>
    %cst_39 = arith.constant dense<0.000000e+00> : vector<2x256xf32>
    %52 = tpu.matmul %51, %50, %cst_39 {dimension_numbers = #tpu.dot_dimension_numbers<[1], [0], [0], [1], [0, 0, 1, 1], [], []>} : vector<2x32xbf16>, vector<32x256xbf16>, vector<2x256xf32> -> vector<2x256xf32>
    %53 = arith.addf %46, %52 : vector<2x256xf32>
    %c0_40 = arith.constant 0 : index
    %c17 = arith.constant 17 : index
    %54 = vector.load %arg16[%c0_40, %c17] : memref<32x324xbf16, #tpu.memory_space<vmem>>, vector<32x256xbf16>
    %55 = vector.broadcast %47 : vector<1x256xbf16> to vector<32x256xbf16>
    %56 = arith.mulf %54, %55 : vector<32x256xbf16>
    %c12 = arith.constant 12 : index
    %c0_41 = arith.constant 0 : index
    %57 = vector.load %arg3[%c12, %c0_41] : memref<50x32xbf16, #tpu.memory_space<vmem>>, vector<2x32xbf16>
    %cst_42 = arith.constant dense<0.000000e+00> : vector<2x256xf32>
    %58 = tpu.matmul %57, %56, %cst_42 {dimension_numbers = #tpu.dot_dimension_numbers<[1], [0], [0], [1], [0, 0, 1, 1], [], []>} : vector<2x32xbf16>, vector<32x256xbf16>, vector<2x256xf32> -> vector<2x256xf32>
    %59 = arith.addf %53, %58 : vector<2x256xf32>
    %c0_43 = arith.constant 0 : index
    %c33 = arith.constant 33 : index
    %60 = vector.load %arg16[%c0_43, %c33] : memref<32x324xbf16, #tpu.memory_space<vmem>>, vector<32x256xbf16>
    %61 = vector.broadcast %47 : vector<1x256xbf16> to vector<32x256xbf16>
    %62 = arith.mulf %60, %61 : vector<32x256xbf16>
    %c22 = arith.constant 22 : index
    %c0_44 = arith.constant 0 : index
    %63 = vector.load %arg3[%c22, %c0_44] : memref<50x32xbf16, #tpu.memory_space<vmem>>, vector<2x32xbf16>
    %cst_45 = arith.constant dense<0.000000e+00> : vector<2x256xf32>
    %64 = tpu.matmul %63, %62, %cst_45 {dimension_numbers = #tpu.dot_dimension_numbers<[1], [0], [0], [1], [0, 0, 1, 1], [], []>} : vector<2x32xbf16>, vector<32x256xbf16>, vector<2x256xf32> -> vector<2x256xf32>
    %65 = arith.addf %59, %64 : vector<2x256xf32>
    %c0_46 = arith.constant 0 : index
    %c49 = arith.constant 49 : index
    %66 = vector.load %arg16[%c0_46, %c49] : memref<32x324xbf16, #tpu.memory_space<vmem>>, vector<32x256xbf16>
    %67 = vector.broadcast %47 : vector<1x256xbf16> to vector<32x256xbf16>
    %68 = arith.mulf %66, %67 : vector<32x256xbf16>
    %c32_47 = arith.constant 32 : index
    %c0_48 = arith.constant 0 : index
    %69 = vector.load %arg3[%c32_47, %c0_48] : memref<50x32xbf16, #tpu.memory_space<vmem>>, vector<2x32xbf16>
    %cst_49 = arith.constant dense<0.000000e+00> : vector<2x256xf32>
    %70 = tpu.matmul %69, %68, %cst_49 {dimension_numbers = #tpu.dot_dimension_numbers<[1], [0], [0], [1], [0, 0, 1, 1], [], []>} : vector<2x32xbf16>, vector<32x256xbf16>, vector<2x256xf32> -> vector<2x256xf32>
    %71 = arith.addf %65, %70 : vector<2x256xf32>
    %c0_50 = arith.constant 0 : index
    %c65 = arith.constant 65 : index
    %72 = vector.load %arg16[%c0_50, %c65] : memref<32x324xbf16, #tpu.memory_space<vmem>>, vector<32x256xbf16>
    %73 = vector.broadcast %47 : vector<1x256xbf16> to vector<32x256xbf16>
    %74 = arith.mulf %72, %73 : vector<32x256xbf16>
    %c42 = arith.constant 42 : index
    %c0_51 = arith.constant 0 : index
    %75 = vector.load %arg3[%c42, %c0_51] : memref<50x32xbf16, #tpu.memory_space<vmem>>, vector<2x32xbf16>
    %cst_52 = arith.constant dense<0.000000e+00> : vector<2x256xf32>
    %76 = tpu.matmul %75, %74, %cst_52 {dimension_numbers = #tpu.dot_dimension_numbers<[1], [0], [0], [1], [0, 0, 1, 1], [], []>} : vector<2x32xbf16>, vector<32x256xbf16>, vector<2x256xf32> -> vector<2x256xf32>
    %77 = arith.addf %71, %76 : vector<2x256xf32>
    %c0_53 = arith.constant 0 : index
    %c2_54 = arith.constant 2 : index
    %78 = vector.load %arg16[%c0_53, %c2_54] : memref<32x324xbf16, #tpu.memory_space<vmem>>, vector<32x256xbf16>
    %c4 = arith.constant 4 : index
    %c0_55 = arith.constant 0 : index
    %79 = vector.load %arg3[%c4, %c0_55] : memref<50x32xbf16, #tpu.memory_space<vmem>>, vector<2x32xbf16>
    %cst_56 = arith.constant dense<0.000000e+00> : vector<2x256xf32>
    %80 = tpu.matmul %79, %78, %cst_56 {dimension_numbers = #tpu.dot_dimension_numbers<[1], [0], [0], [1], [0, 0, 1, 1], [], []>} : vector<2x32xbf16>, vector<32x256xbf16>, vector<2x256xf32> -> vector<2x256xf32>
    %81 = arith.addf %77, %80 : vector<2x256xf32>
    %c0_57 = arith.constant 0 : index
    %c18 = arith.constant 18 : index
    %82 = vector.load %arg16[%c0_57, %c18] : memref<32x324xbf16, #tpu.memory_space<vmem>>, vector<32x256xbf16>
    %c14 = arith.constant 14 : index
    %c0_58 = arith.constant 0 : index
    %83 = vector.load %arg3[%c14, %c0_58] : memref<50x32xbf16, #tpu.memory_space<vmem>>, vector<2x32xbf16>
    %cst_59 = arith.constant dense<0.000000e+00> : vector<2x256xf32>
    %84 = tpu.matmul %83, %82, %cst_59 {dimension_numbers = #tpu.dot_dimension_numbers<[1], [0], [0], [1], [0, 0, 1, 1], [], []>} : vector<2x32xbf16>, vector<32x256xbf16>, vector<2x256xf32> -> vector<2x256xf32>
    %85 = arith.addf %81, %84 : vector<2x256xf32>
    %c0_60 = arith.constant 0 : index
    %c34_61 = arith.constant 34 : index
    %86 = vector.load %arg16[%c0_60, %c34_61] : memref<32x324xbf16, #tpu.memory_space<vmem>>, vector<32x256xbf16>
    %c24 = arith.constant 24 : index
    %c0_62 = arith.constant 0 : index
    %87 = vector.load %arg3[%c24, %c0_62] : memref<50x32xbf16, #tpu.memory_space<vmem>>, vector<2x32xbf16>
    %cst_63 = arith.constant dense<0.000000e+00> : vector<2x256xf32>
    %88 = tpu.matmul %87, %86, %cst_63 {dimension_numbers = #tpu.dot_dimension_numbers<[1], [0], [0], [1], [0, 0, 1, 1], [], []>} : vector<2x32xbf16>, vector<32x256xbf16>, vector<2x256xf32> -> vector<2x256xf32>
    %89 = arith.addf %85, %88 : vector<2x256xf32>
    %c0_64 = arith.constant 0 : index
    %c50 = arith.constant 50 : index
    %90 = vector.load %arg16[%c0_64, %c50] : memref<32x324xbf16, #tpu.memory_space<vmem>>, vector<32x256xbf16>
    %c34_65 = arith.constant 34 : index
    %c0_66 = arith.constant 0 : index
    %91 = vector.load %arg3[%c34_65, %c0_66] : memref<50x32xbf16, #tpu.memory_space<vmem>>, vector<2x32xbf16>
    %cst_67 = arith.constant dense<0.000000e+00> : vector<2x256xf32>
    %92 = tpu.matmul %91, %90, %cst_67 {dimension_numbers = #tpu.dot_dimension_numbers<[1], [0], [0], [1], [0, 0, 1, 1], [], []>} : vector<2x32xbf16>, vector<32x256xbf16>, vector<2x256xf32> -> vector<2x256xf32>
    %93 = arith.addf %89, %92 : vector<2x256xf32>
    %c0_68 = arith.constant 0 : index
    %c66 = arith.constant 66 : index
    %94 = vector.load %arg16[%c0_68, %c66] : memref<32x324xbf16, #tpu.memory_space<vmem>>, vector<32x256xbf16>
    %c44 = arith.constant 44 : index
    %c0_69 = arith.constant 0 : index
    %95 = vector.load %arg3[%c44, %c0_69] : memref<50x32xbf16, #tpu.memory_space<vmem>>, vector<2x32xbf16>
    %cst_70 = arith.constant dense<0.000000e+00> : vector<2x256xf32>
    %96 = tpu.matmul %95, %94, %cst_70 {dimension_numbers = #tpu.dot_dimension_numbers<[1], [0], [0], [1], [0, 0, 1, 1], [], []>} : vector<2x32xbf16>, vector<32x256xbf16>, vector<2x256xf32> -> vector<2x256xf32>
    %97 = arith.addf %93, %96 : vector<2x256xf32>
    %c3 = arith.constant 3 : index
    %c0_71 = arith.constant 0 : index
    %98 = vector.load %arg2[%c3, %c0_71] : memref<5x256xbf16, #tpu.memory_space<vmem>>, vector<1x256xbf16>
    %c0_72 = arith.constant 0 : index
    %c3_73 = arith.constant 3 : index
    %99 = vector.load %arg16[%c0_72, %c3_73] : memref<32x324xbf16, #tpu.memory_space<vmem>>, vector<32x256xbf16>
    %100 = vector.broadcast %98 : vector<1x256xbf16> to vector<32x256xbf16>
    %101 = arith.mulf %99, %100 : vector<32x256xbf16>
    %c6 = arith.constant 6 : index
    %c0_74 = arith.constant 0 : index
    %102 = vector.load %arg3[%c6, %c0_74] : memref<50x32xbf16, #tpu.memory_space<vmem>>, vector<2x32xbf16>
    %cst_75 = arith.constant dense<0.000000e+00> : vector<2x256xf32>
    %103 = tpu.matmul %102, %101, %cst_75 {dimension_numbers = #tpu.dot_dimension_numbers<[1], [0], [0], [1], [0, 0, 1, 1], [], []>} : vector<2x32xbf16>, vector<32x256xbf16>, vector<2x256xf32> -> vector<2x256xf32>
    %104 = arith.addf %97, %103 : vector<2x256xf32>
    %c0_76 = arith.constant 0 : index
    %c19 = arith.constant 19 : index
    %105 = vector.load %arg16[%c0_76, %c19] : memref<32x324xbf16, #tpu.memory_space<vmem>>, vector<32x256xbf16>
    %106 = vector.broadcast %98 : vector<1x256xbf16> to vector<32x256xbf16>
    %107 = arith.mulf %105, %106 : vector<32x256xbf16>
    %c16_77 = arith.constant 16 : index
    %c0_78 = arith.constant 0 : index
    %108 = vector.load %arg3[%c16_77, %c0_78] : memref<50x32xbf16, #tpu.memory_space<vmem>>, vector<2x32xbf16>
    %cst_79 = arith.constant dense<0.000000e+00> : vector<2x256xf32>
    %109 = tpu.matmul %108, %107, %cst_79 {dimension_numbers = #tpu.dot_dimension_numbers<[1], [0], [0], [1], [0, 0, 1, 1], [], []>} : vector<2x32xbf16>, vector<32x256xbf16>, vector<2x256xf32> -> vector<2x256xf32>
    %110 = arith.addf %104, %109 : vector<2x256xf32>
    %c0_80 = arith.constant 0 : index
    %c35 = arith.constant 35 : index
    %111 = vector.load %arg16[%c0_80, %c35] : memref<32x324xbf16, #tpu.memory_space<vmem>>, vector<32x256xbf16>
    %112 = vector.broadcast %98 : vector<1x256xbf16> to vector<32x256xbf16>
    %113 = arith.mulf %111, %112 : vector<32x256xbf16>
    %c26 = arith.constant 26 : index
    %c0_81 = arith.constant 0 : index
    %114 = vector.load %arg3[%c26, %c0_81] : memref<50x32xbf16, #tpu.memory_space<vmem>>, vector<2x32xbf16>
    %cst_82 = arith.constant dense<0.000000e+00> : vector<2x256xf32>
    %115 = tpu.matmul %114, %113, %cst_82 {dimension_numbers = #tpu.dot_dimension_numbers<[1], [0], [0], [1], [0, 0, 1, 1], [], []>} : vector<2x32xbf16>, vector<32x256xbf16>, vector<2x256xf32> -> vector<2x256xf32>
    %116 = arith.addf %110, %115 : vector<2x256xf32>
    %c0_83 = arith.constant 0 : index
    %c51 = arith.constant 51 : index
    %117 = vector.load %arg16[%c0_83, %c51] : memref<32x324xbf16, #tpu.memory_space<vmem>>, vector<32x256xbf16>
    %118 = vector.broadcast %98 : vector<1x256xbf16> to vector<32x256xbf16>
    %119 = arith.mulf %117, %118 : vector<32x256xbf16>
    %c36 = arith.constant 36 : index
    %c0_84 = arith.constant 0 : index
    %120 = vector.load %arg3[%c36, %c0_84] : memref<50x32xbf16, #tpu.memory_space<vmem>>, vector<2x32xbf16>
    %cst_85 = arith.constant dense<0.000000e+00> : vector<2x256xf32>
    %121 = tpu.matmul %120, %119, %cst_85 {dimension_numbers = #tpu.dot_dimension_numbers<[1], [0], [0], [1], [0, 0, 1, 1], [], []>} : vector<2x32xbf16>, vector<32x256xbf16>, vector<2x256xf32> -> vector<2x256xf32>
    %122 = arith.addf %116, %121 : vector<2x256xf32>
    %c0_86 = arith.constant 0 : index
    %c67 = arith.constant 67 : index
    %123 = vector.load %arg16[%c0_86, %c67] : memref<32x324xbf16, #tpu.memory_space<vmem>>, vector<32x256xbf16>
    %124 = vector.broadcast %98 : vector<1x256xbf16> to vector<32x256xbf16>
    %125 = arith.mulf %123, %124 : vector<32x256xbf16>
    %c46 = arith.constant 46 : index
    %c0_87 = arith.constant 0 : index
    %126 = vector.load %arg3[%c46, %c0_87] : memref<50x32xbf16, #tpu.memory_space<vmem>>, vector<2x32xbf16>
    %cst_88 = arith.constant dense<0.000000e+00> : vector<2x256xf32>
    %127 = tpu.matmul %126, %125, %cst_88 {dimension_numbers = #tpu.dot_dimension_numbers<[1], [0], [0], [1], [0, 0, 1, 1], [], []>} : vector<2x32xbf16>, vector<32x256xbf16>, vector<2x256xf32> -> vector<2x256xf32>
    %128 = arith.addf %122, %127 : vector<2x256xf32>
    %c4_89 = arith.constant 4 : index
    %c0_90 = arith.constant 0 : index
    %129 = vector.load %arg2[%c4_89, %c0_90] : memref<5x256xbf16, #tpu.memory_space<vmem>>, vector<1x256xbf16>
    %c0_91 = arith.constant 0 : index
    %c4_92 = arith.constant 4 : index
    %130 = vector.load %arg16[%c0_91, %c4_92] : memref<32x324xbf16, #tpu.memory_space<vmem>>, vector<32x256xbf16>
    %131 = vector.broadcast %129 : vector<1x256xbf16> to vector<32x256xbf16>
    %132 = arith.mulf %130, %131 : vector<32x256xbf16>
    %c8 = arith.constant 8 : index
    %c0_93 = arith.constant 0 : index
    %133 = vector.load %arg3[%c8, %c0_93] : memref<50x32xbf16, #tpu.memory_space<vmem>>, vector<2x32xbf16>
    %cst_94 = arith.constant dense<0.000000e+00> : vector<2x256xf32>
    %134 = tpu.matmul %133, %132, %cst_94 {dimension_numbers = #tpu.dot_dimension_numbers<[1], [0], [0], [1], [0, 0, 1, 1], [], []>} : vector<2x32xbf16>, vector<32x256xbf16>, vector<2x256xf32> -> vector<2x256xf32>
    %135 = arith.addf %128, %134 : vector<2x256xf32>
    %c0_95 = arith.constant 0 : index
    %c20_96 = arith.constant 20 : index
    %136 = vector.load %arg16[%c0_95, %c20_96] : memref<32x324xbf16, #tpu.memory_space<vmem>>, vector<32x256xbf16>
    %137 = vector.broadcast %129 : vector<1x256xbf16> to vector<32x256xbf16>
    %138 = arith.mulf %136, %137 : vector<32x256xbf16>
    %c18_97 = arith.constant 18 : index
    %c0_98 = arith.constant 0 : index
    %139 = vector.load %arg3[%c18_97, %c0_98] : memref<50x32xbf16, #tpu.memory_space<vmem>>, vector<2x32xbf16>
    %cst_99 = arith.constant dense<0.000000e+00> : vector<2x256xf32>
    %140 = tpu.matmul %139, %138, %cst_99 {dimension_numbers = #tpu.dot_dimension_numbers<[1], [0], [0], [1], [0, 0, 1, 1], [], []>} : vector<2x32xbf16>, vector<32x256xbf16>, vector<2x256xf32> -> vector<2x256xf32>
    %141 = arith.addf %135, %140 : vector<2x256xf32>
    %c0_100 = arith.constant 0 : index
    %c36_101 = arith.constant 36 : index
    %142 = vector.load %arg16[%c0_100, %c36_101] : memref<32x324xbf16, #tpu.memory_space<vmem>>, vector<32x256xbf16>
    %143 = vector.broadcast %129 : vector<1x256xbf16> to vector<32x256xbf16>
    %144 = arith.mulf %142, %143 : vector<32x256xbf16>
    %c28 = arith.constant 28 : index
    %c0_102 = arith.constant 0 : index
    %145 = vector.load %arg3[%c28, %c0_102] : memref<50x32xbf16, #tpu.memory_space<vmem>>, vector<2x32xbf16>
    %cst_103 = arith.constant dense<0.000000e+00> : vector<2x256xf32>
    %146 = tpu.matmul %145, %144, %cst_103 {dimension_numbers = #tpu.dot_dimension_numbers<[1], [0], [0], [1], [0, 0, 1, 1], [], []>} : vector<2x32xbf16>, vector<32x256xbf16>, vector<2x256xf32> -> vector<2x256xf32>
    %147 = arith.addf %141, %146 : vector<2x256xf32>
    %c0_104 = arith.constant 0 : index
    %c52 = arith.constant 52 : index
    %148 = vector.load %arg16[%c0_104, %c52] : memref<32x324xbf16, #tpu.memory_space<vmem>>, vector<32x256xbf16>
    %149 = vector.broadcast %129 : vector<1x256xbf16> to vector<32x256xbf16>
    %150 = arith.mulf %148, %149 : vector<32x256xbf16>
    %c38 = arith.constant 38 : index
    %c0_105 = arith.constant 0 : index
    %151 = vector.load %arg3[%c38, %c0_105] : memref<50x32xbf16, #tpu.memory_space<vmem>>, vector<2x32xbf16>
    %cst_106 = arith.constant dense<0.000000e+00> : vector<2x256xf32>
    %152 = tpu.matmul %151, %150, %cst_106 {dimension_numbers = #tpu.dot_dimension_numbers<[1], [0], [0], [1], [0, 0, 1, 1], [], []>} : vector<2x32xbf16>, vector<32x256xbf16>, vector<2x256xf32> -> vector<2x256xf32>
    %153 = arith.addf %147, %152 : vector<2x256xf32>
    %c0_107 = arith.constant 0 : index
    %c68 = arith.constant 68 : index
    %154 = vector.load %arg16[%c0_107, %c68] : memref<32x324xbf16, #tpu.memory_space<vmem>>, vector<32x256xbf16>
    %155 = vector.broadcast %129 : vector<1x256xbf16> to vector<32x256xbf16>
    %156 = arith.mulf %154, %155 : vector<32x256xbf16>
    %c48_108 = arith.constant 48 : index
    %c0_109 = arith.constant 0 : index
    %157 = vector.load %arg3[%c48_108, %c0_109] : memref<50x32xbf16, #tpu.memory_space<vmem>>, vector<2x32xbf16>
    %cst_110 = arith.constant dense<0.000000e+00> : vector<2x256xf32>
    %158 = tpu.matmul %157, %156, %cst_110 {dimension_numbers = #tpu.dot_dimension_numbers<[1], [0], [0], [1], [0, 0, 1, 1], [], []>} : vector<2x32xbf16>, vector<32x256xbf16>, vector<2x256xf32> -> vector<2x256xf32>
    %159 = arith.addf %153, %158 : vector<2x256xf32>
    %160 = vector.shape_cast %159 : vector<2x256xf32> to vector<1x2x256xf32>
    %cst_111 = arith.constant dense<0.000000e+00> : vector<1xf32>
    %161 = vector.multi_reduction <add>, %160, %cst_111 [1, 2] : vector<1x2x256xf32> to vector<1xf32>
    %162 = vector.shape_cast %161 : vector<1xf32> to vector<1x1x1xf32>
    %163 = vector.extract %162[0, 0, 0] : f32 from vector<1x1x1xf32>
    %cst_112 = arith.constant 5.120000e+02 : f32
    %164 = arith.divf %163, %cst_112 : f32
    %165 = vector.broadcast %164 : f32 to vector<2x256xf32>
    %166 = arith.subf %159, %165 : vector<2x256xf32>
    %167 = arith.mulf %166, %166 : vector<2x256xf32>
    %168 = vector.shape_cast %167 : vector<2x256xf32> to vector<1x2x256xf32>
    %cst_113 = arith.constant dense<0.000000e+00> : vector<1xf32>
    %169 = vector.multi_reduction <add>, %168, %cst_113 [1, 2] : vector<1x2x256xf32> to vector<1xf32>
    %170 = vector.shape_cast %169 : vector<1xf32> to vector<1x1x1xf32>
    %171 = vector.extract %170[0, 0, 0] : f32 from vector<1x1x1xf32>
    %cst_114 = arith.constant 5.120000e+02 : f32
    %172 = arith.divf %171, %cst_114 : f32
    %cst_115 = arith.constant 9.99999974E-6 : f32
    %173 = arith.addf %172, %cst_115 : f32
    %174 = math.rsqrt %173 : f32
    %175 = vector.broadcast %174 : f32 to vector<2x256xf32>
    %176 = arith.mulf %166, %175 : vector<2x256xf32>
    %c0_116 = arith.constant 0 : index
    %c0_117 = arith.constant 0 : index
    %177 = vector.load %arg5[%c0_116, %c0_117] : memref<2x256xf32, #tpu.memory_space<vmem>>, vector<2x256xf32>
    %178 = arith.mulf %176, %177 : vector<2x256xf32>
    %c0_118 = arith.constant 0 : index
    %c0_119 = arith.constant 0 : index
    %179 = vector.load %arg6[%c0_118, %c0_119] : memref<2x256xf32, #tpu.memory_space<vmem>>, vector<2x256xf32>
    %180 = arith.addf %178, %179 : vector<2x256xf32>
    %cst_120 = arith.constant 0.000000e+00 : f32
    %181 = vector.broadcast %cst_120 : f32 to vector<2x256xf32>
    %182 = arith.cmpf ogt, %180, %181 : vector<2x256xf32>
    %cst_121 = arith.constant 0.00999999977 : f32
    %183 = vector.broadcast %cst_121 : f32 to vector<2x256xf32>
    %184 = arith.mulf %183, %180 : vector<2x256xf32>
    %185 = arith.select %182, %180, %184 : vector<2x256xi1>, vector<2x256xf32>
    %c0_122 = arith.constant 0 : index
    %c0_123 = arith.constant 0 : index
    %186 = vector.load %arg7[%c0_122, %c0_123] : memref<2x32xf32, #tpu.memory_space<vmem>>, vector<2x32xf32>
    %cst_124 = arith.constant dense<0.000000e+00> : vector<2x256xf32>
    %187 = tpu.matmul %186, %9, %cst_124 {dimension_numbers = #tpu.dot_dimension_numbers<[1], [0], [0], [1], [0, 0, 1, 1], [], []>} : vector<2x32xf32>, vector<32x256xf32>, vector<2x256xf32> -> vector<2x256xf32>
    %cst_125 = arith.constant dense<0.000000e+00> : vector<2xf32>
    %188 = vector.multi_reduction <add>, %187, %cst_125 [1] : vector<2x256xf32> to vector<2xf32>
    %189 = vector.shape_cast %188 : vector<2xf32> to vector<2x1xf32>
    %cst_126 = arith.constant 3.906250e-03 : f32
    %190 = vector.broadcast %cst_126 : f32 to vector<2x1xf32>
    %191 = arith.mulf %189, %190 : vector<2x1xf32>
    %c0_127 = arith.constant 0 : index
    %c0_128 = arith.constant 0 : index
    %192 = vector.load %arg8[%c0_127, %c0_128] : memref<2x1xf32, #tpu.memory_space<vmem>>, vector<2x1xf32>
    %193 = arith.addf %191, %192 : vector<2x1xf32>
    %cst_129 = arith.constant 0.000000e+00 : f32
    %194 = vector.broadcast %cst_129 : f32 to vector<2x1xf32>
    %195 = arith.cmpf ogt, %193, %194 : vector<2x1xf32>
    %cst_130 = arith.constant 0.00999999977 : f32
    %196 = vector.broadcast %cst_130 : f32 to vector<2x1xf32>
    %197 = arith.mulf %196, %193 : vector<2x1xf32>
    %198 = arith.select %195, %193, %197 : vector<2x1xi1>, vector<2x1xf32>
    %c0_131 = arith.constant 0 : index
    %c0_132 = arith.constant 0 : index
    %199 = vector.load %arg9[%c0_131, %c0_132] : memref<32x2xf32, #tpu.memory_space<vmem>>, vector<32x2xf32>
    %200 = vector.broadcast %198 : vector<2x1xf32> to vector<2x256xf32>
    %201 = arith.mulf %200, %185 : vector<2x256xf32>
    %cst_133 = arith.constant dense<0.000000e+00> : vector<32x256xf32>
    %202 = tpu.matmul %199, %201, %cst_133 {dimension_numbers = #tpu.dot_dimension_numbers<[1], [0], [0], [1], [0, 0, 1, 1], [], []>} : vector<32x2xf32>, vector<2x256xf32>, vector<32x256xf32> -> vector<32x256xf32>
    %c0_134 = arith.constant 0 : index
    %c0_135 = arith.constant 0 : index
    %203 = vector.load %arg10[%c0_134, %c0_135] : memref<32x1xf32, #tpu.memory_space<vmem>>, vector<32x1xf32>
    %204 = vector.broadcast %203 : vector<32x1xf32> to vector<32x256xf32>
    %205 = arith.addf %202, %204 : vector<32x256xf32>
    %206 = arith.negf %205 : vector<32x256xf32>
    %207 = math.exp %206 : vector<32x256xf32>
    %cst_136 = arith.constant 1.000000e+00 : f32
    %208 = vector.broadcast %cst_136 : f32 to vector<32x256xf32>
    %209 = arith.addf %208, %207 : vector<32x256xf32>
    %210 = arith.divf %208, %209 : vector<32x256xf32>
    %c0_137 = arith.constant 0 : index
    %c34_138 = arith.constant 34 : index
    %211 = vector.load %arg17[%c0_137, %c34_138] : memref<2x324xf32, #tpu.memory_space<vmem>>, vector<2x256xf32>
    tpu.vector_store %arg17[%c0_137, %c34_138], %185 {strides = array<i32>} : memref<2x324xf32, #tpu.memory_space<vmem>>, vector<2x256xf32>,
    %c0_139 = arith.constant 0 : index
    %c0_140 = arith.constant 0 : index
    %212 = vector.load %arg2[%c0_139, %c0_140] : memref<5x256xbf16, #tpu.memory_space<vmem>>, vector<1x256xbf16>
    %c0_141 = arith.constant 0 : index
    %c0_142 = arith.constant 0 : index
    %213 = vector.load %arg17[%c0_141, %c0_142] : memref<2x324xf32, #tpu.memory_space<vmem>>, vector<2x256xf32>
    %214 = arith.extf %212 : vector<1x256xbf16> to vector<1x256xf32>
    %215 = vector.broadcast %214 : vector<1x256xf32> to vector<2x256xf32>
    %216 = arith.mulf %213, %215 : vector<2x256xf32>
    %c0_143 = arith.constant 0 : index
    %c0_144 = arith.constant 0 : index
    %217 = vector.load %arg18[%c0_143, %c0_144] : memref<50x256xf32, #tpu.memory_space<vmem>>, vector<2x256xf32>
    tpu.vector_store %arg18[%c0_143, %c0_144], %216 {strides = array<i32>} : memref<50x256xf32, #tpu.memory_space<vmem>>, vector<2x256xf32>,
    %c0_145 = arith.constant 0 : index
    %c16_146 = arith.constant 16 : index
    %218 = vector.load %arg17[%c0_145, %c16_146] : memref<2x324xf32, #tpu.memory_space<vmem>>, vector<2x256xf32>
    %219 = arith.extf %212 : vector<1x256xbf16> to vector<1x256xf32>
    %220 = vector.broadcast %219 : vector<1x256xf32> to vector<2x256xf32>
    %221 = arith.mulf %218, %220 : vector<2x256xf32>
    %c10_147 = arith.constant 10 : index
    %c0_148 = arith.constant 0 : index
    %222 = vector.load %arg18[%c10_147, %c0_148] : memref<50x256xf32, #tpu.memory_space<vmem>>, vector<2x256xf32>
    tpu.vector_store %arg18[%c10_147, %c0_148], %221 {strides = array<i32>} : memref<50x256xf32, #tpu.memory_space<vmem>>, vector<2x256xf32>,
    %c0_149 = arith.constant 0 : index
    %c32_150 = arith.constant 32 : index
    %223 = vector.load %arg17[%c0_149, %c32_150] : memref<2x324xf32, #tpu.memory_space<vmem>>, vector<2x256xf32>
    %224 = arith.extf %212 : vector<1x256xbf16> to vector<1x256xf32>
    %225 = vector.broadcast %224 : vector<1x256xf32> to vector<2x256xf32>
    %226 = arith.mulf %223, %225 : vector<2x256xf32>
    %c20_151 = arith.constant 20 : index
    %c0_152 = arith.constant 0 : index
    %227 = vector.load %arg18[%c20_151, %c0_152] : memref<50x256xf32, #tpu.memory_space<vmem>>, vector<2x256xf32>
    tpu.vector_store %arg18[%c20_151, %c0_152], %226 {strides = array<i32>} : memref<50x256xf32, #tpu.memory_space<vmem>>, vector<2x256xf32>,
    %c0_153 = arith.constant 0 : index
    %c48_154 = arith.constant 48 : index
    %228 = vector.load %arg17[%c0_153, %c48_154] : memref<2x324xf32, #tpu.memory_space<vmem>>, vector<2x256xf32>
    %229 = arith.extf %212 : vector<1x256xbf16> to vector<1x256xf32>
    %230 = vector.broadcast %229 : vector<1x256xf32> to vector<2x256xf32>
    %231 = arith.mulf %228, %230 : vector<2x256xf32>
    %c30_155 = arith.constant 30 : index
    %c0_156 = arith.constant 0 : index
    %232 = vector.load %arg18[%c30_155, %c0_156] : memref<50x256xf32, #tpu.memory_space<vmem>>, vector<2x256xf32>
    tpu.vector_store %arg18[%c30_155, %c0_156], %231 {strides = array<i32>} : memref<50x256xf32, #tpu.memory_space<vmem>>, vector<2x256xf32>,
    %c0_157 = arith.constant 0 : index
    %c64_158 = arith.constant 64 : index
    %233 = vector.load %arg17[%c0_157, %c64_158] : memref<2x324xf32, #tpu.memory_space<vmem>>, vector<2x256xf32>
    %234 = arith.extf %212 : vector<1x256xbf16> to vector<1x256xf32>
    %235 = vector.broadcast %234 : vector<1x256xf32> to vector<2x256xf32>
    %236 = arith.mulf %233, %235 : vector<2x256xf32>
    %c40_159 = arith.constant 40 : index
    %c0_160 = arith.constant 0 : index
    %237 = vector.load %arg18[%c40_159, %c0_160] : memref<50x256xf32, #tpu.memory_space<vmem>>, vector<2x256xf32>
    tpu.vector_store %arg18[%c40_159, %c0_160], %236 {strides = array<i32>} : memref<50x256xf32, #tpu.memory_space<vmem>>, vector<2x256xf32>,
    %c1_161 = arith.constant 1 : index
    %c0_162 = arith.constant 0 : index
    %238 = vector.load %arg2[%c1_161, %c0_162] : memref<5x256xbf16, #tpu.memory_space<vmem>>, vector<1x256xbf16>
    %c0_163 = arith.constant 0 : index
    %c1_164 = arith.constant 1 : index
    %239 = vector.load %arg17[%c0_163, %c1_164] : memref<2x324xf32, #tpu.memory_space<vmem>>, vector<2x256xf32>
    %240 = arith.extf %238 : vector<1x256xbf16> to vector<1x256xf32>
    %241 = vector.broadcast %240 : vector<1x256xf32> to vector<2x256xf32>
    %242 = arith.mulf %239, %241 : vector<2x256xf32>
    %c2_165 = arith.constant 2 : index
    %c0_166 = arith.constant 0 : index
    %243 = vector.load %arg18[%c2_165, %c0_166] : memref<50x256xf32, #tpu.memory_space<vmem>>, vector<2x256xf32>
    tpu.vector_store %arg18[%c2_165, %c0_166], %242 {strides = array<i32>} : memref<50x256xf32, #tpu.memory_space<vmem>>, vector<2x256xf32>,
    %c0_167 = arith.constant 0 : index
    %c17_168 = arith.constant 17 : index
    %244 = vector.load %arg17[%c0_167, %c17_168] : memref<2x324xf32, #tpu.memory_space<vmem>>, vector<2x256xf32>
    %245 = arith.extf %238 : vector<1x256xbf16> to vector<1x256xf32>
    %246 = vector.broadcast %245 : vector<1x256xf32> to vector<2x256xf32>
    %247 = arith.mulf %244, %246 : vector<2x256xf32>
    %c12_169 = arith.constant 12 : index
    %c0_170 = arith.constant 0 : index
    %248 = vector.load %arg18[%c12_169, %c0_170] : memref<50x256xf32, #tpu.memory_space<vmem>>, vector<2x256xf32>
    tpu.vector_store %arg18[%c12_169, %c0_170], %247 {strides = array<i32>} : memref<50x256xf32, #tpu.memory_space<vmem>>, vector<2x256xf32>,
    %c0_171 = arith.constant 0 : index
    %c33_172 = arith.constant 33 : index
    %249 = vector.load %arg17[%c0_171, %c33_172] : memref<2x324xf32, #tpu.memory_space<vmem>>, vector<2x256xf32>
    %250 = arith.extf %238 : vector<1x256xbf16> to vector<1x256xf32>
    %251 = vector.broadcast %250 : vector<1x256xf32> to vector<2x256xf32>
    %252 = arith.mulf %249, %251 : vector<2x256xf32>
    %c22_173 = arith.constant 22 : index
    %c0_174 = arith.constant 0 : index
    %253 = vector.load %arg18[%c22_173, %c0_174] : memref<50x256xf32, #tpu.memory_space<vmem>>, vector<2x256xf32>
    tpu.vector_store %arg18[%c22_173, %c0_174], %252 {strides = array<i32>} : memref<50x256xf32, #tpu.memory_space<vmem>>, vector<2x256xf32>,
    %c0_175 = arith.constant 0 : index
    %c49_176 = arith.constant 49 : index
    %254 = vector.load %arg17[%c0_175, %c49_176] : memref<2x324xf32, #tpu.memory_space<vmem>>, vector<2x256xf32>
    %255 = arith.extf %238 : vector<1x256xbf16> to vector<1x256xf32>
    %256 = vector.broadcast %255 : vector<1x256xf32> to vector<2x256xf32>
    %257 = arith.mulf %254, %256 : vector<2x256xf32>
    %c32_177 = arith.constant 32 : index
    %c0_178 = arith.constant 0 : index
    %258 = vector.load %arg18[%c32_177, %c0_178] : memref<50x256xf32, #tpu.memory_space<vmem>>, vector<2x256xf32>
    tpu.vector_store %arg18[%c32_177, %c0_178], %257 {strides = array<i32>} : memref<50x256xf32, #tpu.memory_space<vmem>>, vector<2x256xf32>,
    %c0_179 = arith.constant 0 : index
    %c65_180 = arith.constant 65 : index
    %259 = vector.load %arg17[%c0_179, %c65_180] : memref<2x324xf32, #tpu.memory_space<vmem>>, vector<2x256xf32>
    %260 = arith.extf %238 : vector<1x256xbf16> to vector<1x256xf32>
    %261 = vector.broadcast %260 : vector<1x256xf32> to vector<2x256xf32>
    %262 = arith.mulf %259, %261 : vector<2x256xf32>
    %c42_181 = arith.constant 42 : index
    %c0_182 = arith.constant 0 : index
    %263 = vector.load %arg18[%c42_181, %c0_182] : memref<50x256xf32, #tpu.memory_space<vmem>>, vector<2x256xf32>
    tpu.vector_store %arg18[%c42_181, %c0_182], %262 {strides = array<i32>} : memref<50x256xf32, #tpu.memory_space<vmem>>, vector<2x256xf32>,
    %c0_183 = arith.constant 0 : index
    %c2_184 = arith.constant 2 : index
    %264 = vector.load %arg17[%c0_183, %c2_184] : memref<2x324xf32, #tpu.memory_space<vmem>>, vector<2x256xf32>
    %c4_185 = arith.constant 4 : index
    %c0_186 = arith.constant 0 : index
    %265 = vector.load %arg18[%c4_185, %c0_186] : memref<50x256xf32, #tpu.memory_space<vmem>>, vector<2x256xf32>
    tpu.vector_store %arg18[%c4_185, %c0_186], %264 {strides = array<i32>} : memref<50x256xf32, #tpu.memory_space<vmem>>, vector<2x256xf32>,
    %c0_187 = arith.constant 0 : index
    %c18_188 = arith.constant 18 : index
    %266 = vector.load %arg17[%c0_187, %c18_188] : memref<2x324xf32, #tpu.memory_space<vmem>>, vector<2x256xf32>
    %c14_189 = arith.constant 14 : index
    %c0_190 = arith.constant 0 : index
    %267 = vector.load %arg18[%c14_189, %c0_190] : memref<50x256xf32, #tpu.memory_space<vmem>>, vector<2x256xf32>
    tpu.vector_store %arg18[%c14_189, %c0_190], %266 {strides = array<i32>} : memref<50x256xf32, #tpu.memory_space<vmem>>, vector<2x256xf32>,
    %c0_191 = arith.constant 0 : index
    %c34_192 = arith.constant 34 : index
    %268 = vector.load %arg17[%c0_191, %c34_192] : memref<2x324xf32, #tpu.memory_space<vmem>>, vector<2x256xf32>
    %c24_193 = arith.constant 24 : index
    %c0_194 = arith.constant 0 : index
    %269 = vector.load %arg18[%c24_193, %c0_194] : memref<50x256xf32, #tpu.memory_space<vmem>>, vector<2x256xf32>
    tpu.vector_store %arg18[%c24_193, %c0_194], %268 {strides = array<i32>} : memref<50x256xf32, #tpu.memory_space<vmem>>, vector<2x256xf32>,
    %c0_195 = arith.constant 0 : index
    %c50_196 = arith.constant 50 : index
    %270 = vector.load %arg17[%c0_195, %c50_196] : memref<2x324xf32, #tpu.memory_space<vmem>>, vector<2x256xf32>
    %c34_197 = arith.constant 34 : index
    %c0_198 = arith.constant 0 : index
    %271 = vector.load %arg18[%c34_197, %c0_198] : memref<50x256xf32, #tpu.memory_space<vmem>>, vector<2x256xf32>
    tpu.vector_store %arg18[%c34_197, %c0_198], %270 {strides = array<i32>} : memref<50x256xf32, #tpu.memory_space<vmem>>, vector<2x256xf32>,
    %c0_199 = arith.constant 0 : index
    %c66_200 = arith.constant 66 : index
    %272 = vector.load %arg17[%c0_199, %c66_200] : memref<2x324xf32, #tpu.memory_space<vmem>>, vector<2x256xf32>
    %c44_201 = arith.constant 44 : index
    %c0_202 = arith.constant 0 : index
    %273 = vector.load %arg18[%c44_201, %c0_202] : memref<50x256xf32, #tpu.memory_space<vmem>>, vector<2x256xf32>
    tpu.vector_store %arg18[%c44_201, %c0_202], %272 {strides = array<i32>} : memref<50x256xf32, #tpu.memory_space<vmem>>, vector<2x256xf32>,
    %c3_203 = arith.constant 3 : index
    %c0_204 = arith.constant 0 : index
    %274 = vector.load %arg2[%c3_203, %c0_204] : memref<5x256xbf16, #tpu.memory_space<vmem>>, vector<1x256xbf16>
    %c0_205 = arith.constant 0 : index
    %c3_206 = arith.constant 3 : index
    %275 = vector.load %arg17[%c0_205, %c3_206] : memref<2x324xf32, #tpu.memory_space<vmem>>, vector<2x256xf32>
    %276 = arith.extf %274 : vector<1x256xbf16> to vector<1x256xf32>
    %277 = vector.broadcast %276 : vector<1x256xf32> to vector<2x256xf32>
    %278 = arith.mulf %275, %277 : vector<2x256xf32>
    %c6_207 = arith.constant 6 : index
    %c0_208 = arith.constant 0 : index
    %279 = vector.load %arg18[%c6_207, %c0_208] : memref<50x256xf32, #tpu.memory_space<vmem>>, vector<2x256xf32>
    tpu.vector_store %arg18[%c6_207, %c0_208], %278 {strides = array<i32>} : memref<50x256xf32, #tpu.memory_space<vmem>>, vector<2x256xf32>,
    %c0_209 = arith.constant 0 : index
    %c19_210 = arith.constant 19 : index
    %280 = vector.load %arg17[%c0_209, %c19_210] : memref<2x324xf32, #tpu.memory_space<vmem>>, vector<2x256xf32>
    %281 = arith.extf %274 : vector<1x256xbf16> to vector<1x256xf32>
    %282 = vector.broadcast %281 : vector<1x256xf32> to vector<2x256xf32>
    %283 = arith.mulf %280, %282 : vector<2x256xf32>
    %c16_211 = arith.constant 16 : index
    %c0_212 = arith.constant 0 : index
    %284 = vector.load %arg18[%c16_211, %c0_212] : memref<50x256xf32, #tpu.memory_space<vmem>>, vector<2x256xf32>
    tpu.vector_store %arg18[%c16_211, %c0_212], %283 {strides = array<i32>} : memref<50x256xf32, #tpu.memory_space<vmem>>, vector<2x256xf32>,
    %c0_213 = arith.constant 0 : index
    %c35_214 = arith.constant 35 : index
    %285 = vector.load %arg17[%c0_213, %c35_214] : memref<2x324xf32, #tpu.memory_space<vmem>>, vector<2x256xf32>
    %286 = arith.extf %274 : vector<1x256xbf16> to vector<1x256xf32>
    %287 = vector.broadcast %286 : vector<1x256xf32> to vector<2x256xf32>
    %288 = arith.mulf %285, %287 : vector<2x256xf32>
    %c26_215 = arith.constant 26 : index
    %c0_216 = arith.constant 0 : index
    %289 = vector.load %arg18[%c26_215, %c0_216] : memref<50x256xf32, #tpu.memory_space<vmem>>, vector<2x256xf32>
    tpu.vector_store %arg18[%c26_215, %c0_216], %288 {strides = array<i32>} : memref<50x256xf32, #tpu.memory_space<vmem>>, vector<2x256xf32>,
    %c0_217 = arith.constant 0 : index
    %c51_218 = arith.constant 51 : index
    %290 = vector.load %arg17[%c0_217, %c51_218] : memref<2x324xf32, #tpu.memory_space<vmem>>, vector<2x256xf32>
    %291 = arith.extf %274 : vector<1x256xbf16> to vector<1x256xf32>
    %292 = vector.broadcast %291 : vector<1x256xf32> to vector<2x256xf32>
    %293 = arith.mulf %290, %292 : vector<2x256xf32>
    %c36_219 = arith.constant 36 : index
    %c0_220 = arith.constant 0 : index
    %294 = vector.load %arg18[%c36_219, %c0_220] : memref<50x256xf32, #tpu.memory_space<vmem>>, vector<2x256xf32>
    tpu.vector_store %arg18[%c36_219, %c0_220], %293 {strides = array<i32>} : memref<50x256xf32, #tpu.memory_space<vmem>>, vector<2x256xf32>,
    %c0_221 = arith.constant 0 : index
    %c67_222 = arith.constant 67 : index
    %295 = vector.load %arg17[%c0_221, %c67_222] : memref<2x324xf32, #tpu.memory_space<vmem>>, vector<2x256xf32>
    %296 = arith.extf %274 : vector<1x256xbf16> to vector<1x256xf32>
    %297 = vector.broadcast %296 : vector<1x256xf32> to vector<2x256xf32>
    %298 = arith.mulf %295, %297 : vector<2x256xf32>
    %c46_223 = arith.constant 46 : index
    %c0_224 = arith.constant 0 : index
    %299 = vector.load %arg18[%c46_223, %c0_224] : memref<50x256xf32, #tpu.memory_space<vmem>>, vector<2x256xf32>
    tpu.vector_store %arg18[%c46_223, %c0_224], %298 {strides = array<i32>} : memref<50x256xf32, #tpu.memory_space<vmem>>, vector<2x256xf32>,
    %c4_225 = arith.constant 4 : index
    %c0_226 = arith.constant 0 : index
    %300 = vector.load %arg2[%c4_225, %c0_226] : memref<5x256xbf16, #tpu.memory_space<vmem>>, vector<1x256xbf16>
    %c0_227 = arith.constant 0 : index
    %c4_228 = arith.constant 4 : index
    %301 = vector.load %arg17[%c0_227, %c4_228] : memref<2x324xf32, #tpu.memory_space<vmem>>, vector<2x256xf32>
    %302 = arith.extf %300 : vector<1x256xbf16> to vector<1x256xf32>
    %303 = vector.broadcast %302 : vector<1x256xf32> to vector<2x256xf32>
    %304 = arith.mulf %301, %303 : vector<2x256xf32>
    %c8_229 = arith.constant 8 : index
    %c0_230 = arith.constant 0 : index
    %305 = vector.load %arg18[%c8_229, %c0_230] : memref<50x256xf32, #tpu.memory_space<vmem>>, vector<2x256xf32>
    tpu.vector_store %arg18[%c8_229, %c0_230], %304 {strides = array<i32>} : memref<50x256xf32, #tpu.memory_space<vmem>>, vector<2x256xf32>,
    %c0_231 = arith.constant 0 : index
    %c20_232 = arith.constant 20 : index
    %306 = vector.load %arg17[%c0_231, %c20_232] : memref<2x324xf32, #tpu.memory_space<vmem>>, vector<2x256xf32>
    %307 = arith.extf %300 : vector<1x256xbf16> to vector<1x256xf32>
    %308 = vector.broadcast %307 : vector<1x256xf32> to vector<2x256xf32>
    %309 = arith.mulf %306, %308 : vector<2x256xf32>
    %c18_233 = arith.constant 18 : index
    %c0_234 = arith.constant 0 : index
    %310 = vector.load %arg18[%c18_233, %c0_234] : memref<50x256xf32, #tpu.memory_space<vmem>>, vector<2x256xf32>
    tpu.vector_store %arg18[%c18_233, %c0_234], %309 {strides = array<i32>} : memref<50x256xf32, #tpu.memory_space<vmem>>, vector<2x256xf32>,
    %c0_235 = arith.constant 0 : index
    %c36_236 = arith.constant 36 : index
    %311 = vector.load %arg17[%c0_235, %c36_236] : memref<2x324xf32, #tpu.memory_space<vmem>>, vector<2x256xf32>
    %312 = arith.extf %300 : vector<1x256xbf16> to vector<1x256xf32>
    %313 = vector.broadcast %312 : vector<1x256xf32> to vector<2x256xf32>
    %314 = arith.mulf %311, %313 : vector<2x256xf32>
    %c28_237 = arith.constant 28 : index
    %c0_238 = arith.constant 0 : index
    %315 = vector.load %arg18[%c28_237, %c0_238] : memref<50x256xf32, #tpu.memory_space<vmem>>, vector<2x256xf32>
    tpu.vector_store %arg18[%c28_237, %c0_238], %314 {strides = array<i32>} : memref<50x256xf32, #tpu.memory_space<vmem>>, vector<2x256xf32>,
    %c0_239 = arith.constant 0 : index
    %c52_240 = arith.constant 52 : index
    %316 = vector.load %arg17[%c0_239, %c52_240] : memref<2x324xf32, #tpu.memory_space<vmem>>, vector<2x256xf32>
    %317 = arith.extf %300 : vector<1x256xbf16> to vector<1x256xf32>
    %318 = vector.broadcast %317 : vector<1x256xf32> to vector<2x256xf32>
    %319 = arith.mulf %316, %318 : vector<2x256xf32>
    %c38_241 = arith.constant 38 : index
    %c0_242 = arith.constant 0 : index
    %320 = vector.load %arg18[%c38_241, %c0_242] : memref<50x256xf32, #tpu.memory_space<vmem>>, vector<2x256xf32>
    tpu.vector_store %arg18[%c38_241, %c0_242], %319 {strides = array<i32>} : memref<50x256xf32, #tpu.memory_space<vmem>>, vector<2x256xf32>,
    %c0_243 = arith.constant 0 : index
    %c68_244 = arith.constant 68 : index
    %321 = vector.load %arg17[%c0_243, %c68_244] : memref<2x324xf32, #tpu.memory_space<vmem>>, vector<2x256xf32>
    %322 = arith.extf %300 : vector<1x256xbf16> to vector<1x256xf32>
    %323 = vector.broadcast %322 : vector<1x256xf32> to vector<2x256xf32>
    %324 = arith.mulf %321, %323 : vector<2x256xf32>
    %c48_245 = arith.constant 48 : index
    %c0_246 = arith.constant 0 : index
    %325 = vector.load %arg18[%c48_245, %c0_246] : memref<50x256xf32, #tpu.memory_space<vmem>>, vector<2x256xf32>
    tpu.vector_store %arg18[%c48_245, %c0_246], %324 {strides = array<i32>} : memref<50x256xf32, #tpu.memory_space<vmem>>, vector<2x256xf32>,
    %c0_247 = arith.constant 0 : index
    %c0_248 = arith.constant 0 : index
    %326 = vector.load %arg11[%c0_247, %c0_248] : memref<32x50xf32, #tpu.memory_space<vmem>>, vector<32x50xf32>
    %c0_249 = arith.constant 0 : index
    %c0_250 = arith.constant 0 : index
    %327 = vector.load %arg18[%c0_249, %c0_250] : memref<50x256xf32, #tpu.memory_space<vmem>>, vector<50x256xf32>
    %cst_251 = arith.constant dense<0.000000e+00> : vector<32x256xf32>
    %328 = tpu.matmul %326, %327, %cst_251 {dimension_numbers = #tpu.dot_dimension_numbers<[1], [0], [0], [1], [0, 0, 1, 1], [], []>} : vector<32x50xf32>, vector<50x256xf32>, vector<32x256xf32> -> vector<32x256xf32>
    %c0_252 = arith.constant 0 : index
    %c0_253 = arith.constant 0 : index
    %329 = vector.load %arg12[%c0_252, %c0_253] : memref<32x1xf32, #tpu.memory_space<vmem>>, vector<32x1xf32>
    %330 = vector.broadcast %329 : vector<32x1xf32> to vector<32x256xf32>
    %331 = arith.addf %328, %330 : vector<32x256xf32>
    %332 = vector.shape_cast %331 : vector<32x256xf32> to vector<1x32x256xf32>
    %cst_254 = arith.constant dense<0.000000e+00> : vector<1xf32>
    %333 = vector.multi_reduction <add>, %332, %cst_254 [1, 2] : vector<1x32x256xf32> to vector<1xf32>
    %334 = vector.shape_cast %333 : vector<1xf32> to vector<1x1x1xf32>
    %335 = vector.extract %334[0, 0, 0] : f32 from vector<1x1x1xf32>
    %cst_255 = arith.constant 8.192000e+03 : f32
    %336 = arith.divf %335, %cst_255 : f32
    %337 = vector.broadcast %336 : f32 to vector<32x256xf32>
    %338 = arith.subf %331, %337 : vector<32x256xf32>
    %339 = arith.mulf %338, %338 : vector<32x256xf32>
    %340 = vector.shape_cast %339 : vector<32x256xf32> to vector<1x32x256xf32>
    %cst_256 = arith.constant dense<0.000000e+00> : vector<1xf32>
    %341 = vector.multi_reduction <add>, %340, %cst_256 [1, 2] : vector<1x32x256xf32> to vector<1xf32>
    %342 = vector.shape_cast %341 : vector<1xf32> to vector<1x1x1xf32>
    %343 = vector.extract %342[0, 0, 0] : f32 from vector<1x1x1xf32>
    %cst_257 = arith.constant 8.192000e+03 : f32
    %344 = arith.divf %343, %cst_257 : f32
    %cst_258 = arith.constant 9.99999974E-6 : f32
    %345 = arith.addf %344, %cst_258 : f32
    %346 = math.rsqrt %345 : f32
    %347 = vector.broadcast %346 : f32 to vector<32x256xf32>
    %348 = arith.mulf %338, %347 : vector<32x256xf32>
    %c0_259 = arith.constant 0 : index
    %c0_260 = arith.constant 0 : index
    %349 = vector.load %arg13[%c0_259, %c0_260] : memref<32x256xf32, #tpu.memory_space<vmem>>, vector<32x256xf32>
    %350 = arith.mulf %348, %349 : vector<32x256xf32>
    %c0_261 = arith.constant 0 : index
    %c0_262 = arith.constant 0 : index
    %351 = vector.load %arg14[%c0_261, %c0_262] : memref<32x256xf32, #tpu.memory_space<vmem>>, vector<32x256xf32>
    %352 = arith.addf %350, %351 : vector<32x256xf32>
    %353 = arith.negf %352 : vector<32x256xf32>
    %354 = math.exp %353 : vector<32x256xf32>
    %cst_263 = arith.constant 1.000000e+00 : f32
    %355 = vector.broadcast %cst_263 : f32 to vector<32x256xf32>
    %356 = arith.addf %355, %354 : vector<32x256xf32>
    %357 = arith.divf %355, %356 : vector<32x256xf32>
    %358 = arith.mulf %9, %210 : vector<32x256xf32>
    %359 = arith.mulf %358, %357 : vector<32x256xf32>
    %c0_264 = arith.constant 0 : index
    %c0_265 = arith.constant 0 : index
    %c0_266 = arith.constant 0 : index
    %360 = vector.load %arg15[%c0_264, %c0_265, %c0_266] : memref<1x32x256xf32, #tpu.memory_space<vmem>>, vector<1x32x256xf32>
    %361 = vector.shape_cast %360 : vector<1x32x256xf32> to vector<32x256xf32>
    %362 = vector.shape_cast %359 : vector<32x256xf32> to vector<1x32x256xf32>
    tpu.vector_store %arg15[%c0_264, %c0_265, %c0_266], %362 {strides = array<i32>} : memref<1x32x256xf32, #tpu.memory_space<vmem>>, vector<1x32x256xf32>,
    return
  }
  func.func @transform_0(%arg0: i32) -> (i32, i32, i32) {
    %c0_i32 = arith.constant 0 : i32
    %c0_i32_0 = arith.constant 0 : i32
    %c0_i32_1 = arith.constant 0 : i32
    return %arg0, %c0_i32, %c0_i32_0 : i32, i32, i32
  }
  func.func @transform_1(%arg0: i32) -> (i32, i32) {
    %c0_i32 = arith.constant 0 : i32
    %c0_i32_0 = arith.constant 0 : i32
    %c0_i32_1 = arith.constant 0 : i32
    return %c0_i32, %c0_i32_0 : i32, i32
  }
  func.func @transform_2(%arg0: i32) -> (i32, i32) {
    %c0_i32 = arith.constant 0 : i32
    %c0_i32_0 = arith.constant 0 : i32
    %c0_i32_1 = arith.constant 0 : i32
    return %c0_i32, %c0_i32_0 : i32, i32
  }
  func.func @transform_3(%arg0: i32) -> (i32, i32) {
    %c0_i32 = arith.constant 0 : i32
    %c0_i32_0 = arith.constant 0 : i32
    %c0_i32_1 = arith.constant 0 : i32
    return %c0_i32, %c0_i32_0 : i32, i32
  }
  func.func @transform_4(%arg0: i32) -> (i32, i32) {
    %c0_i32 = arith.constant 0 : i32
    %c0_i32_0 = arith.constant 0 : i32
    %c0_i32_1 = arith.constant 0 : i32
    return %c0_i32, %c0_i32_0 : i32, i32
  }
  func.func @transform_5(%arg0: i32) -> (i32, i32) {
    %c0_i32 = arith.constant 0 : i32
    %c0_i32_0 = arith.constant 0 : i32
    %c0_i32_1 = arith.constant 0 : i32
    return %c0_i32, %c0_i32_0 : i32, i32
  }
  func.func @transform_6(%arg0: i32) -> (i32, i32) {
    %c0_i32 = arith.constant 0 : i32
    %c0_i32_0 = arith.constant 0 : i32
    %c0_i32_1 = arith.constant 0 : i32
    return %c0_i32, %c0_i32_0 : i32, i32
  }
  func.func @transform_7(%arg0: i32) -> (i32, i32) {
    %c0_i32 = arith.constant 0 : i32
    %c0_i32_0 = arith.constant 0 : i32
    %c0_i32_1 = arith.constant 0 : i32
    return %c0_i32, %c0_i32_0 : i32, i32
  }
  func.func @transform_8(%arg0: i32) -> (i32, i32) {
    %c0_i32 = arith.constant 0 : i32
    %c0_i32_0 = arith.constant 0 : i32
    %c0_i32_1 = arith.constant 0 : i32
    return %c0_i32, %c0_i32_0 : i32, i32
  }
  func.func @transform_9(%arg0: i32) -> (i32, i32) {
    %c0_i32 = arith.constant 0 : i32
    %c0_i32_0 = arith.constant 0 : i32
    %c0_i32_1 = arith.constant 0 : i32
    return %c0_i32, %c0_i32_0 : i32, i32
  }
  func.func @transform_10(%arg0: i32) -> (i32, i32) {
    %c0_i32 = arith.constant 0 : i32
    %c0_i32_0 = arith.constant 0 : i32
    %c0_i32_1 = arith.constant 0 : i32
    return %c0_i32, %c0_i32_0 : i32, i32
  }
  func.func @transform_11(%arg0: i32) -> (i32, i32) {
    %c0_i32 = arith.constant 0 : i32
    %c0_i32_0 = arith.constant 0 : i32
    %c0_i32_1 = arith.constant 0 : i32
    return %c0_i32, %c0_i32_0 : i32, i32
  }
  func.func @transform_12(%arg0: i32) -> (i32, i32) {
    %c0_i32 = arith.constant 0 : i32
    %c0_i32_0 = arith.constant 0 : i32
    %c0_i32_1 = arith.constant 0 : i32
    return %c0_i32, %c0_i32_0 : i32, i32
  }
  func.func @transform_13(%arg0: i32) -> (i32, i32) {
    %c0_i32 = arith.constant 0 : i32
    %c0_i32_0 = arith.constant 0 : i32
    %c0_i32_1 = arith.constant 0 : i32
    return %c0_i32, %c0_i32_0 : i32, i32
  }
  func.func @transform_14(%arg0: i32) -> (i32, i32, i32) {
    %c0_i32 = arith.constant 0 : i32
    %c0_i32_0 = arith.constant 0 : i32
    %c0_i32_1 = arith.constant 0 : i32
    return %arg0, %c0_i32, %c0_i32_0 : i32, i32, i32
  }
}

</mosaic_0001>

<bundles_post_ra>
// kernel: hccsa_pallas.1
= control target key start
LH: loop header
LB: loop body
LE: loop exit
PB: predicated region body
PF: predicated region fallthrough
CT: control target
= control target key end

     0   :  { %s5037_s29 = smov 0   ;;  %s6830_s0 = inlined_call_operand.vmem [shape: f32[2,32,256], index: 0, kind: input, shape index: {}]   ;;  %s6831_s1 = inlined_call_operand.vmem [shape: bf16[5,256], index: 1, kind: input, shape index: {}]   ;;  %s6832_s2 = inlined_call_operand.vmem [shape: bf16[50,32], index: 2, kind: input, shape index: {}]   ;;  %s6833_s3 = inlined_call_operand.vmem [shape: f32[2,1], index: 3, kind: input, shape index: {}]   ;;  %s6834_s4 = inlined_call_operand.vmem [shape: f32[2,256], index: 4, kind: input, shape index: {}]   ;;  %s6835_s5 = inlined_call_operand.vmem [shape: f32[2,256], index: 5, kind: input, shape index: {}]   ;;  %s6836_s6 = inlined_call_operand.vmem [shape: f32[2,32], index: 6, kind: input, shape index: {}]   ;;  %s6837_s7 = inlined_call_operand.vmem [shape: f32[2,1], index: 7, kind: input, shape index: {}]   ;;  %s6838_s8 = inlined_call_operand.vmem [shape: f32[32,2], index: 8, kind: input, shape index: {}]   ;;  %s6839_s9 = inlined_call_operand.vmem [shape: f32[32,1], index: 9, kind: input, shape index: {}]   ;;  %s6840_s10 = inlined_call_operand.vmem [shape: f32[32,50], index: 10, kind: input, shape index: {}]   ;;  %s6841_s11 = inlined_call_operand.vmem [shape: f32[32,1], index: 11, kind: input, shape index: {}]   ;;  %s6842_s12 = inlined_call_operand.vmem [shape: f32[32,256], index: 12, kind: input, shape index: {}]   ;;  %s6843_s13 = inlined_call_operand.vmem [shape: f32[32,256], index: 13, kind: input, shape index: {}]   ;;  %s6844_s14 = inlined_call_operand.vmem [shape: f32[2,32,256], index: 14, kind: output, shape index: {}]  }
   0x1   :  { %6939 = sst [smem:[#allocation5_spill]] %s6830_s0 }
   0x2   :  { %6940 = sst [smem:[#allocation6_spill]] %s6831_s1 }
   0x3   :  { %6941 = sst [smem:[#allocation7_spill]] %s6832_s2 }
   0x4   :  { %6942 = sst [smem:[#allocation8_spill]] %s6833_s3 }
   0x5   :  { %6943 = sst [smem:[#allocation9_spill]] %s6834_s4 }
   0x6 LB: > { %s4519_s30 = sadd.s32 4294967295, %s4914_s29   ;;  %p4523_p0 = scmp.ge.s32.totalorder %s4914_s29, 1  ;;  %s4914_s29 = sphi %s5037_s29, %s24_s29  }
   0x7   : > { %p412_p1 = scmp.lt.s32.totalorder %s4914_s29, 3 }
   0x9   : > { %p413_p2 = pnand %p4523_p0, %p412_p1 }
   0xa   : > { %p458_p3 = scmp.lt.s32.totalorder (!%p413_p2), %s4519_s30, 1  ;;  %s6944_s1 = sld [smem:[#allocation6_spill]] (!%p413_p2)  ;;  %v539_v1 = vlaneseq (!%p413_p2)  ;;  %vm469_vm0 = vcmask (!%p413_p2), 277504   ;;  %v4917_v25 = vmov (!%p413_p2), 0   ;;  %vm472_vm1 = vcmask (!%p413_p2), 556304  }
   0xb   : > { %416 = sbr.rel (%p413_p2) target bundleno = 2460 (0x99c), region = 76  ;;  %s6945_s0 = sld [smem:[#allocation5_spill]] (!%p413_p2)  ;;  %471 = vst.msk [vmem:[#allocation2 + $0x18] sm:$0xff] (!%p413_p2), %vm469_vm0, %v4917_v25  ;;  %470 = vst.msk [vmem:[#allocation2] sm:$0xff] (!%p413_p2), %vm469_vm0, %v4917_v25  ;;  %1521 = vmatprep.mubr.bf16.mxu0 (!%p413_p2), %v4917_v25  ;;  %591 = vmatprep.mubr.bf16.mxu1 (!%p413_p2), %v4917_v25  ;;  %vm512_vm2 = vcmask (!%p413_p2), 1047824   ;;  %vm6903_vm3 = vcmask (!%p413_p2), 23552  }
   0xc   : > { %v5061_v5 = vshrl.u32 (!%p413_p2), %v539_v1, 7  ;;  %s6846_s23 = smov (!%p413_p2), 34   ;;  %474 = vst.msk [vmem:[#allocation2 + $0x28] sm:$0xff] (!%p413_p2), %vm472_vm1, %v4917_v25  ;;  %473 = vst.msk [vmem:[#allocation2 + $0x10] sm:$0xff] (!%p413_p2), %vm472_vm1, %v4917_v25  ;;  %4795 = vset.pattern.permute.xlu0 (!%p413_p2), %v4917_v25  ;;  %4796 = vset.pattern.permute.xlu1 (!%p413_p2), %v4917_v25  ;;  %s4918_s24 = smov (!%p413_p2), 3   ;;  %vm555_vm4 = vcmask (!%p413_p2), 261120  }
   0xd   : > { %s4919_s25 = smov (!%p413_p2), 16   ;;  %s4920_s26 = smov (!%p413_p2), 19   ;;  %vm614_vm5 = vcmask (!%p413_p2), 130048   ;;  %vm1937_vm6 = vcmask (!%p413_p2), 154624   ;;  %vm2026_vm7 = vcmask (!%p413_p2), 285696   ;;  %vm6899_vm8 = vcmask (!%p413_p2), 392192  }
   0xe   : > { %v5080_v20 = vsub.s32 (!%p413_p2), 1, %v5061_v5  ;;  %v5100_v27 = vsub.s32 (!%p413_p2), 0, %v5061_v5  ;;  %s4921_s27 = smov (!%p413_p2), 32   ;;  %s6848_s28 = smov (!%p413_p2), 35   ;;  %v2312_v41 = vsub.s32 (!%p413_p2), 2, %v5061_v5  ;;  %vm2119_vm9 = vcmask (!%p413_p2), 416768  }
   0xf   : > { %s4923_s15 = smov (!%p413_p2), 48   ;;  %s6851_s16 = smov (!%p413_p2), 51   ;;  %vm6881_vm10 = vcmask (!%p413_p2), 1031168   ;;  %vm6891_vm11 = vcmask (!%p413_p2), 900096   ;;  %vm6921_vm12 = vcmask (!%p413_p2), 523264   ;;  %vm6880_vm13 = vcmask (!%p413_p2), 769024  }
  0x10   : > { %v1816_v0 = vld [vmem:[%s6944_s1] sm:$0x22] (!%p413_p2)  ;;  %v526_v4 = vld [vmem:[%s6944_s1] sm:$0x11] (!%p413_p2)  ;;  %v2301_v35 = vld [vmem:[%s6944_s1] sm:$0x44] (!%p413_p2) }
  0x11   : > { %v4557_v2 = vcombine.high (!%p413_p2), %v1816_v0, %v1816_v0  ;;  %v4556_v3 = vcombine.low (!%p413_p2), %v1816_v0, %v1816_v0  ;;  %v4529_v18 = vcombine.high (!%p413_p2), %v526_v4, %v526_v4  ;;  %v4528_v24 = vcombine.low (!%p413_p2), %v526_v4, %v526_v4  ;;  %s6885_s20 = smov (!%p413_p2), 64   ;;  %s6847_s21 = smov (!%p413_p2), 67  }
  0x12   : > { %s7046_s30 = smov (!%p458_p3, %s4519_s30), 1  ;;  %v4568_v37 = vcombine.high %v2301_v35, %v2301_v35  ;;  %v4567_v39 = vcombine.low %v2301_v35, %v2301_v35  ;;  %s4927_s18 = smov 1   ;;  %vm6892_vm14 = vcmask 547840   ;;  %vm6882_vm15 = vcmask 637952  }
  0x13   : > { %s6845_s17 = sshll.u32 %s7046_s30, 6  ;;  %v1831_v6 = vshrl.u32 %v4557_v2, 16  ;;  %v1823_v10 = vshrl.u32 %v4556_v3, 16  ;;  %v544_v28 = vpack.i.b16 %v4529_v18, %v4529_v18  ;;  %v537_v30 = vpack.i.b16 %v4528_v24, %v4528_v24  ;;  %s6849_s19 = smov 4  }
  0x14   : > { %s5059_s22 = scalar_lea.vmem %s6945_s0, %s6845_s17  ;;  %v984_v33 = vshrl.u32 %v4529_v18, 16  ;;  %v977_v34 = vshrl.u32 %v4528_v24, 16  ;;  %v2315_v42 = vpack.i.b16 %v4568_v37, %v4568_v37  ;;  %v2308_v44 = vpack.i.b16 %v4567_v39, %v4567_v39  ;;  %s6850_s17 = smov 17  }
  0x15   : > { %v483_v7 = vld [vmem:[%s5059_s22 + $0x20] sm:$0xff]  ;;  %v485_v8 = vld [vmem:[%s5059_s22 + $0x30] sm:$0xff]  ;;  %v484_v13 = vld [vmem:[%s5059_s22 + $0x28] sm:$0xff]  ;;  %v1832_v21 = vpack.i.b16 %v1831_v6, %v1831_v6  ;;  %v1824_v23 = vpack.i.b16 %v1823_v10, %v1823_v10  ;;  %v5107_v31 = vrot.slane %v544_v28, %v5100_v27  ;;  %v5111_v32 = vrot.slane %v537_v30, %v5100_v27  ;;  %s6946_s2 = sld [smem:[#allocation7_spill]]  ;;  %s6947_s3 = sld [smem:[#allocation8_spill]] }
  0x16   : > { %v479_v9 = vld [vmem:[%s5059_s22] sm:$0xff]  ;;  %v5066_v11 = vpack.c.bf16 %v485_v8, %v483_v7  ;;  %v481_v12 = vld [vmem:[%s5059_s22 + $0x10] sm:$0xff]  ;;  %v486_v14 = vld [vmem:[%s5059_s22 + $0x38] sm:$0xff]  ;;  %v985_v36 = vpack.i.b16 %v984_v33, %v984_v33  ;;  %v978_v38 = vpack.i.b16 %v977_v34, %v977_v34  ;;  %v5149_v45 = vrot.slane %v2315_v42, %v2312_v41  ;;  %s6960_s4 = sld [smem:[#allocation9_spill]]  ;;  %s6977_s0 = smov 109  }
  0x17   : > { %v5071_v15 = vpack.c.bf16 %v481_v12, %v479_v9  ;;  %v480_v16 = vld [vmem:[%s5059_s22 + $0x8] sm:$0xff]  ;;  %v482_v17 = vld [vmem:[%s5059_s22 + $0x18] sm:$0xff]  ;;  %v5077_v19 = vpack.c.bf16 %v486_v14, %v484_v13  ;;  %v1837_v26 = vrot.slane %v1832_v21, %v5080_v20  ;;  %v1829_v29 = vrot.slane %v1824_v23, %v5080_v20 }
  0x18   : > { %499 = vrot.lane.b32.xlu1 %v5066_v11, %s6846_s23  ;;  %v5084_v22 = vpack.c.bf16 %v482_v17, %v480_v16  ;;  %v5140_v40 = vrot.slane %v985_v36, %v5100_v27  ;;  %v5145_v43 = vrot.slane %v978_v38, %v5100_v27  ;;  %v5153_v46 = vrot.slane %v2308_v44, %v2312_v41 }
  0x19   : > { %495 = vrot.lane.b32.xlu0 %v5071_v15, %s6846_s23  ;;  %vm997_vm1 = vcmask 7168  }
  0x1b   : > { %v554_v13 = vld [vmem:[%s6946_s2] sm:$0x1] }
  0x1c   : > { %501 = vrot.lane.b32.xlu1 %v5077_v19, %s6846_s23 }
  0x1d   : > { %497 = vrot.lane.b32.xlu0 %v5084_v22, %s6846_s23  ;;  %s4930_s23 = smov 20  }
  0x20   : > { %1842 = vrot.lane.b32.xlu1 %v1837_v26, %s4918_s24 }
  0x21   : > { %1840 = vrot.lane.b32.xlu0 %v1829_v29, %s4918_s24 }
  0x24   : > { %612 = vrot.lane.b32.xlu1 %v5107_v31, %s4919_s25 }
  0x25   : > { %610 = vrot.lane.b32.xlu0 %v5111_v32, %s4919_s25 }
  0x28   : > { %1935 = vrot.lane.b32.xlu1 %v1837_v26, %s4920_s26 }
  0x29   : > { %1933 = vrot.lane.b32.xlu0 %v1829_v29, %s4920_s26 }
  0x2c   : > { %705 = vrot.lane.b32.xlu1 %v5107_v31, %s4921_s27 }
  0x2d   : > { %703 = vrot.lane.b32.xlu0 %v5111_v32, %s4921_s27 }
  0x30   : > { %2024 = vrot.lane.b32.xlu1 %v1837_v26, %s6848_s28 }
  0x31   : > { %2022 = vrot.lane.b32.xlu0 %v1829_v29, %s6848_s28  ;;  %s6852_s28 = smov 110  }
  0x34   : > { %798 = vrot.lane.b32.xlu1 %v5107_v31, %s4923_s15 }
  0x35   : > { %796 = vrot.lane.b32.xlu0 %v5111_v32, %s4923_s15 }
  0x38   : > { %2117 = vrot.lane.b32.xlu1 %v1837_v26, %s6851_s16 }
  0x39   : > { %2115 = vrot.lane.b32.xlu0 %v1829_v29, %s6851_s16  ;;  %s6858_s16 = smov 62  }
  0x3c   : > { %891 = vrot.lane.b32.xlu1 %v5107_v31, %s6885_s20 }
  0x3d   : > { %889 = vrot.lane.b32.xlu0 %v5111_v32, %s6885_s20 }
  0x40   : > { %2210 = vrot.lane.b32.xlu1 %v1837_v26, %s6847_s21 }
  0x41   : > { %2208 = vrot.lane.b32.xlu0 %v1829_v29, %s6847_s21  ;;  %s6870_s21 = smov 126  }
  0x44   : > { %995 = vrot.lane.b32.xlu1 %v5140_v40, %s4927_s18 }
  0x45   : > { %993 = vrot.lane.b32.xlu0 %v5145_v43, %s4927_s18 }
  0x48   : > { %2325 = vrot.lane.b32.xlu1 %v5149_v45, %s6849_s19 }
  0x49   : > { %2323 = vrot.lane.b32.xlu0 %v5153_v46, %s6849_s19  ;;  %s6856_s19 = smov 94  }
  0x4c   : > { %1088 = vrot.lane.b32.xlu1 %v5140_v40, %s6850_s17 }
  0x4d   : > { %1086 = vrot.lane.b32.xlu0 %v5145_v43, %s6850_s17  ;;  %s6854_s17 = smov 78  }
  0x50   : > { %2412 = vrot.lane.b32.xlu1 %v5153_v46, %s4930_s23 }
  0x8a   : > { %v500_v47 = vpop.permute.xlu1 %499 }
  0x8b   : > { %516 = vst.msk [vmem:[#allocation2 + $0x18] sm:$0xff] %vm512_vm2, %v500_v47  ;;  %v496_v48 = vpop.permute.xlu0 %495 }
  0x8c   : > { %513 = vst.msk [vmem:[#allocation2] sm:$0xff] %vm512_vm2, %v496_v48  ;;  %vm6890_vm2 = vcmask 916480  }
  0x8e   : > { %v502_v49 = vpop.permute.xlu1 %501 }
  0x8f   : > { %v5166_v50 = vsel %vm469_vm0, %v500_v47, %v502_v49  ;;  %518 = vst.msk [vmem:[#allocation2 + $0x28] sm:$0xff] %vm469_vm0, %v502_v49  ;;  %v498_v51 = vpop.permute.xlu0 %497 }
  0x90   : > { %517 = vst [vmem:[#allocation2 + $0x20] sm:$0xff] %v5166_v50  ;;  %v5171_v52 = vsel %vm469_vm0, %v496_v48, %v498_v51  ;;  %515 = vst.msk [vmem:[#allocation2 + $0x10] sm:$0xff] %vm469_vm0, %v498_v51  ;;  %v553_v57 = vmul.bf16 %v5107_v31, %v5166_v50 }
  0x91   : > { %514 = vst [vmem:[#allocation2 + $0x8] sm:$0xff] %v5171_v52  ;;  %v551_v53 = vmul.bf16 %v5107_v31, %v5171_v52 }
  0x92   : > { %v5183_v56 = vld [vmem:[#allocation2 + $0x18] sm:$0xff]  ;;  %v1843_v61 = vpop.permute.xlu1 %1842 }
  0x93   : > { %v5177_v54 = vld [vmem:[#allocation2] sm:$0xff]  ;;  %559 = vmatprep.subr.bf16.mxu1 %v551_v53  ;;  %v552_v60 = vmul.bf16 %v5183_v56, %v5111_v32  ;;  %v1841_v62 = vpop.permute.xlu0 %1840 }
  0x94   : > { %1465 = vrot.lane.b32.xlu0 %v5177_v54, %s6870_s21  ;;  %v550_v55 = vmul.bf16 %v5177_v54, %v5111_v32  ;;  %v1849_v3 = vmul.bf16 %v1841_v62, %v5177_v54  ;;  %v1852_v10 = vmul.bf16 %v1841_v62, %v5183_v56  ;;  %v1845_v14 = vsel %vm6903_vm3, %v1841_v62, %v1843_v61 }
  0x95   : > { %v1850_v18 = vmul.bf16 %v1845_v14, %v5171_v52  ;;  %v1853_v26 = vmul.bf16 %v1845_v14, %v5166_v50  ;;  %vm6910_vm3 = vcmask 424960  }
  0x96   : > { %v5187_v58 = vld [vmem:[#allocation2 + $0x28] sm:$0xff]  ;;  %560 = vmatpush1.bf16.msra.mxu1 %v550_v55  ;;  %v613_v63 = vpop.permute.xlu1 %612 }
  0x97   : > { %v5189_v59 = vld [vmem:[#allocation2 + $0x10] sm:$0xff]  ;;  %561 = vmatprep.subr.bf16.mxu1 %v553_v57  ;;  %v5241_v0 = vpop.permute.xlu0 %610  ;;  %v1854_v8 = vmul.bf16 %v1843_v61, %v5187_v58  ;;  %v624_v38 = vmul.bf16 %v613_v63, %v5187_v58 }
  0x98   : > { %1475 = vrot.lane.b32.xlu0 %v5187_v58, %s6870_s21  ;;  %1469 = vrot.lane.b32.xlu1 %v5189_v59, %s6870_s21  ;;  %v1851_v7 = vmul.bf16 %v1843_v61, %v5189_v59  ;;  %v619_v12 = vmul.bf16 %v5241_v0, %v5177_v54  ;;  %v621_v17 = vmul.bf16 %v613_v63, %v5189_v59 }
  0x99   : > { %v615_v21 = vsel %vm614_vm5, %v5241_v0, %v613_v63  ;;  %v622_v41 = vmul.bf16 %v5241_v0, %v5183_v56 }
  0x9a   : > { %562 = vmatpush1.bf16.msra.mxu1 %v552_v60  ;;  %v5247_v1 = vpop.permute.xlu1 %1935  ;;  %v620_v28 = vmul.bf16 %v615_v21, %v5171_v52  ;;  %v623_v37 = vmul.bf16 %v615_v21, %v5166_v50 }
  0x9b   : > { %v5249_v2 = vpop.permute.xlu0 %1933  ;;  %v1944_v33 = vmul.bf16 %v5247_v1, %v5189_v59  ;;  %v1947_v47 = vmul.bf16 %v5247_v1, %v5187_v58 }
  0x9c   : > { %1537 = vrot.lane.b32.xlu0 %v5177_v54, %s6852_s28  ;;  %1471 = vrot.lane.b32.xlu1 %v5183_v56, %s6870_s21  ;;  %v1938_v29 = vsel %vm1937_vm6, %v5249_v2, %v5247_v1  ;;  %v1942_v34 = vmul.bf16 %v5249_v2, %v5177_v54  ;;  %v1945_v48 = vmul.bf16 %v5249_v2, %v5183_v56 }
  0x9d   : > { %4530 = vmatmul.mubr.msk.bf16.vlgmr.msra.gmra.mrb[0].mxu1 %vm555_vm4, %v554_v13  ;;  %v1943_v31 = vmul.bf16 %v1938_v29, %v5171_v52  ;;  %v1946_v42 = vmul.bf16 %v1938_v29, %v5166_v50 }
  0x9e   : > { %v5256_v4 = vpop.permute.xlu1 %705  ;;  %692 = vmatprep.mubr.bf16.mxu1 %v4917_v25 }
  0x9f   : > { %v5261_v6 = vpop.permute.xlu0 %703  ;;  %v714_v57 = vmul.bf16 %v5256_v4, %v5189_v59 }
  0xa0   : > { %1547 = vrot.lane.b32.xlu0 %v5187_v58, %s6852_s28  ;;  %1541 = vrot.lane.b32.xlu1 %v5189_v59, %s6852_s28  ;;  %v708_v53 = vsel %vm555_vm4, %v5261_v6, %v5256_v4  ;;  %v712_v62 = vmul.bf16 %v5261_v6, %v5177_v54 }
  0xa1   : > { %v713_v60 = vmul.bf16 %v708_v53, %v5171_v52  ;;  %v716_v14 = vmul.bf16 %v708_v53, %v5166_v50 }
  0xa2   : > { %v5267_v9 = vpop.permute.xlu1 %2024 }
  0xa3   : > { %v5277_v16 = vpop.permute.xlu0 %2022 }
  0xa4   : > { %1605 = vrot.lane.b32.xlu0 %v5177_v54, %s6856_s19  ;;  %1543 = vrot.lane.b32.xlu1 %v5183_v56, %s6852_s28  ;;  %v2027_v63 = vsel %vm2026_vm7, %v5277_v16, %v5267_v9 }
  0xa5   : > { %v2032_v2 = vmul.bf16 %v2027_v63, %v5171_v52 }
  0xa6   : > { %v5286_v23 = vpop.permute.xlu1 %798 }
  0xa7   : > { %v5290_v24 = vpop.permute.xlu0 %796 }
  0xa8   : > { %1615 = vrot.lane.b32.xlu0 %v5187_v58, %s6856_s19  ;;  %1609 = vrot.lane.b32.xlu1 %v5189_v59, %s6856_s19 }
  0xaa   : > { %v5299_v30 = vpop.permute.xlu1 %2117 }
  0xab   : > { %v5302_v32 = vpop.permute.xlu0 %2115 }
  0xac   : > { %1677 = vrot.lane.b32.xlu0 %v5177_v54, %s6854_s17  ;;  %1611 = vrot.lane.b32.xlu1 %v5183_v56, %s6856_s19  ;;  %v2120_v53 = vsel %vm2119_vm9, %v5302_v32, %v5299_v30 }
  0xae   : > { %v5311_v35 = vpop.permute.xlu1 %891 }
  0xaf   : > { %v5315_v36 = vpop.permute.xlu0 %889 }
  0xb0   : > { %1687 = vrot.lane.b32.xlu0 %v5187_v58, %s6854_s17  ;;  %1681 = vrot.lane.b32.xlu1 %v5189_v59, %s6854_s17 }
  0xb2   : > { %v5321_v39 = vpop.permute.xlu1 %2210 }
  0xb3   : > { %v5326_v44 = vpop.permute.xlu0 %2208 }
  0xb4   : > { %1749 = vrot.lane.b32.xlu0 %v5177_v54, %s6858_s16  ;;  %1683 = vrot.lane.b32.xlu1 %v5183_v56, %s6854_s17 }
  0xb6   : > { %v5334_v49 = vpop.permute.xlu1 %995 }
  0xb7   : > { %v5338_v51 = vpop.permute.xlu0 %993 }
  0xb8   : > { %1759 = vrot.lane.b32.xlu0 %v5187_v58, %s6858_s16  ;;  %1753 = vrot.lane.b32.xlu1 %v5189_v59, %s6858_s16 }
  0xba   : > { %v5347_v55 = vpop.permute.xlu1 %2325 }
  0xbb   : > { %v5352_v61 = vpop.permute.xlu0 %2323 }
  0xbc   : > { %1755 = vrot.lane.b32.xlu1 %v5183_v56, %s6858_s16  ;;  %1467 = vrot.lane.b32.xlu0 %v5171_v52, %s6870_s21 }
  0xbe   : > { %v5361_v0 = vpop.permute.xlu1 %1088 }
  0xbf   : > { %v5366_v1 = vpop.permute.xlu0 %1086 }
  0xc0   : > { %1473 = vrot.lane.b32.xlu1 %v5166_v50, %s6870_s21  ;;  %1539 = vrot.lane.b32.xlu0 %v5171_v52, %s6852_s28  ;;  %s6888_s21 = smov 52  }
  0xc4   : > { %1545 = vrot.lane.b32.xlu1 %v5166_v50, %s6852_s28  ;;  %1607 = vrot.lane.b32.xlu0 %v5171_v52, %s6856_s19  ;;  %s6860_s28 = smov 125  }
  0xc8   : > { %1613 = vrot.lane.b32.xlu1 %v5166_v50, %s6856_s19  ;;  %1679 = vrot.lane.b32.xlu0 %v5171_v52, %s6854_s17  ;;  %s6872_s19 = smov 33  }
  0xcc   : > { %1685 = vrot.lane.b32.xlu1 %v5166_v50, %s6854_s17  ;;  %1751 = vrot.lane.b32.xlu0 %v5171_v52, %s6858_s16  ;;  %s6862_s17 = smov 109  }
  0xd0   : > { %1757 = vrot.lane.b32.xlu1 %v5166_v50, %s6858_s16  ;;  %1866 = vrot.lane.b32.xlu0 %v1849_v3, %s6860_s28  ;;  %s6864_s16 = smov 112   ;;  %v5372_v3 = vpop.permute.xlu1 %2412 }
  0xd4   : > { %1870 = vrot.lane.b32.xlu1 %v1851_v7, %s6860_s28  ;;  %1876 = vrot.lane.b32.xlu0 %v1854_v8, %s6860_s28  ;;  %v2033_v8 = vmul.bf16 %v5267_v9, %v5189_v59 }
  0xd8   : > { %1872 = vrot.lane.b32.xlu1 %v1852_v10, %s6860_s28  ;;  %636 = vrot.lane.b32.xlu0 %v619_v12, %s6864_s16  ;;  %v2031_v10 = vmul.bf16 %v5277_v16, %v5177_v54 }
  0xdc   : > { %640 = vrot.lane.b32.xlu1 %v621_v17, %s6864_s16  ;;  %1868 = vrot.lane.b32.xlu0 %v1850_v18, %s6860_s28  ;;  %v717_v17 = vmul.bf16 %v5256_v4, %v5187_v58 }
  0xe0   : > { %1874 = vrot.lane.b32.xlu1 %v1853_v26, %s6860_s28  ;;  %638 = vrot.lane.b32.xlu0 %v620_v28, %s6864_s16  ;;  %s6866_s28 = smov 96   ;;  %v715_v26 = vmul.bf16 %v5261_v6, %v5183_v56  ;;  %v2035_v28 = vmul.bf16 %v2027_v63, %v5166_v50  ;;  %v2126_v63 = vmul.bf16 %v5299_v30, %v5189_v59 }
  0xe4   : > { %2414 = vrot.lane.b32.xlu0 %v5149_v45, %s4930_s23  ;;  %1957 = vrot.lane.b32.xlu1 %v1943_v31, %s6862_s17  ;;  %v2036_v31 = vmul.bf16 %v5267_v9, %v5187_v58 }
  0xe8   : > { %1959 = vrot.lane.b32.xlu0 %v1944_v33, %s6862_s17  ;;  %1955 = vrot.lane.b32.xlu1 %v1942_v34, %s6862_s17  ;;  %v2034_v33 = vmul.bf16 %v5277_v16, %v5183_v56 }
  0xec   : > { %644 = vrot.lane.b32.xlu0 %v623_v37, %s6864_s16  ;;  %646 = vrot.lane.b32.xlu1 %v624_v38, %s6864_s16  ;;  %v801_v37 = vsel %vm6899_vm8, %v5290_v24, %v5286_v23  ;;  %v807_v38 = vmul.bf16 %v5286_v23, %v5189_v59  ;;  %vm2509_vm8 = vcmask 293888  }
  0xf0   : > { %642 = vrot.lane.b32.xlu0 %v622_v41, %s6864_s16  ;;  %1963 = vrot.lane.b32.xlu1 %v1946_v42, %s6862_s17  ;;  %s6868_s16 = smov 93   ;;  %v806_v41 = vmul.bf16 %v801_v37, %v5171_v52  ;;  %v805_v42 = vmul.bf16 %v5290_v24, %v5177_v54 }
  0xf4   : > { %1965 = vrot.lane.b32.xlu0 %v1947_v47, %s6862_s17  ;;  %1961 = vrot.lane.b32.xlu1 %v1945_v48, %s6862_s17  ;;  %s6873_s17 = smov 36  }
  0xf8   : > { %1179 = vrot.lane.b32.xlu0 %v5145_v43, %s6872_s19  ;;  %1181 = vrot.lane.b32.xlu1 %v5140_v40, %s6872_s19  ;;  %s6877_s19 = smov 77  }
  0xfc   : > { %733 = vrot.lane.b32.xlu1 %v714_v57, %s6866_s28  ;;  %731 = vrot.lane.b32.xlu0 %v713_v60, %s6866_s28  ;;  %v2125_v57 = vmul.bf16 %v2120_v53, %v5171_v52 }
 0x100   : > { %2505 = vrot.lane.b32.xlu1 %v5153_v46, %s6873_s17  ;;  %729 = vrot.lane.b32.xlu0 %v712_v62, %s6866_s28 }
 0x104   : > { %2507 = vrot.lane.b32.xlu0 %v5149_v45, %s6873_s17  ;;  %2050 = vrot.lane.b32.xlu1 %v2032_v2, %s6868_s16  ;;  %v2124_v2 = vmul.bf16 %v5302_v32, %v5177_v54  ;;  %s6895_s17 = smov 124  }
 0x106   : > { %v5374_v7 = vpop.permute.xlu0 %1465 }
 0x108   : > { %2052 = vrot.lane.b32.xlu0 %v2033_v8, %s6868_s16  ;;  %2048 = vrot.lane.b32.xlu1 %v2031_v10, %s6868_s16 }
 0x10a   : > { %v5382_v12 = vpop.permute.xlu1 %1469  ;;  %v5384_v13 = vpop.permute.xlu0 %1475 }
 0x10c   : > { %737 = vrot.lane.b32.xlu0 %v716_v14, %s6866_s28  ;;  %739 = vrot.lane.b32.xlu1 %v717_v17, %s6866_s28  ;;  %v810_v14 = vmul.bf16 %v5286_v23, %v5187_v58  ;;  %v809_v17 = vmul.bf16 %v801_v37, %v5166_v50 }
 0x10e   : > { %v5391_v18 = vpop.permute.xlu1 %1471  ;;  %v5393_v21 = vpop.permute.xlu0 %1537 }
 0x110   : > { %735 = vrot.lane.b32.xlu0 %v715_v26, %s6866_s28  ;;  %2056 = vrot.lane.b32.xlu1 %v2035_v28, %s6868_s16  ;;  %s6874_s28 = smov 49  }
 0x112   : > { %v5400_v29 = vpop.permute.xlu1 %1541  ;;  %v5402_v4 = vpop.permute.xlu0 %1547 }
 0x114   : > { %2058 = vrot.lane.b32.xlu0 %v2036_v31, %s6868_s16  ;;  %2054 = vrot.lane.b32.xlu1 %v2034_v33, %s6868_s16  ;;  %s6875_s16 = smov 80   ;;  %v808_v31 = vmul.bf16 %v5290_v24, %v5183_v56  ;;  %v2128_v33 = vmul.bf16 %v2120_v53, %v5166_v50  ;;  %v4803_v24 = vld [vmem:[%s6946_s2] ss:$0 sps:$4 sm:$0x44]   ;;  %v2127_v53 = vmul.bf16 %v5302_v32, %v5183_v56 }
 0x116   : > { %v5410_v6 = vpop.permute.xlu1 %1543  ;;  %v5412_v34 = vpop.permute.xlu0 %1605 }
 0x118   : > { %1272 = vrot.lane.b32.xlu0 %v5145_v43, %s6874_s28  ;;  %1274 = vrot.lane.b32.xlu1 %v5140_v40, %s6874_s28  ;;  %s6887_s28 = smov 65  }
 0x11a   : > { %v5421_v9 = vpop.permute.xlu1 %1609  ;;  %v5423_v16 = vpop.permute.xlu0 %1615 }
 0x11c   : > { %826 = vrot.lane.b32.xlu1 %v807_v38, %s6875_s16  ;;  %824 = vrot.lane.b32.xlu0 %v806_v41, %s6875_s16 }
 0x11e   : > { %v5432_v47 = vpop.permute.xlu1 %1611  ;;  %v5434_v48 = vpop.permute.xlu0 %1677 }
 0x120   : > { %2598 = vrot.lane.b32.xlu1 %v5153_v46, %s6888_s21  ;;  %822 = vrot.lane.b32.xlu0 %v805_v42, %s6875_s16  ;;  %v2129_v42 = vmul.bf16 %v5299_v30, %v5187_v58  ;;  %v1458_v30 = vrot.slane %v4803_v24, 2  ;;  %v2213_v24 = vsel %vm6892_vm14, %v5326_v44, %v5321_v39  ;;  %vm6901_vm14 = vcmask 785408  }
 0x122   : > { %v5443_v60 = vpop.permute.xlu1 %1681  ;;  %v5445_v62 = vpop.permute.xlu0 %1687 }
 0x124   : > { %2600 = vrot.lane.b32.xlu0 %v5149_v45, %s6888_s21  ;;  %2143 = vrot.lane.b32.xlu1 %v2125_v57, %s6877_s19  ;;  %s6915_s21 = smov 92  }
 0x126   : > { %v5454_v8 = vpop.permute.xlu1 %1683  ;;  %v5456_v10 = vpop.permute.xlu0 %1749 }
 0x128   : > { %2145 = vrot.lane.b32.xlu0 %v2126_v63, %s6877_s19  ;;  %2141 = vrot.lane.b32.xlu1 %v2124_v2, %s6877_s19 }
 0x12a   : > { %v5463_v26 = vpop.permute.xlu1 %1753  ;;  %v5465_v28 = vpop.permute.xlu0 %1759 }
 0x12c   : > { %830 = vrot.lane.b32.xlu0 %v809_v17, %s6875_s16  ;;  %832 = vrot.lane.b32.xlu1 %v810_v14, %s6875_s16 }
 0x12e   : > { %v5472_v38 = vpop.permute.xlu1 %1755  ;;  %v1468_v41 = vpop.permute.xlu0 %1467 }
 0x12f   : > { %v1479_v23 = vsel %vm6881_vm10, %v1468_v41, %v5382_v12  ;;  %v1478_v37 = vsel %vm6881_vm10, %v5374_v7, %v1468_v41 }
 0x130   : > { %828 = vrot.lane.b32.xlu0 %v808_v31, %s6875_s16  ;;  %2149 = vrot.lane.b32.xlu1 %v2128_v33, %s6877_s19  ;;  %s6883_s16 = smov 61  }
 0x131   : > { %1489 = vmatprep.subr.bf16.mxu0 %v1479_v23 }
 0x132   : > { %1490 = vmatpush1.bf16.msra.mxu0 %v1478_v37  ;;  %v1474_v12 = vpop.permute.xlu1 %1473  ;;  %v1540_v57 = vpop.permute.xlu0 %1539 }
 0x133   : > { %v1481_v7 = vsel %vm6881_vm10, %v1474_v12, %v5384_v13  ;;  %v1480_v63 = vsel %vm6881_vm10, %v5391_v18, %v1474_v12  ;;  %v1551_v32 = vsel %vm6891_vm11, %v1540_v57, %v5400_v29  ;;  %v894_v13 = vsel %vm6921_vm12, %v5315_v36, %v5311_v35 }
 0x134   : > { %2151 = vrot.lane.b32.xlu0 %v2129_v42, %s6877_s19  ;;  %2147 = vrot.lane.b32.xlu1 %v2127_v53, %s6877_s19  ;;  %v1550_v18 = vsel %vm6891_vm11, %v5393_v21, %v1540_v57  ;;  %v900_v29 = vmul.bf16 %v5311_v35, %v5189_v59  ;;  %v899_v17 = vmul.bf16 %v894_v13, %v5171_v52  ;;  %s6879_s19 = smov 68   ;;  %vm2327_vm10 = vcmask 31744  }
 0x135   : > { %1491 = vmatprep.subr.bf16.mxu0 %v1481_v7  ;;  %v898_v21 = vmul.bf16 %v5315_v36, %v5177_v54  ;;  %v2218_v42 = vmul.bf16 %v2213_v24, %v5171_v52  ;;  %v2217_v57 = vmul.bf16 %v5326_v44, %v5177_v54 }
 0x136   : > { %1492 = vmatpush1.bf16.msra.mxu0 %v1480_v63  ;;  %v1546_v2 = vpop.permute.xlu1 %1545  ;;  %v1608_v14 = vpop.permute.xlu0 %1607 }
 0x137   : > { %1561 = vmatprep.subr.bf16.mxu0 %v1551_v32  ;;  %v1553_v33 = vsel %vm6891_vm11, %v1546_v2, %v5402_v4  ;;  %v1619_v23 = vsel %vm6880_vm13, %v1608_v14, %v5421_v9  ;;  %v2219_v9 = vmul.bf16 %v5321_v39, %v5189_v59 }
 0x138   : > { %1361 = vrot.lane.b32.xlu0 %v5145_v43, %s6887_s28  ;;  %1363 = vrot.lane.b32.xlu1 %v5140_v40, %s6887_s28  ;;  %v1552_v40 = vsel %vm6891_vm11, %v5410_v6, %v1546_v2  ;;  %v4804_v43 = vld [vmem:[%s6946_s2 + $0x4] ss:$0 sps:$4 sm:$0x88]   ;;  %vm2416_vm11 = vcmask 162816   ;;  %s6917_s28 = smov 111  }
 0x139   : > { %4548 = vmatmul.mubr.msk.bf16.vlgmr.msra.gmra.mrb[0].mxu0 %vm555_vm4, %v1458_v30  ;;  %v1536_v6 = vrot.slane %v4804_v43, 3  ;;  %v903_v30 = vmul.bf16 %v5311_v35, %v5187_v58  ;;  %v1004_v43 = vmul.bf16 %v5334_v49, %v5189_v59 }
 0x13a   : > { %1562 = vmatpush1.bf16.msra.mxu0 %v1550_v18  ;;  %v1614_v31 = vpop.permute.xlu1 %1613  ;;  %v1680_v41 = vpop.permute.xlu0 %1679  ;;  %1593 = vmatprep.mubr.bf16.mxu0 %v4917_v25  ;;  %v2221_v18 = vmul.bf16 %v2213_v24, %v5166_v50 }
 0x13b   : > { %1563 = vmatprep.subr.bf16.mxu0 %v1553_v33  ;;  %v1621_v7 = vsel %vm6880_vm13, %v1614_v31, %v5423_v16  ;;  %v902_v16 = vmul.bf16 %v894_v13, %v5166_v50  ;;  %v1691_v2 = vsel %vm6882_vm15, %v1680_v41, %v5443_v60  ;;  %v1604_v60 = vld [vmem:[%s6946_s2 + $0xc] sm:$0x1]  ;;  %v2222_v13 = vmul.bf16 %v5321_v39, %v5187_v58 }
 0x13c   : > { %915 = vrot.lane.b32.xlu1 %v900_v29, %s6885_s20  ;;  %913 = vrot.lane.b32.xlu0 %v899_v17, %s6885_s20  ;;  %v2220_v17 = vmul.bf16 %v5326_v44, %v5183_v56 }
 0x13e   : > { %1564 = vmatpush1.bf16.msra.mxu0 %v1552_v40  ;;  %v5520_v4 = vpop.permute.xlu1 %1685  ;;  %v5524_v37 = vpop.permute.xlu0 %1751 }
 0x13f   : > { %1629 = vmatprep.subr.bf16.mxu0 %v1619_v23  ;;  %v1692_v44 = vsel %vm6882_vm15, %v5454_v8, %v5520_v4  ;;  %v2328_v8 = vsel %vm2327_vm10, %v5352_v61, %v5347_v55 }
 0x140   : > { %2691 = vrot.lane.b32.xlu1 %v5153_v46, %s6879_s19  ;;  %911 = vrot.lane.b32.xlu0 %v898_v21, %s6885_s20  ;;  %v1618_v46 = vsel %vm6880_vm13, %v5412_v34, %v1608_v14  ;;  %v1620_v34 = vsel %vm6880_vm13, %v5432_v47, %v1614_v31  ;;  %v901_v47 = vmul.bf16 %v5315_v36, %v5183_v56  ;;  %vm6889_vm13 = vcmask 506880  }
 0x141   : > { %v1690_v36 = vsel %vm6882_vm15, %v5434_v48, %v1680_v41  ;;  %v1693_v31 = vsel %vm6882_vm15, %v5520_v4, %v5445_v62  ;;  %v998_v48 = vsel %vm997_vm1, %v5338_v51, %v5334_v49  ;;  %v4805_v62 = vld [vmem:[%s6946_s2 + $0x10] ss:$0 sps:$4 sm:$0x22]   ;;  %v1763_v23 = vsel %vm6889_vm13, %v5524_v37, %v5463_v26 }
 0x142   : > { %v5533_v53 = vpop.permute.xlu1 %1757  ;;  %v5535_v12 = vpop.permute.xlu0 %1866  ;;  %v1003_v21 = vmul.bf16 %v998_v48, %v5171_v52  ;;  %v1676_v4 = vrot.slane %v4805_v62, 1  ;;  %v2333_v26 = vmul.bf16 %v2328_v8, %v5171_v52  ;;  %vm6893_vm15 = vcmask 1022976  }
 0x144   : > { %2693 = vrot.lane.b32.xlu0 %v5149_v45, %s6879_s19  ;;  %2236 = vrot.lane.b32.xlu1 %v2218_v42, %s6883_s16  ;;  %s6897_s19 = smov 127   ;;  %v1002_v42 = vmul.bf16 %v5338_v51, %v5177_v54 }
 0x145   : > { %4550 = vmatmul.mubr.msk.bf16.vlgmr.msra.gmra.mrb[0].mxu0 %vm555_vm4, %v1536_v6 }
 0x146   : > { %1630 = vmatpush1.bf16.msra.mxu0 %v1618_v46  ;;  %v5549_v63 = vpop.permute.xlu1 %1870  ;;  %v5551_v45 = vpop.permute.xlu0 %1876  ;;  %1661 = vmatprep.mubr.bf16.mxu0 %v4917_v25 }
 0x147   : > { %1631 = vmatprep.subr.bf16.mxu0 %v1621_v7  ;;  %v2334_v7 = vmul.bf16 %v5347_v55, %v5189_v59 }
 0x148   : > { %2234 = vrot.lane.b32.xlu1 %v2217_v57, %s6883_s16  ;;  %2238 = vrot.lane.b32.xlu0 %v2219_v9, %s6883_s16  ;;  %v1762_v57 = vsel %vm6889_vm13, %v5456_v10, %v5524_v37  ;;  %v1764_v10 = vsel %vm6889_vm13, %v5472_v38, %v5533_v53  ;;  %v4808_v37 = vld [vmem:[%s6946_s2 + $0x4] ss:$0 sps:$4 sm:$0x22]  }
 0x14a   : > { %1632 = vmatpush1.bf16.msra.mxu0 %v1620_v34  ;;  %v5563_v32 = vpop.permute.xlu1 %1872  ;;  %v637_v14 = vpop.permute.xlu0 %636  ;;  %v2332_v34 = vmul.bf16 %v5352_v61, %v5177_v54 }
 0x14b   : > { %1701 = vmatprep.subr.bf16.mxu0 %v1691_v2 }
 0x14c   : > { %921 = vrot.lane.b32.xlu1 %v903_v30, %s6885_s20  ;;  %919 = vrot.lane.b32.xlu0 %v902_v16, %s6885_s20  ;;  %v1765_v30 = vsel %vm6889_vm13, %v5533_v53, %v5465_v28  ;;  %v4806_v28 = vld [vmem:[%s6946_s2 + $0x14] ss:$0 sps:$4 sm:$0x44]   ;;  %vm1090_vm13 = vcmask 138240  }
 0x14e   : > { %v641_v35 = vpop.permute.xlu1 %640  ;;  %v5570_v29 = vpop.permute.xlu0 %1868 }
 0x150   : > { %2242 = vrot.lane.b32.xlu1 %v2221_v18, %s6883_s16  ;;  %917 = vrot.lane.b32.xlu0 %v901_v47, %s6885_s20  ;;  %v1007_v47 = vmul.bf16 %v5334_v49, %v5187_v58  ;;  %v1006_v18 = vmul.bf16 %v998_v48, %v5166_v50  ;;  %v629_v49 = vrot.slane %v4808_v37, 1  ;;  %v2335_v48 = vmul.bf16 %v5352_v61, %v5183_v56  ;;  %v4807_v61 = vld [vmem:[%s6946_s2] ss:$0 sps:$4 sm:$0x88]   ;;  %s6904_s20 = smov 95  }
 0x151   : > { %4551 = vmatmul.mubr.msk.bf16.vlgmr.msra.gmra.mrb[0].mxu0 %vm555_vm4, %v1604_v60 }
 0x152   : > { %1702 = vmatpush1.bf16.msra.mxu0 %v1690_v36  ;;  %v5587_v33 = vpop.permute.xlu1 %1874  ;;  %v639_v40 = vpop.permute.xlu0 %638  ;;  %1733 = vmatprep.mubr.bf16.mxu0 %v4917_v25  ;;  %v1748_v36 = vrot.slane %v4806_v28, 2 }
 0x153   : > { %1703 = vmatprep.subr.bf16.mxu0 %v1693_v31  ;;  %v650_v39 = vsel %vm6890_vm2, %v639_v40, %v641_v35  ;;  %v649_v41 = vsel %vm6890_vm2, %v637_v14, %v639_v40  ;;  %v1880_v35 = vsel %vm6893_vm15, %v5570_v29, %v5549_v63  ;;  %v1879_v40 = vsel %vm6893_vm15, %v5535_v12, %v5570_v29 }
 0x154   : > { %2240 = vrot.lane.b32.xlu1 %v2220_v17, %s6883_s16  ;;  %2244 = vrot.lane.b32.xlu0 %v2222_v13, %s6883_s16  ;;  %v1005_v13 = vmul.bf16 %v5338_v51, %v5183_v56  ;;  %v2336_v17 = vmul.bf16 %v2328_v8, %v5166_v50  ;;  %v2337_v51 = vmul.bf16 %v5347_v55, %v5187_v58  ;;  %s6906_s16 = smov 108  }
 0x155   : > { %660 = vmatprep.subr.bf16.mxu1 %v650_v39  ;;  %v1882_v39 = vsel %vm6893_vm15, %v5587_v33, %v5551_v45  ;;  %v1091_v12 = vsel %vm1090_vm13, %v5366_v1, %v5361_v0  ;;  %v1881_v55 = vsel %vm6893_vm15, %v5563_v32, %v5587_v33  ;;  %v1097_v45 = vmul.bf16 %v5361_v0, %v5189_v59 }
 0x156   : > { %1704 = vmatpush1.bf16.msra.mxu0 %v1692_v44  ;;  %661 = vmatpush1.bf16.msra.mxu1 %v649_v41  ;;  %v5609_v24 = vpop.permute.xlu1 %1957  ;;  %v5611_v6 = vpop.permute.xlu0 %2414  ;;  %v1096_v29 = vmul.bf16 %v1091_v12, %v5171_v52  ;;  %v1095_v8 = vmul.bf16 %v5366_v1, %v5177_v54  ;;  %vm6900_vm15 = vcmask 760832  }
 0x157   : > { %1773 = vmatprep.subr.bf16.mxu0 %v1763_v23  ;;  %v2417_v32 = vsel %vm2416_vm11, %v5372_v3, %v5611_v6  ;;  %v1859_v23 = vrot.slane %v4807_v61, 3 }
 0x158   : > { %1023 = vrot.lane.b32.xlu1 %v1004_v43, %s6897_s19  ;;  %1021 = vrot.lane.b32.xlu0 %v1003_v21, %s6897_s19 }
 0x15a   : > { %v5621_v46 = vpop.permute.xlu1 %1955  ;;  %v5623_v9 = vpop.permute.xlu0 %1959 }
 0x15c   : > { %2347 = vrot.lane.b32.xlu1 %v2333_v26, %s6895_s17  ;;  %1019 = vrot.lane.b32.xlu0 %v1002_v42, %s6897_s19 }
 0x15d   : > { %4553 = vmatmul.mubr.msk.bf16.vlgmr.msra.gmra.mrb[0].mxu0 %vm555_vm4, %v1676_v4  ;;  %v2422_v4 = vmul.bf16 %v2417_v32, %v5171_v52 }
 0x15e   : > { %1774 = vmatpush1.bf16.msra.mxu0 %v1762_v57  ;;  %v647_v16 = vpop.permute.xlu1 %646  ;;  %v645_v2 = vpop.permute.xlu0 %644  ;;  %1805 = vmatprep.mubr.bf16.mxu0 %v4917_v25 }
 0x15f   : > { %1775 = vmatprep.subr.bf16.mxu0 %v1765_v30  ;;  %v652_v14 = vsel %vm6890_vm2, %v645_v2, %v647_v16 }
 0x160   : > { %2345 = vrot.lane.b32.xlu1 %v2332_v34, %s6895_s17  ;;  %2349 = vrot.lane.b32.xlu0 %v2334_v7, %s6895_s17  ;;  %v2421_v7 = vmul.bf16 %v5372_v3, %v5177_v54  ;;  %v2423_v34 = vmul.bf16 %v5611_v6, %v5189_v59 }
 0x161   : > { %662 = vmatprep.subr.bf16.mxu1 %v652_v14  ;;  %v1099_v14 = vmul.bf16 %v1091_v12, %v5166_v50 }
 0x162   : > { %1776 = vmatpush1.bf16.msra.mxu0 %v1764_v10  ;;  %v5657_v60 = vpop.permute.xlu1 %1963  ;;  %v643_v38 = vpop.permute.xlu0 %642 }
 0x163   : > { %1890 = vmatprep.subr.bf16.mxu0 %v1880_v35  ;;  %v651_v53 = vsel %vm6890_vm2, %v643_v38, %v645_v2  ;;  %vm6894_vm2 = vcmask 891904  }
 0x164   : > { %1029 = vrot.lane.b32.xlu1 %v1007_v47, %s6897_s19  ;;  %1027 = vrot.lane.b32.xlu0 %v1006_v18, %s6897_s19  ;;  %v1969_v62 = vsel %vm6894_vm2, %v5609_v24, %v5623_v9  ;;  %v1968_v57 = vsel %vm6894_vm2, %v5621_v46, %v5609_v24  ;;  %v1100_v46 = vmul.bf16 %v5361_v0, %v5187_v58  ;;  %v1948_v0 = vld [vmem:[%s6946_s2 + $0x8] sm:$0x1] }
 0x165   : > { %663 = vmatpush1.bf16.msra.mxu1 %v651_v53  ;;  %v1098_v47 = vmul.bf16 %v5366_v1, %v5183_v56  ;;  %v2425_v18 = vmul.bf16 %v2417_v32, %v5166_v50  ;;  %v4809_v1 = vld [vmem:[%s6946_s2 + $0x8] ss:$0 sps:$4 sm:$0x44]  }
 0x166   : > { %v1962_v31 = vpop.permute.xlu1 %1961  ;;  %v1966_v63 = vpop.permute.xlu0 %1965 }
 0x167   : > { %v1971_v30 = vsel %vm6894_vm2, %v5657_v60, %v1966_v63  ;;  %v1970_v24 = vsel %vm6894_vm2, %v1962_v31, %v5657_v60  ;;  %vm6902_vm2 = vcmask 269312  }
 0x168   : > { %2353 = vrot.lane.b32.xlu1 %v2336_v17, %s6895_s17  ;;  %1025 = vrot.lane.b32.xlu0 %v1005_v13, %s6897_s19  ;;  %s6913_s19 = smov 79  }
 0x169   : > { %4555 = vmatmul.mubr.msk.bf16.vlgmr.msra.gmra.mrb[0].mxu0 %vm555_vm4, %v1748_v36  ;;  %4532 = vmatmul.mubr.msk.bf16.vlgmr.msra.gmra.mrb[0].mxu1 %vm555_vm4, %v629_v49  ;;  %v2424_v36 = vmul.bf16 %v5372_v3, %v5183_v56  ;;  %v2426_v49 = vmul.bf16 %v5611_v6, %v5187_v58  ;;  %v722_v3 = vrot.slane %v4809_v1, 2  ;;  %v4810_v6 = vld [vmem:[%s6946_s2 + $0xc] ss:$0 sps:$4 sm:$0x22]  }
 0x16a   : > { %1891 = vmatpush1.bf16.msra.mxu0 %v1879_v40  ;;  %v5679_v41 = vpop.permute.xlu1 %1181  ;;  %v5681_v44 = vpop.permute.xlu0 %1179  ;;  %1922 = vmatprep.mubr.bf16.mxu0 %v4917_v25 }
 0x16b   : > { %1892 = vmatprep.subr.bf16.mxu0 %v1882_v39  ;;  %785 = vmatprep.mubr.bf16.mxu1 %v4917_v25  ;;  %v1184_v31 = vsel %vm6902_vm2, %v5681_v44, %v5679_v41  ;;  %v1190_v40 = vmul.bf16 %v5679_v41, %v5189_v59  ;;  %vm6908_vm2 = vcmask 629760  }
 0x16c   : > { %2351 = vrot.lane.b32.xlu1 %v2335_v48, %s6895_s17  ;;  %2355 = vrot.lane.b32.xlu0 %v2337_v51, %s6895_s17  ;;  %v1189_v51 = vmul.bf16 %v1184_v31, %v5171_v52  ;;  %s6930_s17 = smov 60  }
 0x16e   : > { %1893 = vmatpush1.bf16.msra.mxu0 %v1881_v55  ;;  %v734_v43 = vpop.permute.xlu1 %733  ;;  %v732_v21 = vpop.permute.xlu0 %731 }
 0x16f   : > { %1979 = vmatprep.subr.bf16.mxu0 %v1969_v62  ;;  %v743_v33 = vsel %vm6901_vm14, %v732_v21, %v734_v43 }
 0x170   : > { %1116 = vrot.lane.b32.xlu1 %v1097_v45, %s6917_s28  ;;  %1114 = vrot.lane.b32.xlu0 %v1096_v29, %s6917_s28  ;;  %v2041_v45 = vrot.slane %v4810_v6, 1  ;;  %v1188_v29 = vmul.bf16 %v5681_v44, %v5177_v54 }
 0x171   : > { %753 = vmatprep.subr.bf16.mxu1 %v743_v33 }
 0x172   : > { %v5711_v42 = vpop.permute.xlu1 %2505  ;;  %v730_v26 = vpop.permute.xlu0 %729 }
 0x173   : > { %v742_v9 = vsel %vm6901_vm14, %v730_v26, %v732_v21  ;;  %v2514_v32 = vmul.bf16 %v5711_v42, %v5177_v54  ;;  %v1192_v26 = vmul.bf16 %v1184_v31, %v5166_v50  ;;  %v5814_v50 = vld [vmem:[#allocation2 + $0x18] sm:$0xff]  ;;  %v4812_v31 = vld [vmem:[%s6946_s2 + $0x10] ss:$0 sps:$4 sm:$0x44]  }
 0x174   : > { %1112 = vrot.lane.b32.xlu0 %v1095_v8, %s6917_s28  ;;  %2440 = vrot.lane.b32.xlu1 %v2422_v4, %s6906_s16  ;;  %v1193_v4 = vmul.bf16 %v5679_v41, %v5187_v58 }
 0x175   : > { %4559 = vmatmul.mubr.msk.bf16.vlgmr.msra.gmra.mrb[0].mxu0 %vm555_vm4, %v1859_v23  ;;  %754 = vmatpush1.bf16.msra.mxu1 %v742_v9 }
 0x176   : > { %1980 = vmatpush1.bf16.msra.mxu0 %v1968_v57  ;;  %v2051_v16 = vpop.permute.xlu1 %2050  ;;  %v5726_v2 = vpop.permute.xlu0 %2507  ;;  %2011 = vmatprep.mubr.bf16.mxu0 %v4917_v25  ;;  %v1191_v57 = vmul.bf16 %v5681_v44, %v5183_v56 }
 0x177   : > { %1981 = vmatprep.subr.bf16.mxu0 %v1971_v30  ;;  %v2510_v12 = vsel %vm2509_vm8, %v5711_v42, %v5726_v2  ;;  %v2517_v30 = vmul.bf16 %v5814_v50, %v5711_v42  ;;  %v5829_v42 = vld [vmem:[#allocation2 + $0x10] sm:$0xff] }
 0x178   : > { %2442 = vrot.lane.b32.xlu0 %v2423_v34, %s6906_s16  ;;  %2438 = vrot.lane.b32.xlu1 %v2421_v7, %s6906_s16  ;;  %v2515_v62 = vmul.bf16 %v2510_v12, %v5171_v52  ;;  %v2516_v52 = vmul.bf16 %v5726_v2, %v5189_v59  ;;  %v5807_v7 = vld [vmem:[#allocation2 + $0x20] sm:$0xff] }
 0x179   : > { %v2518_v34 = vmul.bf16 %v5807_v7, %v2510_v12 }
 0x17a   : > { %1982 = vmatpush1.bf16.msra.mxu0 %v1970_v24  ;;  %v2049_v10 = vpop.permute.xlu1 %2048  ;;  %v2053_v28 = vpop.permute.xlu0 %2052 }
 0x17b   : > { %v2062_v37 = vsel %vm6900_vm15, %v2051_v16, %v2053_v28  ;;  %v2061_v53 = vsel %vm6900_vm15, %v2049_v10, %v2051_v16  ;;  %v5818_v16 = vld [vmem:[#allocation2 + $0x28] sm:$0xff] }
 0x17c   : > { %1120 = vrot.lane.b32.xlu0 %v1099_v14, %s6917_s28  ;;  %1122 = vrot.lane.b32.xlu1 %v1100_v46, %s6917_s28  ;;  %v2519_v56 = vmul.bf16 %v5818_v16, %v5726_v2  ;;  %v5833_v28 = vld [vmem:[#allocation2 + $0x8] sm:$0xff] }
 0x17d   : > { %2072 = vmatprep.subr.bf16.mxu0 %v2062_v37 }
 0x17e   : > { %v740_v35 = vpop.permute.xlu1 %739  ;;  %v738_v60 = vpop.permute.xlu0 %737 }
 0x17f   : > { %v745_v38 = vsel %vm6901_vm14, %v738_v60, %v740_v35 }
 0x180   : > { %1118 = vrot.lane.b32.xlu0 %v1098_v47, %s6917_s28  ;;  %2446 = vrot.lane.b32.xlu1 %v2425_v18, %s6906_s16  ;;  %s6951_s28 = smov 17  }
 0x181   : > { %755 = vmatprep.subr.bf16.mxu1 %v745_v38  ;;  %4560 = vmatmul.mubr.msk.bf16.vlgmr.msra.gmra.mrb[0].mxu0 %vm555_vm4, %v1948_v0  ;;  %v4811_v0 = vld [vmem:[%s6946_s2 + $0xc] ss:$0 sps:$4 sm:$0x88]   ;;  %v5845_v38 = vld [vmem:[#allocation2] sm:$0xff] }
 0x182   : > { %2073 = vmatpush1.bf16.msra.mxu0 %v2061_v53  ;;  %v2057_v13 = vpop.permute.xlu1 %2056  ;;  %v736_v17 = vpop.permute.xlu0 %735  ;;  %2104 = vmatprep.mubr.bf16.mxu0 %v4917_v25 }
 0x183   : > { %v744_v63 = vsel %vm6901_vm14, %v736_v17, %v738_v60  ;;  %vm6937_vm14 = vcmask 400384   ;;  %v815_v17 = vrot.slane %v4811_v0, 3 }
 0x184   : > { %2448 = vrot.lane.b32.xlu0 %v2426_v49, %s6906_s16  ;;  %2444 = vrot.lane.b32.xlu1 %v2424_v36, %s6906_s16  ;;  %s6911_s16 = smov 76  }
 0x185   : > { %756 = vmatpush1.bf16.msra.mxu1 %v744_v63 }
 0x186   : > { %v2055_v48 = vpop.permute.xlu1 %2054  ;;  %v2059_v39 = vpop.permute.xlu0 %2058 }
 0x187   : > { %v2063_v55 = vsel %vm6900_vm15, %v2055_v48, %v2057_v13  ;;  %v2064_v61 = vsel %vm6900_vm15, %v2057_v13, %v2059_v39  ;;  %vm6909_vm15 = vcmask 654336   ;;  %v2134_v39 = vrot.slane %v4812_v31, 2 }
 0x188   : > { %1209 = vrot.lane.b32.xlu1 %v1190_v40, %s6904_s20  ;;  %1207 = vrot.lane.b32.xlu0 %v1189_v51, %s6904_s20 }
 0x189   : > { %2074 = vmatprep.subr.bf16.mxu0 %v2064_v61  ;;  %4534 = vmatmul.mubr.msk.bf16.vlgmr.msra.gmra.mrb[0].mxu1 %vm555_vm4, %v722_v3 }
 0x18a   : > { %2075 = vmatpush1.bf16.msra.mxu0 %v2063_v55  ;;  %v5781_v43 = vpop.permute.xlu1 %1274  ;;  %v5783_v21 = vpop.permute.xlu0 %1272  ;;  %878 = vmatprep.mubr.bf16.mxu1 %v4917_v25 }
 0x18b   : > { %v1277_v46 = vsel %vm6937_vm14, %v5783_v21, %v5781_v43  ;;  %v1283_v2 = vmul.bf16 %v5829_v42, %v5781_v43  ;;  %v1281_v53 = vmul.bf16 %v5845_v38, %v5783_v21  ;;  %v1286_v12 = vmul.bf16 %v5818_v16, %v5781_v43 }
 0x18c   : > { %1205 = vrot.lane.b32.xlu0 %v1188_v29, %s6904_s20  ;;  %2533 = vrot.lane.b32.xlu1 %v2515_v62, %s6915_s21  ;;  %v1282_v37 = vmul.bf16 %v5833_v28, %v1277_v46  ;;  %v1285_v55 = vmul.bf16 %v5807_v7, %v1277_v46  ;;  %v1284_v29 = vmul.bf16 %v5814_v50, %v5783_v21  ;;  %vm3152_vm14 = vcmask 275460  }
 0x18d   : > { %4562 = vmatmul.mubr.msk.bf16.vlgmr.msra.gmra.mrb[0].mxu0 %vm555_vm4, %v2041_v45 }
 0x18e   : > { %v827_v33 = vpop.permute.xlu1 %826  ;;  %v825_v23 = vpop.permute.xlu0 %824  ;;  %2197 = vmatprep.mubr.bf16.mxu0 %v4917_v25 }
 0x18f   : > { %v836_v8 = vsel %vm6909_vm15, %v825_v23, %v827_v33 }
 0x190   : > { %2535 = vrot.lane.b32.xlu0 %v2516_v52, %s6915_s21  ;;  %2531 = vrot.lane.b32.xlu1 %v2514_v32, %s6915_s21 }
 0x191   : > { %846 = vmatprep.subr.bf16.mxu1 %v836_v8 }
 0x192   : > { %v5800_v54 = vpop.permute.xlu1 %2598  ;;  %v823_v9 = vpop.permute.xlu0 %822 }
 0x193   : > { %v835_v59 = vsel %vm6909_vm15, %v823_v9, %v825_v23  ;;  %v2607_v63 = vmul.bf16 %v5845_v38, %v5800_v54  ;;  %v2610_v33 = vmul.bf16 %v5814_v50, %v5800_v54 }
 0x194   : > { %1213 = vrot.lane.b32.xlu0 %v1192_v26, %s6904_s20  ;;  %1215 = vrot.lane.b32.xlu1 %v1193_v4, %s6904_s20 }
 0x195   : > { %847 = vmatpush1.bf16.msra.mxu1 %v835_v59 }
 0x196   : > { %v2144_v58 = vpop.permute.xlu1 %2143  ;;  %v5810_v41 = vpop.permute.xlu0 %2600 }
 0x197   : > { %v2603_v35 = vsel %vm6910_vm3, %v5800_v54, %v5810_v41  ;;  %v2609_v3 = vmul.bf16 %v5829_v42, %v5810_v41  ;;  %v2612_v21 = vmul.bf16 %v5818_v16, %v5810_v41  ;;  %vm6920_vm3 = vcmask 498688  }
 0x198   : > { %1211 = vrot.lane.b32.xlu0 %v1191_v57, %s6904_s20  ;;  %2539 = vrot.lane.b32.xlu1 %v2518_v34, %s6915_s21  ;;  %v2608_v1 = vmul.bf16 %v5833_v28, %v2603_v35  ;;  %v2611_v62 = vmul.bf16 %v5807_v7, %v2603_v35  ;;  %s6932_s20 = smov 63  }
 0x19a   : > { %v2142_v44 = vpop.permute.xlu1 %2141  ;;  %v2146_v24 = vpop.permute.xlu0 %2145 }
 0x19b   : > { %v2154_v14 = vsel %vm6908_vm2, %v2142_v44, %v2144_v58  ;;  %v2155_v10 = vsel %vm6908_vm2, %v2144_v58, %v2146_v24 }
 0x19c   : > { %2541 = vrot.lane.b32.xlu0 %v2519_v56, %s6915_s21  ;;  %2537 = vrot.lane.b32.xlu1 %v2517_v30, %s6915_s21  ;;  %s6953_s21 = smov 35  }
 0x19d   : > { %2165 = vmatprep.subr.bf16.mxu0 %v2155_v10 }
 0x19e   : > { %2166 = vmatpush1.bf16.msra.mxu0 %v2154_v14  ;;  %v833_v47 = vpop.permute.xlu1 %832  ;;  %v831_v18 = vpop.permute.xlu0 %830 }
 0x19f   : > { %v838_v60 = vsel %vm6909_vm15, %v831_v18, %v833_v47 }
 0x1a0   : > { %1298 = vrot.lane.b32.xlu1 %v1283_v2, %s6913_s19  ;;  %1296 = vrot.lane.b32.xlu0 %v1282_v37, %s6913_s19 }
 0x1a1   : > { %848 = vmatprep.subr.bf16.mxu1 %v838_v60 }
 0x1a2   : > { %v2150_v36 = vpop.permute.xlu1 %2149  ;;  %v829_v49 = vpop.permute.xlu0 %828 }
 0x1a3   : > { %v837_v13 = vsel %vm6909_vm15, %v829_v49, %v831_v18  ;;  %vm6919_vm15 = vcmask 556032  }
 0x1a4   : > { %1294 = vrot.lane.b32.xlu0 %v1281_v53, %s6913_s19  ;;  %2626 = vrot.lane.b32.xlu1 %v2608_v1, %s6911_s16 }
 0x1a5   : > { %849 = vmatpush1.bf16.msra.mxu1 %v837_v13 }
 0x1a6   : > { %v2148_v6 = vpop.permute.xlu1 %2147  ;;  %v2152_v40 = vpop.permute.xlu0 %2151 }
 0x1a7   : > { %v2156_v51 = vsel %vm6908_vm2, %v2148_v6, %v2150_v36  ;;  %v2157_v48 = vsel %vm6908_vm2, %v2150_v36, %v2152_v40  ;;  %vm6938_vm2 = vcmask 531456   ;;  %v904_v36 = vld [vmem:[%s6946_s2 + $0x14] sm:$0x1] }
 0x1a8   : > { %2628 = vrot.lane.b32.xlu0 %v2609_v3, %s6911_s16  ;;  %2624 = vrot.lane.b32.xlu1 %v2607_v63, %s6911_s16 }
 0x1a9   : > { %2167 = vmatprep.subr.bf16.mxu0 %v2157_v48  ;;  %4536 = vmatmul.mubr.msk.bf16.vlgmr.msra.gmra.mrb[0].mxu1 %vm555_vm4, %v815_v17 }
 0x1aa   : > { %2168 = vmatpush1.bf16.msra.mxu0 %v2156_v51  ;;  %v1364_v61 = vpop.permute.xlu1 %1363  ;;  %v5868_v45 = vpop.permute.xlu0 %1361  ;;  %966 = vmatprep.mubr.bf16.mxu1 %v4917_v25 }
 0x1ab   : > { %v1366_v4 = vsel %vm6938_vm2, %v5868_v45, %v1364_v61  ;;  %v1372_v9 = vmul.bf16 %v5829_v42, %v1364_v61  ;;  %v1370_v58 = vmul.bf16 %v5845_v38, %v5868_v45  ;;  %v1375_v37 = vmul.bf16 %v5818_v16, %v1364_v61 }
 0x1ac   : > { %1302 = vrot.lane.b32.xlu0 %v1285_v55, %s6913_s19  ;;  %1304 = vrot.lane.b32.xlu1 %v1286_v12, %s6913_s19  ;;  %v1371_v54 = vmul.bf16 %v5833_v28, %v1366_v4  ;;  %v1374_v47 = vmul.bf16 %v5807_v7, %v1366_v4  ;;  %v1373_v0 = vmul.bf16 %v5814_v50, %v5868_v45 }
 0x1ad   : > { %4564 = vmatmul.mubr.msk.bf16.vlgmr.msra.gmra.mrb[0].mxu0 %vm555_vm4, %v2134_v39 }
 0x1ae   : > { %v916_v43 = vpop.permute.xlu1 %915  ;;  %v914_v32 = vpop.permute.xlu0 %913  ;;  %2290 = vmatprep.mubr.bf16.mxu0 %v4917_v25 }
 0x1af   : > { %v924_v52 = vsel %vm6921_vm12, %v914_v32, %v916_v43 }
 0x1b0   : > { %1300 = vrot.lane.b32.xlu0 %v1284_v29, %s6913_s19  ;;  %2632 = vrot.lane.b32.xlu1 %v2611_v62, %s6911_s16  ;;  %v4814_v62 = vld [vmem:[%s6946_s2] ss:$0 sps:$4 sm:$0x22]   ;;  %s6954_s19 = smov 36  }
 0x1b1   : > { %934 = vmatprep.subr.bf16.mxu1 %v924_v52 }
 0x1b2   : > { %v5885_v23 = vpop.permute.xlu1 %2691  ;;  %v912_v8 = vpop.permute.xlu0 %911 }
 0x1b3   : > { %v923_v26 = vsel %vm6921_vm12, %v912_v8, %v914_v32  ;;  %v2700_v46 = vmul.bf16 %v5845_v38, %v5885_v23 }
 0x1b4   : > { %2634 = vrot.lane.b32.xlu0 %v2612_v21, %s6911_s16  ;;  %2630 = vrot.lane.b32.xlu1 %v2610_v33, %s6911_s16  ;;  %v1012_v33 = vrot.slane %v4814_v62, 1  ;;  %s6952_s16 = smov 4  }
 0x1b5   : > { %935 = vmatpush1.bf16.msra.mxu1 %v923_v26  ;;  %v2338_v26 = vld [vmem:[%s6946_s2 + $0x4] sm:$0x1] }
 0x1b6   : > { %v2237_v59 = vpop.permute.xlu1 %2236  ;;  %v2694_v57 = vpop.permute.xlu0 %2693 }
 0x1b7   : > { %v2696_v34 = vsel %vm6919_vm15, %v5885_v23, %v2694_v57  ;;  %v2702_v14 = vmul.bf16 %v5829_v42, %v2694_v57  ;;  %v4813_v42 = vld [vmem:[%s6946_s2 + $0x14] ss:$0 sps:$4 sm:$0x88]   ;;  %vm6922_vm15 = vcmask 1039360   ;;  %v2705_v31 = vmul.bf16 %v5818_v16, %v2694_v57 }
 0x1b8   : > { %1391 = vrot.lane.b32.xlu1 %v1372_v9, %s6932_s20  ;;  %1389 = vrot.lane.b32.xlu0 %v1371_v54, %s6932_s20  ;;  %v2701_v41 = vmul.bf16 %v5833_v28, %v2696_v34  ;;  %v2704_v38 = vmul.bf16 %v5807_v7, %v2696_v34  ;;  %v2227_v17 = vrot.slane %v4813_v42, 3  ;;  %v2703_v7 = vmul.bf16 %v5814_v50, %v5885_v23  ;;  %v519_v50 = vld [vmem:[%s6947_s3] sm:$0x3]  ;;  %s6982_s3 = smov 79  }
 0x1ba   : > { %v2235_v30 = vpop.permute.xlu1 %2234  ;;  %v2239_v56 = vpop.permute.xlu0 %2238 }
 0x1bb   : > { %v2247_v44 = vsel %vm6920_vm3, %v2235_v30, %v2237_v59  ;;  %v2248_v24 = vsel %vm6920_vm3, %v2237_v59, %v2239_v56 }
 0x1bc   : > { %1387 = vrot.lane.b32.xlu0 %v1370_v58, %s6932_s20  ;;  %2715 = vrot.lane.b32.xlu1 %v2701_v41, %s6930_s17 }
 0x1bd   : > { %2258 = vmatprep.subr.bf16.mxu0 %v2248_v24 }
 0x1be   : > { %2259 = vmatpush1.bf16.msra.mxu0 %v2247_v44  ;;  %v922_v10 = vpop.permute.xlu1 %921  ;;  %v920_v2 = vpop.permute.xlu0 %919 }
 0x1bf   : > { %v926_v28 = vsel %vm6921_vm12, %v920_v2, %v922_v10  ;;  %v4815_v10 = vld [vmem:[%s6946_s2 + $0x4] ss:$0 sps:$4 sm:$0x44]  }
 0x1c0   : > { %2717 = vrot.lane.b32.xlu0 %v2702_v14, %s6930_s17  ;;  %2713 = vrot.lane.b32.xlu1 %v2700_v46, %s6930_s17 }
 0x1c1   : > { %936 = vmatprep.subr.bf16.mxu1 %v926_v28 }
 0x1c2   : > { %v2243_v18 = vpop.permute.xlu1 %2242  ;;  %v918_v35 = vpop.permute.xlu0 %917 }
 0x1c3   : > { %v925_v60 = vsel %vm6921_vm12, %v918_v35, %v920_v2  ;;  %vm6925_vm12 = vcmask 908288  }
 0x1c4   : > { %1395 = vrot.lane.b32.xlu0 %v1374_v47, %s6932_s20  ;;  %1397 = vrot.lane.b32.xlu1 %v1375_v37, %s6932_s20  ;;  %v1105_v47 = vrot.slane %v4815_v10, 2 }
 0x1c5   : > { %937 = vmatpush1.bf16.msra.mxu1 %v925_v60 }
 0x1c6   : > { %v2241_v53 = vpop.permute.xlu1 %2240  ;;  %v2245_v1 = vpop.permute.xlu0 %2244 }
 0x1c7   : > { %v2249_v49 = vsel %vm6920_vm3, %v2241_v53, %v2243_v18  ;;  %v2250_v13 = vsel %vm6920_vm3, %v2243_v18, %v2245_v1  ;;  %vm6923_vm3 = vcmask 1014784   ;;  %v4816_v18 = vld [vmem:[%s6946_s2 + $0x8] ss:$0 sps:$4 sm:$0x22]  }
 0x1c8   : > { %1393 = vrot.lane.b32.xlu0 %v1373_v0, %s6932_s20  ;;  %2721 = vrot.lane.b32.xlu1 %v2704_v38, %s6930_s17  ;;  %v2431_v38 = vrot.slane %v4816_v18, 1  ;;  %s6955_s20 = smov 33  }
 0x1c9   : > { %2260 = vmatprep.subr.bf16.mxu0 %v2250_v13  ;;  %4537 = vmatmul.mubr.msk.bf16.vlgmr.msra.gmra.mrb[0].mxu1 %vm555_vm4, %v904_v36 }
 0x1ca   : > { %2261 = vmatpush1.bf16.msra.mxu0 %v2249_v49  ;;  %v1024_v63 = vpop.permute.xlu1 %1023  ;;  %v1022_v3 = vpop.permute.xlu0 %1021  ;;  %1075 = vmatprep.mubr.bf16.mxu1 %v4917_v25 }
 0x1cb   : > { %v1033_v6 = vsel %vm6922_vm15, %v1022_v3, %v1024_v63 }
 0x1cc   : > { %2723 = vrot.lane.b32.xlu0 %v2705_v31, %s6930_s17  ;;  %2719 = vrot.lane.b32.xlu1 %v2703_v7, %s6930_s17  ;;  %s6956_s17 = smov 65  }
 0x1cd   : > { %1043 = vmatprep.subr.bf16.mxu1 %v1033_v6  ;;  %4566 = vmatmul.mubr.msk.bf16.vlgmr.msra.gmra.mrb[0].mxu0 %vm555_vm4, %v2227_v17 }
 0x1ce   : > { %v2348_v40 = vpop.permute.xlu1 %2347  ;;  %v1020_v16 = vpop.permute.xlu0 %1019  ;;  %2401 = vmatprep.mubr.bf16.mxu0 %v4917_v25 }
 0x1cf   : > { %v1032_v51 = vsel %vm6922_vm15, %v1020_v16, %v1022_v3  ;;  %v4817_v16 = vld [vmem:[%s6946_s2 + $0x8] ss:$0 sps:$4 sm:$0x88]  }
 0x1d0   : > { %1044 = vmatpush1.bf16.msra.mxu1 %v1032_v51  ;;  %522 = vperm.xlu0 %4795, %v519_v50  }
 0x1d2   : > { %v2346_v48 = vpop.permute.xlu1 %2345  ;;  %v2350_v39 = vpop.permute.xlu0 %2349 }
 0x1d3   : > { %v2358_v12 = vsel %vm6923_vm3, %v2346_v48, %v2348_v40  ;;  %v2359_v55 = vsel %vm6923_vm3, %v2348_v40, %v2350_v39 }
 0x1d4   : > { %2369 = vmatprep.subr.bf16.mxu0 %v2359_v55  ;;  %v4818_v55 = vld [vmem:[%s6946_s2 + $0xc] ss:$0 sps:$4 sm:$0x44]  }
 0x1d5   : > { %2370 = vmatpush1.bf16.msra.mxu0 %v2358_v12  ;;  %v1198_v12 = vrot.slane %v4817_v16, 3  ;;  %v2857_v16 = vld [vmem:[%s6836_s6] sm:$0x3] }
 0x1d6   : > { %v1030_v61 = vpop.permute.xlu1 %1029  ;;  %v1028_v45 = vpop.permute.xlu0 %1027 }
 0x1d7   : > { %v1035_v29 = vsel %vm6922_vm15, %v1028_v45, %v1030_v61 }
 0x1d8   : > { %1045 = vmatprep.subr.bf16.mxu1 %v1035_v29 }
 0x1da   : > { %v2354_v43 = vpop.permute.xlu1 %2353  ;;  %v1026_v32 = vpop.permute.xlu0 %1025 }
 0x1db   : > { %v1034_v52 = vsel %vm6922_vm15, %v1026_v32, %v1028_v45  ;;  %vm6924_vm15 = vcmask 883712  }
 0x1dc   : > { %1046 = vmatpush1.bf16.msra.mxu1 %v1034_v52 }
 0x1de   : > { %v2352_v21 = vpop.permute.xlu1 %2351  ;;  %v2356_v23 = vpop.permute.xlu0 %2355 }
 0x1df   : > { %v2360_v8 = vsel %vm6923_vm3, %v2352_v21, %v2354_v43  ;;  %v2361_v4 = vsel %vm6923_vm3, %v2354_v43, %v2356_v23  ;;  %4539 = vmatmul.mubr.msk.bf16.vlgmr.msra.gmra.mrb[0].mxu1 %vm555_vm4, %v1012_v33  ;;  %vm6927_vm3 = vcmask 777216   ;;  %v2524_v43 = vrot.slane %v4818_v55, 2 }
 0x1e0   : > { %2371 = vmatprep.subr.bf16.mxu0 %v2361_v4  ;;  %1168 = vmatprep.mubr.bf16.mxu1 %v4917_v25 }
 0x1e1   : > { %2372 = vmatpush1.bf16.msra.mxu0 %v2360_v8 }
 0x1e2   : > { %v1117_v9 = vpop.permute.xlu1 %1116  ;;  %v1115_v54 = vpop.permute.xlu0 %1114 }
 0x1e3   : > { %v1126_v59 = vsel %vm6925_vm12, %v1115_v54, %v1117_v9 }
 0x1e4   : > { %1136 = vmatprep.subr.bf16.mxu1 %v1126_v59  ;;  %4569 = vmatmul.mubr.msk.bf16.vlgmr.msra.gmra.mrb[0].mxu0 %vm555_vm4, %v2338_v26 }
 0x1e5   : > { %2494 = vmatprep.mubr.bf16.mxu0 %v4917_v25 }
 0x1e6   : > { %v2441_v57 = vpop.permute.xlu1 %2440  ;;  %v1113_v34 = vpop.permute.xlu0 %1112 }
 0x1e7   : > { %v1125_v58 = vsel %vm6925_vm12, %v1113_v34, %v1115_v54 }
 0x1e8   : > { %1137 = vmatpush1.bf16.msra.mxu1 %v1125_v58 }
 0x1ea   : > { %v2439_v41 = vpop.permute.xlu1 %2438  ;;  %v2443_v30 = vpop.permute.xlu0 %2442 }
 0x1eb   : > { %v2451_v56 = vsel %vm6924_vm15, %v2439_v41, %v2441_v57  ;;  %v2452_v44 = vsel %vm6924_vm15, %v2441_v57, %v2443_v30 }
 0x1ec   : > { %2462 = vmatprep.subr.bf16.mxu0 %v2452_v44  ;;  %v4819_v44 = vld [vmem:[%s6946_s2 + $0x10] ss:$0 sps:$4 sm:$0x88]  }
 0x1ed   : > { %2463 = vmatpush1.bf16.msra.mxu0 %v2451_v56  ;;  %v1287_v56 = vld [vmem:[%s6946_s2 + $0x10] sm:$0x1] }
 0x1ee   : > { %v1123_v24 = vpop.permute.xlu1 %1122  ;;  %v1121_v46 = vpop.permute.xlu0 %1120 }
 0x1ef   : > { %v1128_v14 = vsel %vm6925_vm12, %v1121_v46, %v1123_v24 }
 0x1f0   : > { %1138 = vmatprep.subr.bf16.mxu1 %v1128_v14 }
 0x1f2   : > { %v2447_v2 = vpop.permute.xlu1 %2446  ;;  %v1119_v28 = vpop.permute.xlu0 %1118 }
 0x1f3   : > { %v1127_v37 = vsel %vm6925_vm12, %v1119_v28, %v1121_v46  ;;  %vm6935_vm12 = vcmask 646144  }
 0x1f4   : > { %1139 = vmatpush1.bf16.msra.mxu1 %v1127_v37 }
 0x1f6   : > { %v2445_v35 = vpop.permute.xlu1 %2444  ;;  %v2449_v60 = vpop.permute.xlu0 %2448 }
 0x1f7   : > { %v2453_v42 = vsel %vm6924_vm15, %v2445_v35, %v2447_v2  ;;  %v2454_v0 = vsel %vm6924_vm15, %v2447_v2, %v2449_v60  ;;  %4541 = vmatmul.mubr.msk.bf16.vlgmr.msra.gmra.mrb[0].mxu1 %vm555_vm4, %v1105_v47  ;;  %vm6926_vm15 = vcmask 752640   ;;  %v2617_v2 = vrot.slane %v4819_v44, 3 }
 0x1f8   : > { %2464 = vmatprep.subr.bf16.mxu0 %v2454_v0  ;;  %1261 = vmatprep.mubr.bf16.mxu1 %v4917_v25 }
 0x1f9   : > { %2465 = vmatpush1.bf16.msra.mxu0 %v2453_v42 }
 0x1fa   : > { %v1210_v53 = vpop.permute.xlu1 %1209  ;;  %v1208_v1 = vpop.permute.xlu0 %1207 }
 0x1fb   : > { %v1219_v36 = vsel %vm6927_vm3, %v1208_v1, %v1210_v53 }
 0x1fc   : > { %1229 = vmatprep.subr.bf16.mxu1 %v1219_v36  ;;  %4571 = vmatmul.mubr.msk.bf16.vlgmr.msra.gmra.mrb[0].mxu0 %vm555_vm4, %v2431_v38 }
 0x1fd   : > { %2587 = vmatprep.mubr.bf16.mxu0 %v4917_v25 }
 0x1fe   : > { %v2534_v49 = vpop.permute.xlu1 %2533  ;;  %v1206_v13 = vpop.permute.xlu0 %1205 }
 0x1ff   : > { %v1218_v17 = vsel %vm6927_vm3, %v1206_v13, %v1208_v1 }
 0x200   : > { %1230 = vmatpush1.bf16.msra.mxu1 %v1218_v17 }
 0x202   : > { %v2532_v7 = vpop.permute.xlu1 %2531  ;;  %v2536_v31 = vpop.permute.xlu0 %2535 }
 0x203   : > { %v2544_v63 = vsel %vm6926_vm15, %v2532_v7, %v2534_v49  ;;  %v2545_v3 = vsel %vm6926_vm15, %v2534_v49, %v2536_v31 }
 0x204   : > { %2555 = vmatprep.subr.bf16.mxu0 %v2545_v3 }
 0x205   : > { %2556 = vmatpush1.bf16.msra.mxu0 %v2544_v63 }
 0x206   : > { %v1216_v6 = vpop.permute.xlu1 %1215  ;;  %v1214_v50 = vpop.permute.xlu0 %1213 }
 0x207   : > { %v1221_v40 = vsel %vm6927_vm3, %v1214_v50, %v1216_v6 }
 0x208   : > { %1231 = vmatprep.subr.bf16.mxu1 %v1221_v40  ;;  %v2706_v40 = vld [vmem:[%s6946_s2 + $0x18] sm:$0x1] }
 0x20a   : > { %v2540_v51 = vpop.permute.xlu1 %2539  ;;  %v1212_v48 = vpop.permute.xlu0 %1211 }
 0x20b   : > { %v1220_v39 = vsel %vm6927_vm3, %v1212_v48, %v1214_v50  ;;  %vm6934_vm3 = vcmask 515072  }
 0x20c   : > { %1232 = vmatpush1.bf16.msra.mxu1 %v1220_v39 }
 0x20e   : > { %v2538_v61 = vpop.permute.xlu1 %2537  ;;  %v2542_v45 = vpop.permute.xlu0 %2541 }
 0x20f   : > { %v2546_v29 = vsel %vm6926_vm15, %v2538_v61, %v2540_v51  ;;  %v2547_v62 = vsel %vm6926_vm15, %v2540_v51, %v2542_v45  ;;  %4543 = vmatmul.mubr.msk.bf16.vlgmr.msra.gmra.mrb[0].mxu1 %vm555_vm4, %v1198_v12  ;;  %vm6928_vm15 = vcmask 621568  }
 0x210   : > { %2557 = vmatprep.subr.bf16.mxu0 %v2547_v62  ;;  %1350 = vmatprep.mubr.bf16.mxu1 %v4917_v25 }
 0x211   : > { %2558 = vmatpush1.bf16.msra.mxu0 %v2546_v29 }
 0x212   : > { %v1299_v32 = vpop.permute.xlu1 %1298  ;;  %v1297_v52 = vpop.permute.xlu0 %1296 }
 0x213   : > { %v1308_v33 = vsel %vm6935_vm12, %v1297_v52, %v1299_v32 }
 0x214   : > { %1318 = vmatprep.subr.bf16.mxu1 %v1308_v33  ;;  %4573 = vmatmul.mubr.msk.bf16.vlgmr.msra.gmra.mrb[0].mxu0 %vm555_vm4, %v2524_v43 }
 0x215   : > { %2680 = vmatprep.mubr.bf16.mxu0 %v4917_v25 }
 0x216   : > { %v2627_v21 = vpop.permute.xlu1 %2626  ;;  %v1295_v23 = vpop.permute.xlu0 %1294 }
 0x217   : > { %v1307_v8 = vsel %vm6935_vm12, %v1295_v23, %v1297_v52 }
 0x218   : > { %1319 = vmatpush1.bf16.msra.mxu1 %v1307_v8 }
 0x21a   : > { %v2625_v4 = vpop.permute.xlu1 %2624  ;;  %v2629_v26 = vpop.permute.xlu0 %2628 }
 0x21b   : > { %v2637_v9 = vsel %vm6928_vm15, %v2625_v4, %v2627_v21  ;;  %v2638_v54 = vsel %vm6928_vm15, %v2627_v21, %v2629_v26 }
 0x21c   : > { %2648 = vmatprep.subr.bf16.mxu0 %v2638_v54  ;;  %v4961_v54 = vmov 1983009808  }
 0x21d   : > { %2649 = vmatpush1.bf16.msra.mxu0 %v2637_v9  ;;  %v3155_v9 = vld [vmem:[%s6944_s1] sm:$0x11] }
 0x21e   : > { %v1305_v59 = vpop.permute.xlu1 %1304  ;;  %v1303_v57 = vpop.permute.xlu0 %1302 }
 0x21f   : > { %v1310_v34 = vsel %vm6935_vm12, %v1303_v57, %v1305_v59  ;;  %v3138_v59 = vunpack.c.l.s4 %v4961_v54 }
 0x220   : > { %1320 = vmatprep.subr.bf16.mxu1 %v1310_v34  ;;  %v3158_v34 = vunpack.c.h.bf16 %v3155_v9 }
 0x222   : > { %v2633_v58 = vpop.permute.xlu1 %2632  ;;  %v1301_v41 = vpop.permute.xlu0 %1300 }
 0x223   : > { %v1309_v30 = vsel %vm6935_vm12, %v1301_v41, %v1303_v57  ;;  %v3157_v57 = vunpack.c.l.bf16 %v3155_v9  ;;  %v3139_v41 = vunpack.c.0.s8 %v3138_v59  ;;  %vm477_vm12 = vcmask 550160  }
 0x224   : > { %1321 = vmatpush1.bf16.msra.mxu1 %v1309_v30 }
 0x225   : > { %v3162_v30 = vrot.slane %v3157_v57, %v5100_v27 }
 0x226   : > { %v2631_v24 = vpop.permute.xlu1 %2630  ;;  %v2635_v46 = vpop.permute.xlu0 %2634 }
 0x227   : > { %v2639_v14 = vsel %vm6928_vm15, %v2631_v24, %v2633_v58  ;;  %v2640_v10 = vsel %vm6928_vm15, %v2633_v58, %v2635_v46  ;;  %4544 = vmatmul.mubr.msk.bf16.vlgmr.msra.gmra.mrb[0].mxu1 %vm555_vm4, %v1287_v56  ;;  %vm6929_vm15 = vcmask 490496   ;;  %v3344_v58 = vld [vmem:[%s6944_s1] sm:$0x11]  ;;  %v3166_v56 = vrot.slane %v3158_v34, %v5100_v27  ;;  %v3715_v46 = vld [vmem:[%s6944_s1] sm:$0x22] }
 0x228   : > { %2650 = vmatprep.subr.bf16.mxu0 %v2640_v10  ;;  %1443 = vmatprep.mubr.bf16.mxu1 %v4917_v25  ;;  %v3346_v44 = vunpack.c.l.bf16 %v3344_v58  ;;  %v3347_v24 = vunpack.c.h.bf16 %v3344_v58  ;;  %v3717_v10 = vunpack.c.l.bf16 %v3715_v46 }
 0x229   : > { %2651 = vmatpush1.bf16.msra.mxu0 %v2639_v14  ;;  %v6061_v14 = vsub.s32 %v3139_v41, %v5061_v5 }
 0x22a   : > { %v1392_v28 = vpop.permute.xlu1 %1391  ;;  %v1390_v37 = vpop.permute.xlu0 %1389 }
 0x22b   : > { %v1401_v47 = vsel %vm6934_vm3, %v1390_v37, %v1392_v28  ;;  %v3169_v28 = vcombine.low %v3162_v30, %v3166_v56 }
 0x22c   : > { %1411 = vmatprep.subr.bf16.mxu1 %v1401_v47  ;;  %4575 = vmatmul.mubr.msk.bf16.vlgmr.msra.gmra.mrb[0].mxu0 %vm555_vm4, %v2617_v2  ;;  %v3721_v2 = vsub.s32 3, %v5061_v5  ;;  %v3355_v47 = vrot.slane %v3347_v24, %v5080_v20  ;;  %v4577_v24 = vld.sshfl [vmem:[%s6960_s4] sm:$0x33 pattern:$0x76325410]  ;;  %s6983_s4 = smov 125  }
 0x22d   : > { %2769 = vmatprep.mubr.bf16.mxu0 %v4917_v25  ;;  %v4820_v25 = vld [vmem:[%s6946_s2 + $0x14] ss:$0 sps:$4 sm:$0x22]   ;;  %v6067_v27 = vrot.slane %v3169_v28, %v6061_v14  ;;  %s6981_s2 = smov 77  }
 0x22e   : > { %v2716_v18 = vpop.permute.xlu1 %2715  ;;  %v1388_v35 = vpop.permute.xlu0 %1387  ;;  %v1380_v31 = vrot.slane %v4820_v25, 1 }
 0x22f   : > { %v1400_v60 = vsel %vm6934_vm3, %v1388_v35, %v1390_v37  ;;  %v3351_v37 = vrot.slane %v3346_v44, %v5080_v20  ;;  %v3935_v20 = vsub.s32 4, %v5061_v5 }
 0x230   : > { %1412 = vmatpush1.bf16.msra.mxu1 %v1400_v60  ;;  %v3722_v60 = vrot.slane %v3717_v10, %v3721_v2  ;;  %v2832_v10 = vcombine.high %v4577_v24, %v4577_v24 }
 0x231   : > { %v3358_v35 = vcombine.low %v3351_v37, %v3355_v47 }
 0x232   : > { %v2714_v42 = vpop.permute.xlu1 %2713  ;;  %v2718_v0 = vpop.permute.xlu0 %2717 }
 0x233   : > { %v2726_v38 = vsel %vm6929_vm15, %v2714_v42, %v2716_v18  ;;  %v2727_v53 = vsel %vm6929_vm15, %v2716_v18, %v2718_v0  ;;  %v3718_v18 = vunpack.c.h.bf16 %v3715_v46  ;;  %v3929_v0 = vld [vmem:[%s6944_s1] sm:$0x44]  ;;  %s6980_s1 = smov 63  }
 0x234   : > { %2737 = vmatprep.subr.bf16.mxu0 %v2727_v53  ;;  %v3365_v53 = vrot.slane %v3358_v35, %v6061_v14  ;;  %v4578_v46 = vld.sshfl [vmem:[%s6835_s5] sm:$0x33 pattern:$0x76325410] }
 0x235   : > { %2738 = vmatpush1.bf16.msra.mxu0 %v2726_v38  ;;  %v3726_v42 = vrot.slane %v3718_v18, %v3721_v2  ;;  %v3931_v38 = vunpack.c.l.bf16 %v3929_v0  ;;  %v2846_v47 = vcombine.high %v4578_v46, %v4578_v46 }
 0x236   : > { %v1398_v1 = vpop.permute.xlu1 %1397  ;;  %v1396_v36 = vpop.permute.xlu0 %1395 }
 0x237   : > { %v1403_v49 = vsel %vm6934_vm3, %v1396_v36, %v1398_v1  ;;  %v3729_v1 = vcombine.low %v3722_v60, %v3726_v42  ;;  %v3936_v25 = vrot.slane %v3931_v38, %v3935_v20 }
 0x238   : > { %1413 = vmatprep.subr.bf16.mxu1 %v1403_v49 }
 0x239   : > { %v3736_v49 = vrot.slane %v3729_v1, %v6061_v14 }
 0x23a   : > { %v2722_v13 = vpop.permute.xlu1 %2721  ;;  %v1394_v17 = vpop.permute.xlu0 %1393 }
 0x23b   : > { %v1402_v7 = vsel %vm6934_vm3, %v1394_v17, %v1396_v36  ;;  %v3932_v36 = vunpack.c.h.bf16 %v3929_v0 }
 0x23c   : > { %1414 = vmatpush1.bf16.msra.mxu1 %v1402_v7 }
 0x23d   : > { %4614 = vmatprep.subr.bf16.mxu1 %v5084_v22  ;;  %v4960_v22 = vmov 0.0  }
 0x23e   : > { %v2720_v63 = vpop.permute.xlu1 %2719  ;;  %v2724_v3 = vpop.permute.xlu0 %2723  ;;  %478 = vst.msk [vmem:[#allocation3 + $0x4] sm:$0x3] %vm477_vm12, %v4960_v22 }
 0x23f   : > { %v2728_v6 = vsel %vm6929_vm15, %v2720_v63, %v2722_v13  ;;  %4546 = vmatmul.mubr.msk.bf16.vlgmr.msra.gmra.mrb[0].mxu1 %vm555_vm4, %v1380_v31  ;;  %v2729_v50 = vsel %vm6929_vm15, %v2722_v13, %v2724_v3  ;;  %vm6936_vm15 = vcmask 1041408   ;;  %v3940_v13 = vrot.slane %v3932_v36, %v3935_v20 }
 0x240   : > { %2739 = vmatprep.subr.bf16.mxu0 %v2729_v50  ;;  %4616 = vmatpush1.bf16.msra.mxu1 %v5071_v15 }
 0x241   : > { %2740 = vmatpush1.bf16.msra.mxu0 %v2728_v6  ;;  %4618 = vmatprep.subr.bf16.mxu1 %v5077_v19  ;;  %v3943_v17 = vcombine.low %v3936_v25, %v3940_v13 }
 0x242   : > { %2925 = vmatprep.mubr.f32.mxu1 %v4960_v22 }
 0x243   : > { %v3950_v7 = vrot.slane %v3943_v17, %v6061_v14 }
 0x244   : > { %4576 = vmatmul.mubr.msk.bf16.vlgmr.msra.gmra.mrb[0].mxu0 %vm555_vm4, %v2706_v40  ;;  %4620 = vmatpush1.bf16.msra.mxu1 %v5066_v11 }
 0x247   : > { %4579 = vmatmul.mubr.msk.f32.vlgmr.msra.gmra.mrb[4].mxu1 %vm555_vm4, %v2857_v16 }
 0x248   : > { %3061 = vmatprep.mubr.f32.mxu1 %v4960_v22 }
 0x24f   : > { %v523_v51 = vpop.permute.xlu0 %522 }
 0x312   : > { %v1445_v15 = vpop.f32.mrb[0].mxu1 }
 0x313   : > { %v1447_v48 = vpop.f32.mrb[1].mxu1  ;;  %v4633_v12 = vadd.f32 %v1445_v15, %v523_v51 }
 0x314   : > { %v1449_v39 = vpop.f32.mrb[2].mxu1  ;;  %v4635_v55 = vadd.f32 %v1447_v48, %v523_v51 }
 0x315   : > { %v1450_v19 = vpop.f32.mrb[3].mxu1 }
 0x317   : > { %v2771_v61 = vpop.f32.mrb[0].mxu0 }
 0x318   : > { %v6039_v11 = vadd.f32 %v4633_v12, %v2771_v61  ;;  %v2773_v45 = vpop.f32.mrb[1].mxu0  ;;  %v2938_v61 = vld [vmem:[%s6837_s7] sm:$0x3] }
 0x319   : > { %v6041_v29 = vadd.f32 %v4635_v55, %v2773_v45  ;;  %v2775_v62 = vpop.f32.mrb[2].mxu0 }
 0x31a   : > { %v2781_v43 = vsel %vm6936_vm15, %v6039_v11, 0.0  ;;  %v2776_v32 = vpop.f32.mrb[3].mxu0  ;;  %v2927_v21 = vpop.f32.mrb[4].mxu1 }
 0x31b   : > { %v2782_v52 = vsel %vm6936_vm15, %v6041_v29, 0.0  ;;  %v2932_v23 = vsel %vm6936_vm15, %v2927_v21, 0.0  ;;  %v2929_v8 = vpop.f32.mrb[5].mxu1 }
 0x31c   : > { %v2783_v33 = vadd.f32 %v2782_v52, %v2781_v43  ;;  %v2933_v4 = vsel %vm6936_vm15, %v2929_v8, 0.0 }
 0x31d   : > { %v2934_v26 = vadd.f32 %v2933_v4, %v2932_v23 }
 0x31e   : > { %2784 = vadd.xlane.f32.xlu1 %v2783_v33 }
 0x322   : > { %2935 = vadd.xlane.f32.xlu1 %v2934_v26 }
 0x333   : > { %3193 = vrot.lane.b32.xlu1 %v6067_v27, %s4919_s25  ;;  %s6948_s25 = smov 51  }
 0x337   : > { %3366 = vrot.lane.b32.xlu1 %v3365_v53, %s4927_s18  ;;  %s6949_s18 = smov 52  }
 0x33b   : > { %3737 = vrot.lane.b32.xlu1 %v3736_v49, %s4918_s24  ;;  %s6950_s24 = smov 49  }
 0x33f   : > { %3231 = vrot.lane.b32.xlu1 %v6067_v27, %s4921_s27 }
 0x343   : > { %3989 = vrot.lane.b32.xlu1 %v3950_v7, %s4930_s23 }
 0x347   : > { %3269 = vrot.lane.b32.xlu1 %v6067_v27, %s4923_s15  ;;  %s6968_s15 = smov 111  }
 0x34b   : > { %3776 = vrot.lane.b32.xlu1 %v3736_v49, %s4920_s26 }
 0x34f   : > { %3852 = vrot.lane.b32.xlu1 %v3736_v49, %s6948_s25  ;;  %s6957_s25 = smov 67  }
 0x353   : > { %4066 = vrot.lane.b32.xlu1 %v3950_v7, %s6949_s18  ;;  %s6958_s18 = smov 64  }
 0x357   : > { %3482 = vrot.lane.b32.xlu1 %v3365_v53, %s6950_s24  ;;  %s6959_s24 = smov 68  }
 0x3ab   : > { %v2785_v5 = vpop.xlane.xlu1 %2784 }
 0x3ac   : > { %v2786_v31 = vrot.slane %v2785_v5, 4 }
 0x3ae   : > { %v2787_v63 = vadd.f32 %v2786_v31, %v2785_v5 }
 0x3af   : > { %v2936_v45 = vpop.xlane.xlu1 %2935 }
 0x3b0   : > { %v2788_v3 = vrot.slane %v2787_v63, 2  ;;  %v2937_v62 = vmul.f32 0.00390625, %v2936_v45 }
 0x3b2   : > { %v2789_v6 = vadd.f32 %v2788_v3, %v2787_v63  ;;  %v2939_v43 = vadd.f32 %v2938_v61, %v2937_v62 }
 0x3b3   : > { %v3194_v9 = vpop.permute.xlu1 %3193 }
 0x3b4   : > { %v2790_v50 = vrot.slane %v2789_v6, 1  ;;  %vm2940_vm3 = vcmp.gt.f32.partialorder %v2939_v43, 0.0  ;;  %v2941_v32 = vmul.f32 0.01, %v2939_v43 }
 0x3b6   : > { %v2791_v40 = vadd.f32 %v2790_v50, %v2789_v6 }
 0x3b7   : > { %v6108_v59 = vpop.permute.xlu1 %3366 }
 0x3b8   : > { %4729 = vpush %v2791_v40 }
 0x3bb   : > { %v6110_v57 = vpop.permute.xlu1 %3737 }
 0x3bf   : > { %v6112_v34 = vpop.permute.xlu1 %3231 }
 0x3c3   : > { %v6114_v58 = vpop.permute.xlu1 %3989 }
 0x3c7   : > { %v6116_v41 = vpop.permute.xlu1 %3269 }
 0x3cb   : > { %v6118_v30 = vpop.permute.xlu1 %3776 }
 0x3cf   : > { %v6120_v56 = vpop.permute.xlu1 %3852 }
 0x3d3   : > { %v6122_v44 = vpop.permute.xlu1 %4066 }
 0x3d7   : > { %v6130_v18 = vpop.permute.xlu1 %3482 }
 0x3e9   : > { %s4730_s23 = spop %4729 }
 0x3ea   : > { %s2795_s27 = smul.f32 0.001953125, %s4730_s23 }
 0x3ec   : > { %v2796_v16 = vstv %s2795_s27 }
 0x3ed   : > { %v2797_v15 = vsub.f32 %v6039_v11, %v2796_v16  ;;  %v2798_v51 = vsub.f32 %v6041_v29, %v2796_v16  ;;  %v2942_v11 = vsel %vm2940_vm3, %v2939_v43, %v2941_v32  ;;  %vm475_vm3 = vcmask 271360  }
 0x3ee   : > { %2949 = vperm.xlu1 %4796, %v2942_v11   ;;  %476 = vst.msk [vmem:[#allocation3] sm:$0x3] %vm475_vm3, %v4960_v22 }
 0x3ef   : > { %v2799_v48 = vmul.f32 %v2797_v15, %v2797_v15  ;;  %v2800_v39 = vmul.f32 %v2798_v51, %v2798_v51 }
 0x3f1   : > { %v2801_v19 = vsel %vm6936_vm15, %v2799_v48, 0.0  ;;  %v2802_v12 = vsel %vm6936_vm15, %v2800_v39, 0.0  ;;  %v3195_v39 = vrot.slane %v3194_v9, 6 }
 0x3f2   : > { %v2803_v55 = vadd.f32 %v2802_v12, %v2801_v19  ;;  %v3368_v12 = vrot.slane %v6108_v59, 6 }
 0x3f3   : > { %v3197_v19 = vsel %vm614_vm5, %v3195_v39, %v3194_v9  ;;  %vm6978_vm5 = vcmask 523264  }
 0x3f4   : > { %2804 = vadd.xlane.f32.xlu0 %v2803_v55 }
 0x40a   : > { %3404 = vrot.lane.b32.xlu0 %v3365_v53, %s6951_s28  ;;  %s6969_s28 = smov 110  }
 0x40e   : > { %3951 = vrot.lane.b32.xlu0 %v3950_v7, %s6952_s16  ;;  %s6970_s16 = smov 124  }
 0x412   : > { %3814 = vrot.lane.b32.xlu0 %v3736_v49, %s6953_s21  ;;  %s6971_s21 = smov 96  }
 0x416   : > { %4027 = vrot.lane.b32.xlu0 %v3950_v7, %s6954_s19 }
 0x41a   : > { %3443 = vrot.lane.b32.xlu0 %v3365_v53, %s6955_s20  ;;  %s6961_s20 = smov 34  }
 0x41e   : > { %3520 = vrot.lane.b32.xlu0 %v3365_v53, %s6956_s17  ;;  %s6962_s17 = smov 126  }
 0x422   : > { %3891 = vrot.lane.b32.xlu0 %v3736_v49, %s6957_s25  ;;  %s6963_s25 = smov 62  }
 0x426   : > { %3308 = vrot.lane.b32.xlu0 %v6067_v27, %s6958_s18 }
 0x42a   : > { %4105 = vrot.lane.b32.xlu0 %v3950_v7, %s6959_s24  ;;  %s6964_s24 = smov 94  }
 0x46d   : > { %v2950_v1 = vpop.permute.xlu1 %2949 }
 0x481   : > { %v2805_v29 = vpop.xlane.xlu0 %2804 }
 0x482   : > { %v2806_v52 = vrot.slane %v2805_v29, 4 }
 0x484   : > { %v2807_v33 = vadd.f32 %v2806_v52, %v2805_v29 }
 0x485   : > { %v3405_v7 = vpop.permute.xlu0 %3404 }
 0x486   : > { %v2808_v21 = vrot.slane %v2807_v33, 2 }
 0x488   : > { %v2809_v23 = vadd.f32 %v2808_v21, %v2807_v33  ;;  %v3370_v33 = vsel %vm997_vm1, %v3368_v12, %v6108_v59  ;;  %v3406_v21 = vrot.slane %v3405_v7, 6  ;;  %vm6996_vm1 = vcmask 769024  }
 0x489   : > { %v3952_v5 = vpop.permute.xlu0 %3951 }
 0x48a   : > { %v2810_v8 = vrot.slane %v2809_v23, 1  ;;  %v3408_v59 = vsel %vm1090_vm13, %v3406_v21, %v3405_v7  ;;  %v3991_v7 = vrot.slane %v6114_v58, 6  ;;  %vm6992_vm13 = vcmask 556032  }
 0x48c   : > { %v2811_v4 = vadd.f32 %v2810_v8, %v2809_v23 }
 0x48d   : > { %v6136_v31 = vpop.permute.xlu0 %3814 }
 0x48e   : > { %4731 = vpush %v2811_v4 }
 0x491   : > { %v6138_v63 = vpop.permute.xlu0 %4027 }
 0x495   : > { %v6140_v3 = vpop.permute.xlu0 %3443 }
 0x499   : > { %v6142_v6 = vpop.permute.xlu0 %3520 }
 0x49d   : > { %v6144_v50 = vpop.permute.xlu0 %3891 }
 0x4a1   : > { %v6146_v40 = vpop.permute.xlu0 %3308 }
 0x4a5   : > { %v6148_v16 = vpop.permute.xlu0 %4105 }
 0x4bf   : > { %s4732_s23 = spop %4731 }
 0x4c0   : > { %s2815_s27 = smul.f32 0.001953125, %s4732_s23  ;;  %s6965_s23 = smov 112  }
 0x4c2   : > { %s2816_s26 = sadd.f32 1e-05, %s2815_s27  ;;  %s6966_s27 = smov 78  }
 0x4c4   : > { %v2817_v26 = vstv %s2816_s26  ;;  %s6967_s26 = smov 127  }
 0x4c5   : > { %4826 = vrsqrt.f32 %v2817_v26 }
 0x4cf   : > { %v4827_v54 = vpop.eup %4826 }
 0x4d0   : > { %4733 = vpush %v4827_v54 }
 0x501   : > { %s4734_s19 = spop %4733 }
 0x502   : > { %v2820_v2 = vstv %s4734_s19  ;;  %s6972_s19 = smov 93  }
 0x503   : > { %v2821_v28 = vmul.f32 %v2820_v2, %v2797_v15  ;;  %v2822_v37 = vmul.f32 %v2820_v2, %v2798_v51 }
 0x505   : > { %v2835_v35 = vmul.f32 %v4577_v24, %v2821_v28  ;;  %v2836_v60 = vmul.f32 %v2832_v10, %v2822_v37  ;;  %v3233_v28 = vrot.slane %v6112_v34, 6  ;;  %v3953_v37 = vrot.slane %v3952_v5, 6 }
 0x507   : > { %v2849_v42 = vadd.f32 %v4578_v46, %v2835_v35  ;;  %v2850_v0 = vadd.f32 %v2846_v47, %v2836_v60 }
 0x509   : > { %vm2851_vm12 = vcmp.gt.f32.partialorder %v2849_v42, 0.0  ;;  %vm2852_vm3 = vcmp.gt.f32.partialorder %v2850_v0, 0.0  ;;  %v2853_v38 = vmul.f32 0.01, %v2849_v42  ;;  %v2854_v53 = vmul.f32 0.01, %v2850_v0 }
 0x50b   : > { %v2855_v36 = vsel %vm2851_vm12, %v2849_v42, %v2853_v38  ;;  %v2856_v20 = vsel %vm2852_vm3, %v2850_v0, %v2854_v53  ;;  %vm3149_vm12 = vcmask 1041680   ;;  %vm3150_vm3 = vcmask 1043458  }
 0x50c   : > { %v3136_v49 = vcombine.low %v2855_v36, %v2856_v20  ;;  %v2952_v25 = vmul.f32 %v2950_v1, %v2855_v36  ;;  %v2953_v13 = vmul.f32 %v2950_v1, %v2856_v20  ;;  %v3234_v0 = vsel %vm555_vm4, %v3233_v28, %v6112_v34 }
 0x50d   : > { %v3955_v53 = vsel %vm2327_vm10, %v3953_v37, %v3952_v5  ;;  %v3816_v34 = vrot.slane %v6136_v31, 6  ;;  %v3310_v28 = vrot.slane %v6146_v40, 6  ;;  %vm6975_vm4 = vcmask 400384  }
 0x50e   : > { %v3143_v17 = vrot.slane %v3136_v49, %v6061_v14  ;;  %4580 = vmatprep.subr.msk.mxu1 %vm6936_vm15, %v2953_v13  ;;  %vm6989_vm10 = vcmask 424960  }
 0x50f   : > { %4581 = vmatpush1.msk.msra.mxu1 %vm6936_vm15, %v2952_v25  ;;  %vm3151_vm15 = vmor %vm3150_vm3, %vm3149_vm12  ;;  %v4029_v25 = vrot.slane %v6138_v63, 6  ;;  %v3818_v39 = vsel %vm2026_vm7, %v3816_v34, %v6136_v31  ;;  %vm6984_vm7 = vcmask 392192   ;;  %vm6998_vm12 = vcmask 506880  }
 0x510   : > { %3144 = vrot.lane.b32.xlu0 %v3143_v17, %s6961_s20  ;;  %vm3153_vm2 = vmor %vm3152_vm14, %vm3151_vm15  ;;  %s6974_s20 = smov 92   ;;  %vm6993_vm14 = vcmask 900096   ;;  %vm6994_vm15 = vcmask 1031168  }
 0x511   : > { %vm6999_vm3 = vmmov %vm6994_vm15 }
 0x582   : > { %v3145_v15 = vpop.permute.xlu0 %3144 }
 0x583   : > { %v3146_v51 = vrot.slane %v3145_v15, 6 }
 0x585   : > { %v3147_v48 = vsel %vm469_vm0, %v3146_v51, %v3145_v15  ;;  %v3778_v51 = vrot.slane %v6118_v30, 6  ;;  %vm6973_vm0 = vcmask 531456  }
 0x586   : > { %3154 = vst.msk [vmem:[#allocation3] sm:$0x3f] %vm3153_vm2, %v3147_v48  ;;  %vm6997_vm2 = vmmov %vm6996_vm1 }
 0x587   : > { %v3780_v31 = vsel %vm1937_vm6, %v3778_v51, %v6118_v30  ;;  %vm6979_vm6 = vcmask 23552  }
 0x58d   : > { %v3156_v55 = vld [vmem:[#allocation3] sm:$0xf] }
 0x58e   : > { %v6153_v61 = vld [vmem:[#allocation3] sm:$0x3f]  ;;  %v6158_v62 = vmul.f32 %v6067_v27, %v3156_v55 }
 0x58f   : > { %v6155_v45 = vld [vmem:[#allocation3] sm:$0x3f]  ;;  %v3566_v43 = vrot.slane %v6153_v61, %v6061_v14  ;;  %v3559_v51 = vcombine.high %v6153_v61, %v6153_v61 }
 0x590   : > { %v3192_v32 = vld [vmem:[#allocation3] sm:$0x3f]  ;;  %v6164_v11 = vrot.slane %v6155_v45, %v6061_v14  ;;  %4594 = vst.sshfl [vmem:[#allocation4] sm:$0x3 pattern:$0x76325410] %v6158_v62 }
 0x591   : > { %v3621_v29 = vld [vmem:[#allocation3] sm:$0x3f]  ;;  %v6166_v52 = vmul.f32 %v3197_v19, %v3192_v32  ;;  %3578 = vrot.lane.b32.xlu0 %v3566_v43, %s6962_s17  ;;  %v3574_v20 = vcombine.low %v3566_v43, %v3566_v43  ;;  %v4031_v19 = vsel %vm2509_vm8, %v4029_v25, %v6138_v63  ;;  %v3993_v43 = vsel %vm2416_vm11, %v3991_v7, %v6114_v58 }
 0x592   : > { %v3345_v27 = vld [vmem:[#allocation3] sm:$0x3f]  ;;  %3704 = vrot.lane.b32.xlu1 %v6164_v11, %s6963_s25  ;;  %v3630_v23 = vrot.slane %v3621_v29, %v6061_v14  ;;  %v3623_v17 = vcombine.high %v3621_v29, %v3621_v29  ;;  %v3522_v63 = vrot.slane %v6142_v6, 6  ;;  %vm6985_vm8 = vcmask 269312  }
 0x593   : > { %v3215_v8 = vrot.slane %v6166_v52, %v6061_v14  ;;  %v6177_v4 = vld [vmem:[#allocation3] sm:$0x3f]  ;;  %v6179_v26 = vmul.f32 %v3370_v33, %v3345_v27  ;;  %v3854_v27 = vrot.slane %v6120_v56, 6  ;;  %vm2978_vm11 = vcmask 15360  }
 0x594   : > { %v3403_v9 = vld [vmem:[#allocation3] sm:$0x3f]  ;;  %v3668_v24 = vrot.slane %v6177_v4, %v6061_v14  ;;  %v3637_v12 = vrot.slane %v3623_v17, %v6061_v14  ;;  %v3638_v32 = vcombine.high %v3630_v23, %v3630_v23 }
 0x595   : > { %3639 = vrot.lane.b32.xlu0 %v3630_v23, %s6964_s24  ;;  %v3589_v54 = vld [vmem:[#allocation3] sm:$0x3f]  ;;  %v6186_v46 = vmul.f32 %v3408_v59, %v3403_v9  ;;  %v3388_v10 = vrot.slane %v6179_v26, %v6061_v14  ;;  %v3484_v23 = vrot.slane %v6130_v18, 6  ;;  %v3856_v59 = vsel %vm2119_vm9, %v3854_v27, %v6120_v56 }
 0x596   : > { %3221 = vrot.lane.b32.xlu1 %v3215_v8, %s6965_s23  ;;  %v3605_v2 = vrot.slane %v3589_v54, %v6061_v14  ;;  %v3591_v35 = vcombine.low %v3589_v54, %v3589_v54  ;;  %v3930_v42 = vld [vmem:[#allocation3] sm:$0x3f]  ;;  %vm6988_vm9 = vcmask 547840  }
 0x597   : > { %v6196_v47 = vrot.slane %v6186_v46, %v6061_v14  ;;  %v3230_v38 = vld [vmem:[#allocation3] sm:$0x3f]  ;;  %v6207_v36 = vmul.f32 %v3955_v53, %v3930_v42  ;;  %v3486_v42 = vsel %vm6975_vm4, %v3484_v23, %v6130_v18  ;;  %v3312_v53 = vsel %vm6978_vm5, %v3310_v28, %v6146_v40 }
 0x598   : > { %v3607_v60 = vcombine.low %v3605_v2, %v3605_v2  ;;  %v6205_v1 = vrot.slane %v3591_v35, %v6061_v14  ;;  %v6209_v49 = vmul.f32 %v3234_v0, %v3230_v38  ;;  %v3813_v15 = vld [vmem:[#allocation3] sm:$0x3f]  ;;  %v3524_v2 = vsel %vm6973_vm0, %v3522_v63, %v6142_v6 }
 0x599   : > { %3674 = vrot.lane.b32.xlu0 %v3668_v24, %s6966_s27  ;;  %v6218_v13 = vrot.slane %v6207_v36, %v6061_v14  ;;  %v4026_v48 = vld [vmem:[#allocation3] sm:$0x3f]  ;;  %v6235_v55 = vmul.f32 %v3818_v39, %v3813_v15  ;;  %v3654_v15 = vcombine.low %v6177_v4, %v6177_v4  ;;  %v3700_v4 = vcombine.low %v6164_v11, %v6164_v11 }
 0x59a   : > { %3394 = vrot.lane.b32.xlu1 %v3388_v10, %s6967_s26  ;;  %v6223_v5 = vrot.slane %v6209_v49, %v6061_v14  ;;  %v6239_v29 = vmul.f32 %v4031_v19, %v4026_v48  ;;  %v3988_v33 = vld [vmem:[#allocation3] sm:$0x3f]  ;;  %v3186_v10 = vrot.slane %v6158_v62, %v6061_v14  ;;  %v3445_v23 = vrot.slane %v6140_v3, 6 }
 0x59b   : > { %v3775_v21 = vld [vmem:[#allocation3] sm:$0x3f]  ;;  %v3836_v8 = vrot.slane %v6235_v55, %v6061_v14  ;;  %v6249_v58 = vmul.f32 %v3993_v43, %v3988_v33  ;;  %v6318_v39 = vrot.slane %v3654_v15, %v6061_v14  ;;  %v3271_v33 = vrot.slane %v6116_v41, 6 }
 0x59c   : > { %v6254_v9 = vrot.slane %v6239_v29, %v6061_v14  ;;  %v6256_v30 = vmul.f32 %v3780_v31, %v3775_v21  ;;  %v3519_v54 = vld [vmem:[#allocation3] sm:$0x3f]  ;;  %v3187_v56 = vcombine.high %v3186_v10, %v3186_v10  ;;  %v3974_v11 = vcombine.high %v6218_v13, %v6218_v13 }
 0x59d   : > { %3431 = vrot.lane.b32.xlu0 %v6196_v47, %s6968_s15  ;;  %v3851_v24 = vld [vmem:[#allocation3] sm:$0x3f]  ;;  %v4011_v37 = vrot.slane %v6249_v58, %v6061_v14  ;;  %v6270_v35 = vmul.f32 %v3524_v2, %v3519_v54  ;;  %v3201_v31 = vcombine.low %v6166_v52, %v6166_v52  ;;  %v3959_v21 = vcombine.high %v6207_v36, %v6207_v36 }
 0x59e   : > { %3612 = vrot.lane.b32.xlu1 %v3607_v60, %s6969_s28  ;;  %v3739_v60 = vrot.slane %v6110_v57, 6  ;;  %v6277_v62 = vrot.slane %v6256_v30, %v6061_v14  ;;  %v6279_v6 = vmul.f32 %v3856_v59, %v3851_v24  ;;  %v3481_v0 = vld [vmem:[#allocation3] sm:$0x3f]  ;;  %3191 = vst [vmem:[#allocation4 + $0x8] sm:$0x3] %v3187_v56  ;;  %v3273_v63 = vsel %vm6984_vm7, %v3271_v33, %v6116_v41  ;;  %vm7004_vm7 = vmmov %vm6993_vm14 }
 0x59f   : > { %v3307_v38 = vld [vmem:[#allocation3] sm:$0x3f]  ;;  %v3542_v18 = vrot.slane %v6270_v35, %v6061_v14  ;;  %v6346_v54 = vrot.slane %v3201_v31, %v6061_v14  ;;  %v3374_v52 = vcombine.low %v6179_v26, %v6179_v26  ;;  %v3447_v36 = vsel %vm6985_vm8, %v3445_v23, %v6140_v3 }
 0x5a0   : > { %v3741_v34 = vsel %vm6979_vm6, %v3739_v60, %v6110_v57  ;;  %v6294_v25 = vrot.slane %v6279_v6, %v6061_v14  ;;  %v6296_v17 = vmul.f32 %v3312_v53, %v3307_v38  ;;  %v3716_v7 = vld [vmem:[#allocation3] sm:$0x3f]  ;;  %v3427_v24 = vcombine.low %v6196_v47, %v6196_v47 }
 0x5a1   : > { %3610 = vrot.lane.b32.xlu0 %v6205_v1, %s6969_s28  ;;  %v3743_v57 = vmul.f32 %v3741_v34, %v3716_v7  ;;  %v3442_v41 = vld [vmem:[#allocation3] sm:$0x3f]  ;;  %v6359_v10 = vrot.slane %v3374_v52, %v6061_v14  ;;  %v3606_v26 = vcombine.low %v6205_v1, %v6205_v1  ;;  %v3799_v38 = vcombine.high %v6277_v62, %v6277_v62 }
 0x5a2   : > { %3576 = vrot.lane.b32.xlu1 %v3574_v20, %s6962_s17  ;;  %v6288_v20 = vmul.f32 %v3486_v42, %v3481_v0  ;;  %v6311_v48 = vrot.slane %v6296_v17, %v6061_v14  ;;  %v3449_v28 = vmul.f32 %v3447_v36, %v3442_v41  ;;  %v3784_v0 = vcombine.high %v6256_v30, %v6256_v30 }
 0x5a3   : > { %v3745_v19 = vcombine.low %v3743_v57, %v3743_v57  ;;  %v3253_v34 = vcombine.low %v6223_v5, %v6223_v5  ;;  %v3997_v7 = vcombine.low %v6249_v58, %v6249_v58  ;;  %v3316_v58 = vcombine.high %v6296_v17, %v6296_v17 }
 0x5a4   : > { %v6303_v40 = vrot.slane %v6288_v20, %v6061_v14  ;;  %v3451_v56 = vcombine.low %v3449_v28, %v3449_v28  ;;  %v3465_v60 = vrot.slane %v3449_v28, %v6061_v14  ;;  %v3798_v53 = vrot.slane %v3784_v0, %v6061_v14 }
 0x5a5   : > { %3975 = vrot.lane.b32.xlu0 %v6218_v13, %s6970_s16  ;;  %v6327_v61 = vrot.slane %v3745_v19, %v6061_v14  ;;  %v3973_v13 = vrot.slane %v3959_v21, %v6061_v14  ;;  %v3331_v15 = vcombine.high %v6311_v48, %v6311_v48  ;;  %v3490_v17 = vcombine.high %v6288_v20, %v6288_v20 }
 0x5a6   : > { %3257 = vrot.lane.b32.xlu1 %v6223_v5, %s6971_s21  ;;  %v6375_v42 = vrot.slane %v3451_v56, %v6061_v14  ;;  %v3467_v1 = vcombine.low %v3465_v60, %v3465_v60  ;;  %v3893_v5 = vrot.slane %v6144_v50, 6  ;;  %v3669_v33 = vcombine.high %v6318_v39, %v6318_v39 }
 0x5a7   : > { %v3412_v23 = vcombine.high %v6186_v46, %v6186_v46  ;;  %v3216_v46 = vcombine.high %v6346_v54, %v6346_v54  ;;  %v3238_v36 = vcombine.high %v6209_v49, %v6209_v49  ;;  %v4107_v60 = vrot.slane %v6148_v16, 6 }
 0x5a8   : > { %v3895_v19 = vsel %vm6988_vm9, %v3893_v5, %v6144_v50  ;;  %v3504_v50 = vrot.slane %v3490_v17, %v6061_v14  ;;  %vm7000_vm0 = vcmask 1014784   ;;  %vm7001_vm4 = vcmask 1022976  }
 0x5a9   : > { %3643 = vrot.lane.b32.xlu0 %v3637_v12, %s6964_s24  ;;  %v3573_v12 = vrot.slane %v3559_v51, %v6061_v14  ;;  %v3890_v51 = vld [vmem:[#allocation3] sm:$0x3f]  ;;  %v3252_v28 = vrot.slane %v3238_v36, %v6061_v14  ;;  %vm7002_vm5 = vmmov %vm7000_vm0  ;;  %vm7003_vm6 = vcmask 908288   ;;  %vm7005_vm8 = vcmask 654336  }
 0x5aa   : > { %3641 = vrot.lane.b32.xlu1 %v3638_v32, %s6964_s24  ;;  %s6976_s24 = smov 108   ;;  %v3759_v32 = vrot.slane %v3743_v57, %v6061_v14  ;;  %v4068_v57 = vrot.slane %v6122_v44, 6  ;;  %vm7006_vm9 = vcmask 777216  }
 0x5ab   : > { %v3575_v43 = vcombine.low %v3573_v12, %v3573_v12  ;;  %v3897_v12 = vmul.f32 %v3895_v19, %v3890_v51 }
 0x5ac   : > { %v3761_v27 = vcombine.low %v3759_v32, %v3759_v32  ;;  %v4065_v32 = vld [vmem:[#allocation3] sm:$0x3f] }
 0x5ad   : > { %3842 = vrot.lane.b32.xlu0 %v3836_v8, %s6972_s19  ;;  %v3268_v8 = vld [vmem:[#allocation3] sm:$0x3f]  ;;  %v3899_v20 = vcombine.low %v3897_v12, %v3897_v12 }
 0x5ae   : > { %4054 = vrot.lane.b32.xlu1 %v6254_v9, %s6974_s20  ;;  %v3275_v59 = vmul.f32 %v3273_v63, %v3268_v8  ;;  %v3528_v8 = vcombine.low %v6270_v35, %v6270_v35  ;;  %v3875_v35 = vcombine.low %v6294_v25, %v6294_v25 }
 0x5af   : > { %v6436_v31 = vrot.slane %v3899_v20, %v6061_v14 }
 0x5b0   : > { %v3277_v2 = vcombine.low %v3275_v59, %v3275_v59  ;;  %v3535_v52 = vrot.slane %v3528_v8, %v6061_v14 }
 0x5b1   : > { %4017 = vrot.lane.b32.xlu0 %v4011_v37, %s6976_s24  ;;  %v3291_v37 = vrot.slane %v3275_v59, %v6061_v14  ;;  %v3426_v59 = vrot.slane %v3412_v23, %v6061_v14  ;;  %v3914_v51 = vcombine.low %v6436_v31, %v6436_v31 }
 0x5b2   : > { %3800 = vrot.lane.b32.xlu1 %v6277_v62, %s6977_s0  ;;  %v6368_v3 = vrot.slane %v3277_v2, %v6061_v14  ;;  %v6399_v62 = vrot.slane %v3997_v7, %v6061_v14  ;;  %v4109_v7 = vsel %vm6992_vm13, %v4107_v60, %v6148_v16  ;;  %vm7009_vm13 = vcmask 785408  }
 0x5b3   : > { %v3293_v47 = vcombine.low %v3291_v37, %v3291_v37  ;;  %v3428_v41 = vcombine.low %v3426_v59, %v3426_v59  ;;  %v3254_v37 = vcombine.low %v3252_v28, %v3252_v28 }
 0x5b5   : > { %3548 = vrot.lane.b32.xlu0 %v3542_v18, %s6980_s1  ;;  %v3822_v18 = vcombine.low %v6235_v55, %v6235_v55  ;;  %v4050_v55 = vcombine.low %v6254_v9, %v6254_v9  ;;  %v3330_v9 = vrot.slane %v3316_v58, %v6061_v14 }
 0x5b6   : > { %3879 = vrot.lane.b32.xlu1 %v6294_v25, %s6981_s2  ;;  %v3389_v25 = vcombine.high %v6359_v10, %v6359_v10 }
 0x5b7   : > { %v6396_v30 = vrot.slane %v3822_v18, %v6061_v14  ;;  %v3466_v18 = vcombine.low %v6375_v42, %v6375_v42 }
 0x5b9   : > { %3506 = vrot.lane.b32.xlu0 %v6303_v40, %s6982_s3  ;;  %v3837_v49 = vcombine.high %v6396_v30, %v6396_v30 }
 0x5ba   : > { %3332 = vrot.lane.b32.xlu1 %v6311_v48, %s6958_s18  ;;  %v3505_v48 = vcombine.high %v6303_v40, %v6303_v40 }
 0x5bd   : > { %3670 = vrot.lane.b32.xlu0 %v6318_v39, %s6966_s27 }
 0x5be   : > { %3702 = vrot.lane.b32.xlu1 %v3700_v4, %s6963_s25  ;;  %v3685_v4 = vcombine.high %v6155_v45, %v6155_v45 }
 0x5c0   : > { %v3699_v45 = vrot.slane %v3685_v4, %v6061_v14  ;;  %v2945_v4 = vld [vmem:[%s6838_s8 + $0x10] sm:$0xff] }
 0x5c1   : > { %3764 = vrot.lane.b32.xlu0 %v6327_v61, %s6983_s4 }
 0x5c2   : > { %3580 = vrot.lane.b32.xlu1 %v3575_v43, %s6962_s17  ;;  %s6986_s17 = smov 80   ;;  %v4070_v43 = vsel %vm6989_vm10, %v4068_v57, %v6122_v44  ;;  %v3701_v40 = vcombine.low %v3699_v45, %v3699_v45  ;;  %v3913_v44 = vrot.slane %v3897_v12, %v6061_v14  ;;  %vm7007_vm10 = vcmask 891904  }
 0x5c4   : > { %v3915_v21 = vcombine.low %v3913_v44, %v3913_v44  ;;  %v4160_v44 = vld [vmem:[%s6841_s11] sm:$0xff] }
 0x5c5   : > { %3977 = vrot.lane.b32.xlu0 %v3974_v11, %s6970_s16  ;;  %v4072_v11 = vmul.f32 %v4070_v43, %v4065_v32 }
 0x5c6   : > { %3766 = vrot.lane.b32.xlu1 %v3761_v27, %s6983_s4 }
 0x5c7   : > { %v4074_v27 = vcombine.low %v4072_v11, %v4072_v11  ;;  %v4088_v39 = vrot.slane %v4072_v11, %v6061_v14 }
 0x5c9   : > { %3217 = vrot.lane.b32.xlu0 %v6346_v54, %s6965_s23  ;;  %v6443_v63 = vrot.slane %v4074_v27, %v6061_v14  ;;  %v4035_v54 = vcombine.high %v6239_v29, %v6239_v29 }
 0x5ca   : > { %3979 = vrot.lane.b32.xlu1 %v3973_v13, %s6970_s16  ;;  %s6987_s16 = smov 95   ;;  %v4090_v13 = vcombine.low %v4088_v39, %v4088_v39 }
 0x5cb   : > { %v4049_v56 = vrot.slane %v4035_v54, %v6061_v14 }
 0x5cd   : > { %3429 = vrot.lane.b32.xlu0 %v3427_v24, %s6968_s15  ;;  %v3760_v24 = vcombine.low %v6327_v61, %v6327_v61  ;;  %v2943_v61 = vld [vmem:[%s6838_s8] sm:$0xff]  ;;  %v4051_v0 = vcombine.low %v4049_v56, %v4049_v56 }
 0x5ce   : > { %3390 = vrot.lane.b32.xlu1 %v6359_v10, %s6967_s26  ;;  %4582 = vmatmul.mubr.msk.f32.vlgmr.msra.gmra.mrb[6].mxu1 %vm2978_vm11, %v2943_v61 }
 0x5cf   : > { %3067 = vmatprep.mubr.f32.mxu1 %v4960_v22 }
 0x5d1   : > { %3608 = vrot.lane.b32.xlu0 %v3606_v26, %s6969_s28 }
 0x5d2   : > { %3296 = vrot.lane.b32.xlu1 %v6368_v3, %s6986_s17 }
 0x5d5   : > { %3298 = vrot.lane.b32.xlu0 %v3293_v47, %s6986_s17  ;;  %v4012_v47 = vcombine.high %v6399_v62, %v6399_v62 }
 0x5d6   : > { %3470 = vrot.lane.b32.xlu1 %v6375_v42, %s6987_s16  ;;  %v2944_v42 = vld [vmem:[%s6838_s8 + $0x8] sm:$0xff] }
 0x5d7   : > { %4583 = vmatmul.mubr.msk.f32.gmra.mrb[8].mxu1 %vm2978_vm11, %v2944_v42 }
 0x5d8   : > { %3073 = vmatprep.mubr.f32.mxu1 %v4960_v22 }
 0x5d9   : > { %3472 = vrot.lane.b32.xlu0 %v3467_v1, %s6987_s16 }
 0x5da   : > { %3802 = vrot.lane.b32.xlu1 %v3799_v38, %s6977_s0  ;;  %v3860_v38 = vcombine.high %v6279_v6, %v6279_v6 }
 0x5db   : > { %4584 = vmatmul.mubr.msk.f32.gmra.mrb[10].mxu1 %vm2978_vm11, %v2945_v4 }
 0x5dc   : > { %v3874_v6 = vrot.slane %v3860_v38, %v6061_v14  ;;  %3079 = vmatprep.mubr.f32.mxu1 %v4960_v22 }
 0x5dd   : > { %3804 = vrot.lane.b32.xlu0 %v3798_v53, %s6977_s0  ;;  %s6990_s0 = smov 61  }
 0x5de   : > { %3255 = vrot.lane.b32.xlu1 %v3253_v34, %s6971_s21  ;;  %v4104_v34 = vld [vmem:[#allocation3] sm:$0x3f]  ;;  %v3876_v16 = vcombine.low %v3874_v6, %v3874_v6 }
 0x5df   : > { %v4111_v58 = vmul.f32 %v4109_v7, %v4104_v34 }
 0x5e1   : > { %3838 = vrot.lane.b32.xlu0 %v6396_v30, %s6972_s19  ;;  %v4120_v19 = vrot.slane %v4111_v58, %v6061_v14  ;;  %v4113_v12 = vcombine.high %v4111_v58, %v4111_v58 }
 0x5e2   : > { %4013 = vrot.lane.b32.xlu1 %v6399_v62, %s6976_s24  ;;  %v3292_v62 = vcombine.low %v6368_v3, %v6368_v3 }
 0x5e3   : > { %v4128_v32 = vcombine.high %v4120_v19, %v4120_v19 }
 0x5e5   : > { %4052 = vrot.lane.b32.xlu0 %v4050_v55, %s6974_s20  ;;  %v3543_v55 = vcombine.high %v3535_v52, %v3535_v52 }
 0x5e6   : > { %3334 = vrot.lane.b32.xlu1 %v3331_v15, %s6958_s18 }
 0x5e9   : > { %3336 = vrot.lane.b32.xlu0 %v3330_v9, %s6958_s18 }
 0x5ea   : > { %3508 = vrot.lane.b32.xlu1 %v3505_v48, %s6982_s3  ;;  %v4089_v48 = vcombine.low %v6443_v63, %v6443_v63 }
 0x5ed   : > { %3510 = vrot.lane.b32.xlu0 %v3504_v50, %s6982_s3  ;;  %s6991_s3 = smov 76   ;;  %v2946_v50 = vld [vmem:[%s6838_s8 + $0x18] sm:$0xff] }
 0x5ee   : > { %3672 = vrot.lane.b32.xlu1 %v3669_v33, %s6966_s27  ;;  %v4127_v33 = vrot.slane %v4113_v12, %v6061_v14  ;;  %4585 = vmatmul.mubr.msk.f32.gmra.mrb[12].mxu1 %vm2978_vm11, %v2946_v50  ;;  %vm7008_vm11 = vmmov %vm7007_vm10 }
 0x5ef   : > { %4267 = vmatprep.mubr.f32.mxu1 %v4960_v22 }
 0x5f1   : > { %3706 = vrot.lane.b32.xlu0 %v3701_v40, %s6963_s25 }
 0x5f2   : > { %3918 = vrot.lane.b32.xlu1 %v6436_v31, %s6990_s0  ;;  %v4161_v31 = vld [vmem:[%s6841_s11 + $0x8] sm:$0xff] }
 0x5f5   : > { %3920 = vrot.lane.b32.xlu0 %v3915_v21, %s6990_s0  ;;  %v4162_v21 = vld [vmem:[%s6841_s11 + $0x10] sm:$0xff] }
 0x5f6   : > { %4093 = vrot.lane.b32.xlu1 %v6443_v63, %s6991_s3  ;;  %v4163_v63 = vld [vmem:[%s6841_s11 + $0x18] sm:$0xff] }
 0x5f9   : > { %4095 = vrot.lane.b32.xlu0 %v4090_v13, %s6991_s3 }
 0x5fa   : > { %3544 = vrot.lane.b32.xlu1 %v3535_v52, %s6980_s1 }
 0x5fd   : > { %3877 = vrot.lane.b32.xlu0 %v3875_v35, %s6981_s2 }
 0x5fe   : > { %3433 = vrot.lane.b32.xlu1 %v3428_v41, %s6968_s15 }
 0x601   : > { %3219 = vrot.lane.b32.xlu0 %v3216_v46, %s6965_s23 }
 0x602   : > { %3762 = vrot.lane.b32.xlu1 %v3760_v24, %s6983_s4 }
 0x603   : > { %v6468_v2 = vpop.permute.xlu0 %3578 }
 0x604   : > { %v6475_v26 = vpop.permute.xlu1 %3704 }
 0x605   : > { %3392 = vrot.lane.b32.xlu0 %v3389_v25, %s6967_s26 }
 0x606   : > { %3840 = vrot.lane.b32.xlu1 %v3837_v49, %s6972_s19 }
 0x607   : > { %v3640_v10 = vpop.permute.xlu0 %3639 }
 0x608   : > { %v6486_v29 = vpop.permute.xlu1 %3221 }
 0x609   : > { %3259 = vrot.lane.b32.xlu0 %v3254_v37, %s6971_s21 }
 0x60a   : > { %4015 = vrot.lane.b32.xlu1 %v4012_v47, %s6976_s24 }
 0x60b   : > { %v6494_v1 = vpop.permute.xlu0 %3674 }
 0x60c   : > { %v6498_v53 = vpop.permute.xlu1 %3394 }
 0x60d   : > { %4056 = vrot.lane.b32.xlu0 %v4051_v0, %s6974_s20 }
 0x60e   : > { %3468 = vrot.lane.b32.xlu1 %v3466_v18, %s6987_s16 }
 0x60f   : > { %v6506_v30 = vpop.permute.xlu0 %3431 }
 0x610   : > { %v3613_v5 = vpop.permute.xlu1 %3612 }
 0x611   : > { %3294 = vrot.lane.b32.xlu0 %v3292_v62, %s6986_s17 }
 0x612   : > { %3546 = vrot.lane.b32.xlu1 %v3543_v55, %s6980_s1 }
 0x613   : > { %v6516_v15 = vpop.permute.xlu0 %3610 }
 0x614   : > { %v3616_v3 = vsel %vm6993_vm14, %v6516_v15, %v3613_v5  ;;  %v3577_v57 = vpop.permute.xlu1 %3576  ;;  %vm7010_vm14 = vcmask 752640  }
 0x615   : > { %3620 = vst [vmem:[#allocation4 + $0x18] sm:$0xc0] %v3616_v3  ;;  %v3583_v9 = vsel %vm6994_vm15, %v3577_v57, %v6468_v2  ;;  %3881 = vrot.lane.b32.xlu0 %v3876_v16, %s6981_s2  ;;  %s6995_s2 = smov 60   ;;  %vm7011_vm15 = vcmask 523264  }
 0x616   : > { %3587 = vst [vmem:[#allocation4] sm:$0x30] %v3583_v9  ;;  %3916 = vrot.lane.b32.xlu1 %v3914_v51, %s6990_s0 }
 0x617   : > { %v3976_v17 = vpop.permute.xlu0 %3975 }
 0x618   : > { %v6535_v43 = vpop.permute.xlu1 %3257 }
 0x619   : > { %4091 = vrot.lane.b32.xlu0 %v4089_v48, %s6991_s3 }
 0x61a   : > { %4131 = vrot.lane.b32.xlu1 %v4128_v32, %s6995_s2 }
 0x61b   : > { %v3644_v45 = vpop.permute.xlu0 %3643 }
 0x61c   : > { %v3642_v20 = vpop.permute.xlu1 %3641 }
 0x61d   : > { %v3646_v11 = vsel %vm6996_vm1, %v3640_v10, %v3642_v20  ;;  %v3647_v40 = vsel %vm6997_vm2, %v3642_v20, %v3644_v45  ;;  %4133 = vrot.lane.b32.xlu0 %v4127_v33, %s6995_s2  ;;  %vm7012_vm1 = vmmov %vm7011_vm15  ;;  %vm7013_vm2 = vcmask 646144  }
 0x61e   : > { %3650 = vst [vmem:[#allocation4 + $0x30] sm:$0x3] %v3646_v11  ;;  %3651 = vst [vmem:[#allocation4 + $0x38] sm:$0x3] %v3647_v40  ;;  %4129 = vrot.lane.b32.xlu1 %v4120_v19, %s6995_s2 }
 0x61f   : > { %v6553_v14 = vpop.permute.xlu0 %3842 }
 0x620   : > { %v6558_v27 = vpop.permute.xlu1 %4054 }
 0x621   : > { %4166 = vperm.xlu0 %4795, %v4160_v44  }
 0x622   : > { %4171 = vperm.xlu1 %4796, %v4161_v31  }
 0x623   : > { %v6563_v39 = vpop.permute.xlu0 %4017 }
 0x624   : > { %v3801_v8 = vpop.permute.xlu1 %3800 }
 0x625   : > { %4176 = vperm.xlu0 %4795, %v4162_v21  }
 0x626   : > { %4181 = vperm.xlu1 %4796, %v4163_v63  }
 0x627   : > { %v6568_v23 = vpop.permute.xlu0 %3548 }
 0x628   : > { %v6570_v13 = vpop.permute.xlu1 %3879 }
 0x62b   : > { %v3507_v52 = vpop.permute.xlu0 %3506 }
 0x62c   : > { %v3333_v59 = vpop.permute.xlu1 %3332 }
 0x62f   : > { %v3671_v35 = vpop.permute.xlu0 %3670 }
 0x630   : > { %v3703_v41 = vpop.permute.xlu1 %3702 }
 0x631   : > { %v3709_v46 = vsel %vm6998_vm12, %v3703_v41, %v6475_v26  ;;  %vm7014_vm12 = vmmov %vm7013_vm2 }
 0x632   : > { %3713 = vst [vmem:[#allocation4 + $0x50] sm:$0x30] %v3709_v46 }
 0x633   : > { %v6574_v36 = vpop.permute.xlu0 %3764 }
 0x634   : > { %v3581_v24 = vpop.permute.xlu1 %3580 }
 0x635   : > { %v3584_v25 = vsel %vm6999_vm3, %v6468_v2, %v3581_v24  ;;  %vm7015_vm3 = vcmask 637952  }
 0x636   : > { %3588 = vst [vmem:[#allocation4 + $0x8] sm:$0x30] %v3584_v25 }
 0x637   : > { %v3978_v28 = vpop.permute.xlu0 %3977 }
 0x638   : > { %v3982_v54 = vsel %vm7000_vm0, %v3976_v17, %v3978_v28  ;;  %v3767_v49 = vpop.permute.xlu1 %3766  ;;  %vm7016_vm0 = vmmov %vm7015_vm3 }
 0x639   : > { %3986 = vst [vmem:[#allocation4 + $0x10] sm:$0x3] %v3982_v54  ;;  %v3770_v61 = vsel %vm7001_vm4, %v6574_v36, %v3767_v49  ;;  %vm7017_vm4 = vcmask 506880  }
 0x63a   : > { %3774 = vst [vmem:[#allocation4 + $0x8] sm:$0xc0] %v3770_v61 }
 0x63b   : > { %v6581_v10 = vpop.permute.xlu0 %3217 }
 0x63c   : > { %v3980_v37 = vpop.permute.xlu1 %3979 }
 0x63d   : > { %v3983_v56 = vsel %vm7002_vm5, %v3978_v28, %v3980_v37  ;;  %vm7018_vm5 = vcmask 498688  }
 0x63e   : > { %3987 = vst [vmem:[#allocation4 + $0x18] sm:$0x3] %v3983_v56 }
 0x63f   : > { %v3430_v47 = vpop.permute.xlu0 %3429 }
 0x640   : > { %v3436_v2 = vsel %vm7003_vm6, %v3430_v47, %v6506_v30  ;;  %v6586_v60 = vpop.permute.xlu1 %3390  ;;  %vm7019_vm6 = vcmask 621568  }
 0x641   : > { %3440 = vst [vmem:[#allocation4 + $0x10] sm:$0x30] %v3436_v2 }
 0x643   : > { %v3609_v0 = vpop.permute.xlu0 %3608 }
 0x644   : > { %v3615_v38 = vsel %vm7004_vm7, %v3609_v0, %v6516_v15  ;;  %v6590_v18 = vpop.permute.xlu1 %3296  ;;  %vm7020_vm7 = vcmask 629760  }
 0x645   : > { %3619 = vst [vmem:[#allocation4 + $0x10] sm:$0xc0] %v3615_v38 }
 0x647   : > { %v3299_v34 = vpop.permute.xlu0 %3298 }
 0x648   : > { %v3302_v7 = vsel %vm7005_vm8, %v6590_v18, %v3299_v34  ;;  %v6594_v62 = vpop.permute.xlu1 %3470  ;;  %vm7021_vm8 = vcmask 908288  }
 0x649   : > { %3306 = vst [vmem:[#allocation4 + $0x38] sm:$0xc0] %v3302_v7 }
 0x64b   : > { %v3473_v6 = vpop.permute.xlu0 %3472 }
 0x64c   : > { %v3476_v5 = vsel %vm7006_vm9, %v6594_v62, %v3473_v6  ;;  %v3803_v55 = vpop.permute.xlu1 %3802  ;;  %vm7022_vm9 = vcmask 916480  }
 0x64d   : > { %3480 = vst [vmem:[#allocation4 + $0x28] sm:$0xc0] %v3476_v5  ;;  %v3807_v58 = vsel %vm7007_vm10, %v3801_v8, %v3803_v55  ;;  %vm7023_vm10 = vmmov %vm7022_vm9 }
 0x64e   : > { %3811 = vst [vmem:[#allocation4 + $0x20] sm:$0x3] %v3807_v58 }
 0x64f   : > { %v3805_v42 = vpop.permute.xlu0 %3804 }
 0x650   : > { %v3808_v15 = vsel %vm7008_vm11, %v3803_v55, %v3805_v42  ;;  %v3256_v16 = vpop.permute.xlu1 %3255  ;;  %vm7024_vm11 = vcmask 1022976  }
 0x651   : > { %3812 = vst [vmem:[#allocation4 + $0x28] sm:$0x3] %v3808_v15  ;;  %v3262_v3 = vsel %vm7009_vm13, %v3256_v16, %v6535_v43  ;;  %vm7025_vm13 = vcmask 1039360  }
 0x652   : > { %3266 = vst [vmem:[#allocation4 + $0x20] sm:$0x30] %v3262_v3 }
 0x653   : > { %v3839_v57 = vpop.permute.xlu0 %3838 }
 0x654   : > { %v4014_v51 = vpop.permute.xlu1 %4013 }
 0x657   : > { %v4053_v19 = vpop.permute.xlu0 %4052 }
 0x658   : > { %v4059_v4 = vsel %vm7010_vm14, %v4053_v19, %v6558_v27  ;;  %v3335_v9 = vpop.permute.xlu1 %3334  ;;  %vm7026_vm14 = vmmov %vm7025_vm13 }
 0x659   : > { %4063 = vst [vmem:[#allocation4 + $0x30] sm:$0x30] %v4059_v4  ;;  %v3338_v17 = vsel %vm7011_vm15, %v3333_v59, %v3335_v9  ;;  %vm7027_vm15 = vcmask 760832  }
 0x65a   : > { %3342 = vst [vmem:[#allocation4 + $0x50] sm:$0x3] %v3338_v17 }
 0x65b   : > { %v3337_v48 = vpop.permute.xlu0 %3336 }
 0x65c   : > { %v3339_v12 = vsel %vm7012_vm1, %v3335_v9, %v3337_v48  ;;  %v3509_v32 = vpop.permute.xlu1 %3508  ;;  %vm7028_vm1 = vmmov %vm7027_vm15 }
 0x65d   : > { %3343 = vst [vmem:[#allocation4 + $0x58] sm:$0x3] %v3339_v12  ;;  %v3513_v50 = vsel %vm7013_vm2, %v3507_v52, %v3509_v32  ;;  %vm7029_vm2 = vcmask 785408  }
 0x65e   : > { %3517 = vst [vmem:[#allocation4 + $0x40] sm:$0x3] %v3513_v50 }
 0x65f   : > { %v3511_v45 = vpop.permute.xlu0 %3510 }
 0x660   : > { %v3514_v33 = vsel %vm7014_vm12, %v3509_v32, %v3511_v45  ;;  %v3673_v20 = vpop.permute.xlu1 %3672  ;;  %vm7030_vm12 = vcmask 883712  }
 0x661   : > { %3518 = vst [vmem:[#allocation4 + $0x48] sm:$0x3] %v3514_v33  ;;  %v3677_v11 = vsel %vm7015_vm3, %v3671_v35, %v3673_v20  ;;  %v3678_v40 = vsel %vm7016_vm0, %v3673_v20, %v6494_v1  ;;  %vm7031_vm3 = vmmov %vm7030_vm12  ;;  %vm7032_vm0 = vcmask 752640  }
 0x662   : > { %3681 = vst [vmem:[#allocation4 + $0x40] sm:$0xc] %v3677_v11  ;;  %3682 = vst [vmem:[#allocation4 + $0x48] sm:$0xc] %v3678_v40 }
 0x663   : > { %v3707_v44 = vpop.permute.xlu0 %3706 }
 0x664   : > { %v3710_v31 = vsel %vm7017_vm4, %v6475_v26, %v3707_v44  ;;  %v6613_v21 = vpop.permute.xlu1 %3918  ;;  %vm7033_vm4 = vcmask 777216  }
 0x665   : > { %3714 = vst [vmem:[#allocation4 + $0x58] sm:$0x30] %v3710_v31 }
 0x667   : > { %v3921_v63 = vpop.permute.xlu0 %3920 }
 0x668   : > { %v3924_v8 = vsel %vm7018_vm5, %v6613_v21, %v3921_v63  ;;  %v6617_v52 = vpop.permute.xlu1 %4093  ;;  %vm7034_vm5 = vcmask 654336  }
 0x669   : > { %3928 = vst [vmem:[#allocation4 + $0x58] sm:$0xc0] %v3924_v8 }
 0x66b   : > { %v4096_v59 = vpop.permute.xlu0 %4095 }
 0x66c   : > { %v4099_v1 = vsel %vm7019_vm6, %v6617_v52, %v4096_v59  ;;  %v3545_v35 = vpop.permute.xlu1 %3544  ;;  %vm7035_vm6 = vcmask 515072  }
 0x66d   : > { %4103 = vst [vmem:[#allocation4 + $0x48] sm:$0xc0] %v4099_v1  ;;  %v4143_v1 = vld [vmem:[%s6840_s10 + $0x8] sm:$0xff] }
 0x66f   : > { %v3878_v41 = vpop.permute.xlu0 %3877 }
 0x670   : > { %v3884_v26 = vsel %vm7020_vm7, %v3878_v41, %v6570_v13  ;;  %v3434_v46 = vpop.permute.xlu1 %3433  ;;  %vm7036_vm7 = vmmov %vm7035_vm6  ;;  %v4145_v41 = vld [vmem:[%s6840_s10 + $0x18] sm:$0xff] }
 0x671   : > { %3888 = vst [vmem:[#allocation4 + $0x40] sm:$0x30] %v3884_v26  ;;  %v3437_v24 = vsel %vm7021_vm8, %v6506_v30, %v3434_v46  ;;  %vm7037_vm8 = vcmask 629760  }
 0x672   : > { %3441 = vst [vmem:[#allocation4 + $0x18] sm:$0x30] %v3437_v24 }
 0x673   : > { %v3220_v25 = vpop.permute.xlu0 %3219 }
 0x674   : > { %v3224_v28 = vsel %vm7022_vm9, %v6581_v10, %v3220_v25  ;;  %v3225_v54 = vsel %vm7023_vm10, %v3220_v25, %v6486_v29  ;;  %v3763_v49 = vpop.permute.xlu1 %3762  ;;  %vm7038_vm9 = vcmask 498688   ;;  %vm7039_vm10 = vcmask 621568  }
 0x675   : > { %3228 = vst [vmem:[#allocation4 + $0x10] sm:$0xc] %v3224_v28  ;;  %3229 = vst [vmem:[#allocation4 + $0x18] sm:$0xc] %v3225_v54  ;;  %v3769_v61 = vsel %vm7024_vm11, %v3763_v49, %v6574_v36  ;;  %vm7040_vm11 = vcmask 490496  }
 0x676   : > { %3773 = vst [vmem:[#allocation4] sm:$0xc0] %v3769_v61 }
 0x677   : > { %v3393_v37 = vpop.permute.xlu0 %3392 }
 0x678   : > { %v3397_v56 = vsel %vm7025_vm13, %v6586_v60, %v3393_v37  ;;  %v3398_v30 = vsel %vm7026_vm14, %v3393_v37, %v6498_v53  ;;  %v3841_v47 = vpop.permute.xlu1 %3840  ;;  %vm7041_vm13 = vmmov %vm7040_vm11  ;;  %vm7042_vm14 = vcmask 1041408  }
 0x679   : > { %3401 = vst [vmem:[#allocation4] sm:$0xc] %v3397_v56  ;;  %3402 = vst [vmem:[#allocation4 + $0x8] sm:$0xc] %v3398_v30  ;;  %v3845_v10 = vsel %vm7027_vm15, %v3839_v57, %v3841_v47  ;;  %v3846_v29 = vsel %vm7028_vm1, %v3841_v47, %v6553_v14  ;;  %vm4184_vm15 = vcmask 408576  }
 0x67a   : > { %3849 = vst [vmem:[#allocation4 + $0x30] sm:$0xc] %v3845_v10  ;;  %3850 = vst [vmem:[#allocation4 + $0x38] sm:$0xc] %v3846_v29 }
 0x67b   : > { %v3260_v2 = vpop.permute.xlu0 %3259  ;;  %vm7043_vm1 = vmmov %vm7042_vm14 }
 0x67c   : > { %v3263_v36 = vsel %vm7029_vm2, %v6535_v43, %v3260_v2  ;;  %v4016_v0 = vpop.permute.xlu1 %4015  ;;  %v4149_v34 = vld [vmem:[#allocation4 + $0x18] sm:$0xff]  ;;  %v4148_v55 = vld [vmem:[#allocation4 + $0x10] sm:$0xff] }
 0x67d   : > { %3267 = vst [vmem:[#allocation4 + $0x28] sm:$0x30] %v3263_v36  ;;  %v4020_v60 = vsel %vm7030_vm12, %v4014_v51, %v4016_v0  ;;  %v4021_v53 = vsel %vm7031_vm3, %v4016_v0, %v6563_v39 }
 0x67e   : > { %4024 = vst [vmem:[#allocation4 + $0x20] sm:$0xc] %v4020_v60  ;;  %4025 = vst [vmem:[#allocation4 + $0x28] sm:$0xc] %v4021_v53 }
 0x67f   : > { %v4057_v38 = vpop.permute.xlu0 %4056 }
 0x680   : > { %v4060_v14 = vsel %vm7032_vm0, %v6558_v27, %v4057_v38  ;;  %v3469_v7 = vpop.permute.xlu1 %3468  ;;  %v4147_v6 = vld [vmem:[#allocation4 + $0x8] sm:$0xff]  ;;  %v4146_v5 = vld [vmem:[#allocation4] sm:$0xff] }
 0x681   : > { %4064 = vst [vmem:[#allocation4 + $0x38] sm:$0x30] %v4060_v14  ;;  %v3475_v43 = vsel %vm7033_vm4, %v3469_v7, %v6594_v62  ;;  %v4621_v58 = vpack.c.bf16 %v4149_v34, %v4147_v6  ;;  %v4623_v42 = vpack.c.bf16 %v4148_v55, %v4146_v5 }
 0x682   : > { %3479 = vst [vmem:[#allocation4 + $0x20] sm:$0xc0] %v3475_v43 }
 0x683   : > { %v3295_v15 = vpop.permute.xlu0 %3294  ;;  %4622 = vmatprep.subr.bf16.mxu1 %v4621_v58 }
 0x684   : > { %v3301_v39 = vsel %vm7034_vm5, %v3295_v15, %v6590_v18  ;;  %v3547_v16 = vpop.permute.xlu1 %3546  ;;  %4624 = vmatpush1.bf16.msra.mxu1 %v4623_v42 }
 0x685   : > { %3305 = vst [vmem:[#allocation4 + $0x30] sm:$0xc0] %v3301_v39  ;;  %v3551_v27 = vsel %vm7035_vm6, %v3545_v35, %v3547_v16  ;;  %v3552_v3 = vsel %vm7036_vm7, %v3547_v16, %v6568_v23  ;;  %v4151_v19 = vld [vmem:[#allocation4 + $0x28] sm:$0xff]  ;;  %v4144_v35 = vld [vmem:[%s6840_s10 + $0x10] sm:$0xff] }
 0x686   : > { %3555 = vst [vmem:[#allocation4 + $0x50] sm:$0xc] %v3551_v27  ;;  %3556 = vst [vmem:[#allocation4 + $0x58] sm:$0xc] %v3552_v3 }
 0x687   : > { %v3882_v57 = vpop.permute.xlu0 %3881 }
 0x688   : > { %v3885_v62 = vsel %vm7037_vm8, %v6570_v13, %v3882_v57  ;;  %v3917_v51 = vpop.permute.xlu1 %3916  ;;  %v4153_v4 = vld [vmem:[#allocation4 + $0x38] sm:$0xff]  ;;  %v2954_v57 = vld [vmem:[%s6839_s9] sm:$0xff] }
 0x689   : > { %3889 = vst [vmem:[#allocation4 + $0x48] sm:$0x30] %v3885_v62  ;;  %v3923_v18 = vsel %vm7038_vm9, %v3917_v51, %v6613_v21  ;;  %v4625_v9 = vpack.c.bf16 %v4153_v4, %v4151_v19  ;;  %v4150_v12 = vld [vmem:[#allocation4 + $0x20] sm:$0xff] }
 0x68a   : > { %3927 = vst [vmem:[#allocation4 + $0x50] sm:$0xc0] %v3923_v18  ;;  %v2956_v62 = vld [vmem:[%s6839_s9 + $0x10] sm:$0xff] }
 0x68b   : > { %v4092_v17 = vpop.permute.xlu0 %4091  ;;  %4626 = vmatprep.subr.bf16.mxu1 %v4625_v9 }
 0x68c   : > { %v4098_v23 = vsel %vm7039_vm10, %v4092_v17, %v6617_v52  ;;  %v4132_v48 = vpop.permute.xlu1 %4131  ;;  %v4152_v32 = vld [vmem:[#allocation4 + $0x30] sm:$0xff] }
 0x68d   : > { %4102 = vst [vmem:[#allocation4 + $0x40] sm:$0xc0] %v4098_v23  ;;  %v4627_v50 = vpack.c.bf16 %v4152_v32, %v4150_v12  ;;  %v4157_v11 = vld [vmem:[#allocation4 + $0x58] sm:$0xff]  ;;  %v4142_v52 = vld [vmem:[%s6840_s10] sm:$0xff] }
 0x68f   : > { %v4134_v13 = vpop.permute.xlu0 %4133  ;;  %4628 = vmatpush1.bf16.msra.mxu1 %v4627_v50 }
 0x690   : > { %v4137_v45 = vsel %vm7040_vm11, %v4132_v48, %v4134_v13  ;;  %v4130_v33 = vpop.permute.xlu1 %4129  ;;  %v4155_v20 = vld [vmem:[#allocation4 + $0x48] sm:$0xff] }
 0x691   : > { %4141 = vst [vmem:[#allocation4 + $0x68] sm:$0x3] %v4137_v45  ;;  %v4136_v40 = vsel %vm7041_vm13, %v4130_v33, %v4132_v48  ;;  %v4629_v44 = vpack.c.bf16 %v4157_v11, %v4155_v20  ;;  %v4156_v21 = vld [vmem:[#allocation4 + $0x50] sm:$0xff] }
 0x692   : > { %4140 = vst [vmem:[#allocation4 + $0x60] sm:$0x3] %v4136_v40 }
 0x693   : > { %4630 = vmatprep.subr.bf16.mxu1 %v4629_v44 }
 0x694   : > { %v4154_v31 = vld [vmem:[#allocation4 + $0x40] sm:$0xff] }
 0x695   : > { %v4631_v63 = vpack.c.bf16 %v4156_v21, %v4154_v31 }
 0x697   : > { %4632 = vmatpush1.bf16.msra.mxu1 %v4631_v63 }
 0x698   : > { %v4159_v8 = vld [vmem:[#allocation4 + $0x68] sm:$0x3] }
 0x699   : > { %4595 = vmatprep.subr.msk.mxu1 %vm7042_vm14, %v4159_v8  ;;  %v4158_v59 = vld [vmem:[#allocation4 + $0x60] sm:$0x3] }
 0x69b   : > { %4596 = vmatpush1.msk.msra.mxu1 %vm7043_vm1, %v4158_v59 }
 0x69c   : > { %4597 = vmatmul.mubr.msk.f32.vlgmr.msra.gmra.mrb[14].mxu1 %vm4184_vm15, %v4142_v52 }
 0x69d   : > { %4273 = vmatprep.mubr.f32.mxu1 %v4960_v22 }
 0x6a0   : > { %4598 = vmatmul.mubr.msk.f32.gmra.mrb[16].mxu1 %vm4184_vm15, %v4143_v1  ;;  %v4167_v61 = vpop.permute.xlu0 %4166 }
 0x6a1   : > { %4279 = vmatprep.mubr.f32.mxu1 %v4960_v22  ;;  %v6677_v26 = vpop.f32.mrb[6].mxu1  ;;  %v4172_v10 = vpop.permute.xlu1 %4171 }
 0x6a2   : > { %v6679_v46 = vpop.f32.mrb[7].mxu1 }
 0x6a4   : > { %4599 = vmatmul.mubr.msk.f32.gmra.mrb[18].mxu1 %vm4184_vm15, %v4144_v35  ;;  %v4177_v38 = vpop.permute.xlu0 %4176 }
 0x6a5   : > { %4285 = vmatprep.mubr.f32.mxu1 %v4960_v22  ;;  %v4182_v43 = vpop.permute.xlu1 %4181 }
 0x6a8   : > { %4600 = vmatmul.mubr.msk.f32.gmra.mrb[20].mxu1 %vm4184_vm15, %v4145_v41 }
 0x6aa   : > { %v6681_v24 = vpop.f32.mrb[8].mxu1 }
 0x6ab   : > { %v6683_v25 = vpop.f32.mrb[9].mxu1 }
 0x6ae   : > { %v6685_v28 = vpop.f32.mrb[10].mxu1 }
 0x6af   : > { %v6687_v54 = vpop.f32.mrb[11].mxu1 }
 0x6c1   : > { %v6689_v49 = vpop.f32.mrb[12].mxu1 }
 0x6c2   : > { %v6691_v22 = vpop.f32.mrb[13].mxu1 }
 0x76f   : > { %v4269_v37 = vpop.f32.mrb[14].mxu1 }
 0x770   : > { %v4270_v56 = vadd.f32 %v4269_v37, %v4167_v61  ;;  %v4271_v30 = vpop.f32.mrb[15].mxu1 }
 0x771   : > { %v4272_v47 = vadd.f32 %v4271_v30, %v4167_v61 }
 0x773   : > { %v4292_v29 = vadd.f32 %v4272_v47, %v4270_v56  ;;  %v4275_v2 = vpop.f32.mrb[16].mxu1 }
 0x774   : > { %v4276_v36 = vadd.f32 %v4275_v2, %v4172_v10  ;;  %v4277_v0 = vpop.f32.mrb[17].mxu1 }
 0x775   : > { %v4278_v60 = vadd.f32 %v4277_v0, %v4172_v10  ;;  %v2957_v10 = vld [vmem:[%s6839_s9 + $0x18] sm:$0xff] }
 0x776   : > { %v4293_v53 = vadd.f32 %v4292_v29, %v4276_v36 }
 0x777   : > { %v4281_v34 = vpop.f32.mrb[18].mxu1 }
 0x778   : > { %v4294_v14 = vadd.f32 %v4293_v53, %v4278_v60  ;;  %v4282_v7 = vadd.f32 %v4281_v34, %v4177_v38  ;;  %v4283_v6 = vpop.f32.mrb[19].mxu1 }
 0x779   : > { %v4284_v5 = vadd.f32 %v4283_v6, %v4177_v38 }
 0x77a   : > { %v4295_v55 = vadd.f32 %v4294_v14, %v4282_v7 }
 0x77b   : > { %v4287_v58 = vpop.f32.mrb[20].mxu1 }
 0x77c   : > { %v4296_v42 = vadd.f32 %v4295_v55, %v4284_v5  ;;  %v4288_v15 = vadd.f32 %v4287_v58, %v4182_v43  ;;  %v4289_v39 = vpop.f32.mrb[21].mxu1 }
 0x77d   : > { %v4290_v16 = vadd.f32 %v4289_v39, %v4182_v43 }
 0x77e   : > { %v4297_v27 = vadd.f32 %v4296_v42, %v4288_v15 }
 0x780   : > { %v4298_v3 = vadd.f32 %v4297_v27, %v4290_v16 }
 0x782   : > { %4299 = vadd.xlane.f32.xlu0 %v4298_v3 }
 0x798   : > { %2960 = vperm.xlu0 %4795, %v2954_v57  }
 0x79c   : > { %2970 = vperm.xlu0 %4795, %v2956_v62  }
 0x80f   : > { %v4300_v51 = vpop.xlane.xlu0 %4299 }
 0x810   : > { %v4301_v19 = vrot.slane %v4300_v51, 4 }
 0x812   : > { %v4302_v4 = vadd.f32 %v4301_v19, %v4300_v51 }
 0x814   : > { %v4303_v18 = vrot.slane %v4302_v4, 2 }
 0x816   : > { %v4304_v9 = vadd.f32 %v4303_v18, %v4302_v4 }
 0x818   : > { %v4305_v17 = vrot.slane %v4304_v9, 1 }
 0x81a   : > { %v4306_v23 = vadd.f32 %v4305_v17, %v4304_v9 }
 0x81c   : > { %4735 = vpush %v4306_v23 }
 0x84d   : > { %s4736_s19 = spop %4735 }
 0x84e   : > { %s4310_s20 = smul.f32 0.00012207031, %s4736_s19 }
 0x850   : > { %v4311_v48 = vstv %s4310_s20 }
 0x851   : > { %v6699_v12 = vsub.f32 %v4270_v56, %v4311_v48  ;;  %v6701_v32 = vsub.f32 %v4272_v47, %v4311_v48  ;;  %v6703_v50 = vsub.f32 %v4276_v36, %v4311_v48  ;;  %v6705_v13 = vsub.f32 %v4278_v60, %v4311_v48  ;;  %v2955_v47 = vld [vmem:[%s6839_s9 + $0x8] sm:$0xff] }
 0x852   : > { %v6711_v20 = vsub.f32 %v4282_v7, %v4311_v48  ;;  %v6715_v44 = vsub.f32 %v4284_v5, %v4311_v48  ;;  %v6719_v63 = vsub.f32 %v4288_v15, %v4311_v48  ;;  %v6723_v59 = vsub.f32 %v4290_v16, %v4311_v48  ;;  %v2961_v7 = vpop.permute.xlu0 %2960 }
 0x853   : > { %v4320_v45 = vmul.f32 %v6699_v12, %v6699_v12  ;;  %v4321_v33 = vmul.f32 %v6701_v32, %v6701_v32  ;;  %v4322_v11 = vmul.f32 %v6703_v50, %v6703_v50  ;;  %v4323_v31 = vmul.f32 %v6705_v13, %v6705_v13 }
 0x854   : > { %v4324_v8 = vmul.f32 %v6711_v20, %v6711_v20  ;;  %v4325_v1 = vmul.f32 %v6715_v44, %v6715_v44  ;;  %v4326_v41 = vmul.f32 %v6719_v63, %v6719_v63  ;;  %v4327_v37 = vmul.f32 %v6723_v59, %v6723_v59 }
 0x855   : > { %v4328_v40 = vadd.f32 %v4321_v33, %v4320_v45  ;;  %v3064_v6 = vadd.f32 %v6677_v26, %v2961_v7  ;;  %v3066_v43 = vadd.f32 %v6679_v46, %v2961_v7  ;;  %v4363_v45 = vld [vmem:[%s6842_s12 + $0x18] sm:$0xff]  ;;  %v4364_v33 = vld [vmem:[%s6842_s12 + $0x20] sm:$0xff] }
 0x856   : > { %v2971_v55 = vpop.permute.xlu0 %2970 }
 0x857   : > { %v4329_v21 = vadd.f32 %v4328_v40, %v4322_v11  ;;  %v4586_v5 = vmul.f32 -1.442695, %v3064_v6  ;;  %v3076_v58 = vadd.f32 %v6685_v28, %v2971_v55  ;;  %v4587_v42 = vmul.f32 -1.442695, %v3066_v43  ;;  %v4365_v11 = vld [vmem:[%s6842_s12 + $0x28] sm:$0xff] }
 0x858   : > { %v3078_v16 = vadd.f32 %v6687_v54, %v2971_v55 }
 0x859   : > { %v4330_v52 = vadd.f32 %v4329_v21, %v4323_v31  ;;  %v4590_v39 = vmul.f32 -1.442695, %v3076_v58 }
 0x85a   : > { %v4591_v62 = vmul.f32 -1.442695, %v3078_v16 }
 0x85b   : > { %v4331_v35 = vadd.f32 %v4330_v52, %v4324_v8  ;;  %v4366_v52 = vld [vmem:[%s6842_s12 + $0x30] sm:$0xff] }
 0x85d   : > { %v4332_v61 = vadd.f32 %v4331_v35, %v4325_v1  ;;  %v4367_v1 = vld [vmem:[%s6842_s12 + $0x38] sm:$0xff]  ;;  %v4376_v35 = vld [vmem:[%s6843_s13] sm:$0xff] }
 0x85f   : > { %v4333_v56 = vadd.f32 %v4332_v61, %v4326_v41  ;;  %v4377_v41 = vld [vmem:[%s6843_s13 + $0x8] sm:$0xff]  ;;  %v4378_v61 = vld [vmem:[%s6843_s13 + $0x10] sm:$0xff] }
 0x861   : > { %v4334_v30 = vadd.f32 %v4333_v56, %v4327_v37  ;;  %v4379_v37 = vld [vmem:[%s6843_s13 + $0x18] sm:$0xff] }
 0x863   : > { %4335 = vadd.xlane.f32.xlu1 %v4334_v30 }
 0x874   : > { %2965 = vperm.xlu1 %4796, %v2955_v47  }
 0x878   : > { %2975 = vperm.xlu1 %4796, %v2957_v10  }
 0x8f0   : > { %v4336_v29 = vpop.xlane.xlu1 %4335 }
 0x8f1   : > { %v4337_v2 = vrot.slane %v4336_v29, 4 }
 0x8f3   : > { %v4338_v36 = vadd.f32 %v4337_v2, %v4336_v29 }
 0x8f4   : > { %v2966_v15 = vpop.permute.xlu1 %2965 }
 0x8f5   : > { %v4339_v0 = vrot.slane %v4338_v36, 2  ;;  %v3070_v57 = vadd.f32 %v6681_v24, %v2966_v15  ;;  %v3072_v26 = vadd.f32 %v6683_v25, %v2966_v15  ;;  %v4360_v24 = vld [vmem:[%s6842_s12] sm:$0xff]  ;;  %v4361_v25 = vld [vmem:[%s6842_s12 + $0x8] sm:$0xff] }
 0x8f7   : > { %v4340_v60 = vadd.f32 %v4339_v0, %v4338_v36  ;;  %v4588_v28 = vmul.f32 -1.442695, %v3070_v57  ;;  %v4589_v4 = vmul.f32 -1.442695, %v3072_v26  ;;  %v4382_v36 = vld [vmem:[%s6843_s13 + $0x30] sm:$0xff] }
 0x8f8   : > { %v2976_v27 = vpop.permute.xlu1 %2975 }
 0x8f9   : > { %v4341_v53 = vrot.slane %v4340_v60, 1  ;;  %v3082_v51 = vadd.f32 %v6689_v49, %v2976_v27  ;;  %v3084_v19 = vadd.f32 %v6691_v22, %v2976_v27  ;;  %v4362_v49 = vld [vmem:[%s6842_s12 + $0x10] sm:$0xff] }
 0x8fb   : > { %v4342_v38 = vadd.f32 %v4341_v53, %v4340_v60  ;;  %v4592_v18 = vmul.f32 -1.442695, %v3082_v51  ;;  %v4593_v54 = vmul.f32 -1.442695, %v3084_v19  ;;  %v4383_v60 = vld [vmem:[%s6843_s13 + $0x38] sm:$0xff] }
 0x8fd   : > { %4737 = vpush %v4342_v38 }
 0x92e   : > { %s4738_s3 = spop %4737 }
 0x92f   : > { %s4346_s4 = smul.f32 0.00012207031, %s4738_s3  ;;  %s7044_s3 = sshll.u32 %s7046_s30, 6 }
 0x931   : > { %s4347_s18 = sadd.f32 1e-05, %s4346_s4 }
 0x933   : > { %v4348_v34 = vstv %s4347_s18 }
 0x934   : > { %4828 = vrsqrt.f32 %v4348_v34 }
 0x935   : > { %4830 = vpow2.f32 %v4586_v5 }
 0x936   : > { %4832 = vpow2.f32 %v4587_v42 }
 0x937   : > { %4834 = vpow2.f32 %v4590_v39 }
 0x938   : > { %4836 = vpow2.f32 %v4591_v62 }
 0x93e   : > { %v4829_v14 = vpop.eup %4828 }
 0x93f   : > { %4739 = vpush %v4829_v14  ;;  %v4831_v3 = vpop.eup %4830 }
 0x940   : > { %v3110_v46 = vadd.f32 1.0, %v4831_v3  ;;  %v4833_v9 = vpop.eup %4832 }
 0x941   : > { %v4835_v17 = vpop.eup %4834  ;;  %v3111_v22 = vadd.f32 1.0, %v4833_v9 }
 0x942   : > { %4838 = vrcp.f32 %v3110_v46  ;;  %v3114_v23 = vadd.f32 1.0, %v4835_v17  ;;  %v4837_v0 = vpop.eup %4836 }
 0x943   : > { %4840 = vpow2.f32 %v4588_v28  ;;  %v3115_v19 = vadd.f32 1.0, %v4837_v0 }
 0x944   : > { %4842 = vpow2.f32 %v4589_v4 }
 0x945   : > { %4844 = vpow2.f32 %v4592_v18 }
 0x946   : > { %4846 = vpow2.f32 %v4593_v54 }
 0x947   : > { %4848 = vrcp.f32 %v3111_v22 }
 0x948   : > { %4850 = vrcp.f32 %v3114_v23 }
 0x94c   : > { %v6801_v7 = vpop.eup %4838 }
 0x94d   : > { %v4841_v55 = vpop.eup %4840 }
 0x94e   : > { %v4843_v39 = vpop.eup %4842  ;;  %v3112_v28 = vadd.f32 1.0, %v4841_v55  ;;  %v4906_v55 = vld [vmem:[%s5059_s22 + $0x30] sm:$0xff] }
 0x94f   : > { %v4845_v3 = vpop.eup %4844  ;;  %v3113_v4 = vadd.f32 1.0, %v4843_v39 }
 0x950   : > { %v4847_v26 = vpop.eup %4846  ;;  %v3116_v9 = vadd.f32 1.0, %v4845_v3 }
 0x951   : > { %v4849_v18 = vpop.eup %4848  ;;  %v3117_v54 = vadd.f32 1.0, %v4847_v26 }
 0x952   : > { %v4851_v17 = vpop.eup %4850 }
 0x970   : > { %s4740_s25 = spop %4739 }
 0x971   : > { %v4351_v48 = vstv %s4740_s25  ;;  %s6810_s25 = scalar_lea.vmem %s6844_s14, %s7044_s3 }
 0x972   : > { %v4352_v40 = vmul.f32 %v4351_v48, %v6699_v12  ;;  %v4353_v31 = vmul.f32 %v4351_v48, %v6701_v32  ;;  %v4354_v21 = vmul.f32 %v4351_v48, %v6703_v50  ;;  %v4355_v8 = vmul.f32 %v4351_v48, %v6705_v13 }
 0x973   : > { %v4356_v12 = vmul.f32 %v4351_v48, %v6711_v20  ;;  %v4357_v32 = vmul.f32 %v4351_v48, %v6715_v44  ;;  %v4358_v50 = vmul.f32 %v4351_v48, %v6719_v63  ;;  %v4359_v13 = vmul.f32 %v4351_v48, %v6723_v59  ;;  %v4380_v63 = vld [vmem:[%s6843_s13 + $0x20] sm:$0xff]  ;;  %v4381_v59 = vld [vmem:[%s6843_s13 + $0x28] sm:$0xff] }
 0x974   : > { %v4368_v56 = vmul.f32 %v4360_v24, %v4352_v40  ;;  %v4369_v20 = vmul.f32 %v4361_v25, %v4353_v31  ;;  %v4370_v30 = vmul.f32 %v4362_v49, %v4354_v21  ;;  %v4371_v44 = vmul.f32 %v4363_v45, %v4355_v8 }
 0x975   : > { %v4372_v47 = vmul.f32 %v4364_v33, %v4356_v12  ;;  %v4373_v10 = vmul.f32 %v4365_v11, %v4357_v32  ;;  %v4374_v29 = vmul.f32 %v4366_v52, %v4358_v50  ;;  %v4375_v2 = vmul.f32 %v4367_v1, %v4359_v13 }
 0x976   : > { %v4384_v53 = vadd.f32 %v4376_v35, %v4368_v56  ;;  %v4385_v38 = vadd.f32 %v4377_v41, %v4369_v20  ;;  %v4386_v34 = vadd.f32 %v4378_v61, %v4370_v30  ;;  %v4387_v14 = vadd.f32 %v4379_v37, %v4371_v44  ;;  %v4900_v61 = vld [vmem:[%s5059_s22] sm:$0xff]  ;;  %v4901_v20 = vld [vmem:[%s5059_s22 + $0x8] sm:$0xff] }
 0x977   : > { %v4388_v6 = vadd.f32 %v4380_v63, %v4372_v47  ;;  %v4389_v5 = vadd.f32 %v4381_v59, %v4373_v10  ;;  %v4390_v43 = vadd.f32 %v4382_v36, %v4374_v29  ;;  %v4391_v16 = vadd.f32 %v4383_v60, %v4375_v2  ;;  %v4902_v63 = vld [vmem:[%s5059_s22 + $0x10] sm:$0xff]  ;;  %v4903_v29 = vld [vmem:[%s5059_s22 + $0x18] sm:$0xff]  ;;  %v4904_v60 = vld [vmem:[%s5059_s22 + $0x20] sm:$0xff] }
 0x978   : > { %v4601_v58 = vmul.f32 -1.442695, %v4384_v53  ;;  %v4602_v42 = vmul.f32 -1.442695, %v4385_v38  ;;  %v4603_v15 = vmul.f32 -1.442695, %v4386_v34  ;;  %v4440_v37 = vmul.f32 %v4900_v61, %v6801_v7 }
 0x979   : > { %v4604_v27 = vmul.f32 -1.442695, %v4387_v14  ;;  %v4605_v57 = vmul.f32 -1.442695, %v4388_v6  ;;  %v4606_v62 = vmul.f32 -1.442695, %v4389_v5  ;;  %v4441_v30 = vmul.f32 %v4901_v20, %v4849_v18 }
 0x97a   : > { %4852 = vpow2.f32 %v4601_v58  ;;  %v4607_v51 = vmul.f32 -1.442695, %v4390_v43  ;;  %v4608_v46 = vmul.f32 -1.442695, %v4391_v16  ;;  %v4444_v53 = vmul.f32 %v4904_v60, %v4851_v17  ;;  %v4905_v14 = vld [vmem:[%s5059_s22 + $0x28] sm:$0xff] }
 0x97b   : > { %4854 = vpow2.f32 %v4602_v42 }
 0x97c   : > { %4856 = vpow2.f32 %v4603_v15  ;;  %v4907_v15 = vld [vmem:[%s5059_s22 + $0x38] sm:$0xff] }
 0x97d   : > { %4858 = vpow2.f32 %v4604_v27 }
 0x97e   : > { %4860 = vpow2.f32 %v4605_v57 }
 0x97f   : > { %4862 = vpow2.f32 %v4606_v62 }
 0x980   : > { %4864 = vpow2.f32 %v4607_v51 }
 0x981   : > { %4866 = vpow2.f32 %v4608_v46 }
 0x982   : > { %4868 = vrcp.f32 %v3115_v19 }
 0x983   : > { %4870 = vrcp.f32 %v3112_v28 }
 0x984   : > { %v4853_v24 = vpop.eup %4852  ;;  %4872 = vrcp.f32 %v3113_v4 }
 0x985   : > { %v4855_v25 = vpop.eup %4854  ;;  %4874 = vrcp.f32 %v3116_v9  ;;  %v4416_v49 = vadd.f32 1.0, %v4853_v24 }
 0x986   : > { %v4857_v22 = vpop.eup %4856  ;;  %4876 = vrcp.f32 %v3117_v54  ;;  %v4417_v23 = vadd.f32 1.0, %v4855_v25 }
 0x987   : > { %v4859_v48 = vpop.eup %4858  ;;  %v4418_v45 = vadd.f32 1.0, %v4857_v22  ;;  %4878 = vrcp.f32 %v4416_v49 }
 0x988   : > { %v4861_v33 = vpop.eup %4860  ;;  %v4419_v11 = vadd.f32 1.0, %v4859_v48  ;;  %4880 = vrcp.f32 %v4417_v23 }
 0x989   : > { %v4863_v40 = vpop.eup %4862  ;;  %v4420_v31 = vadd.f32 1.0, %v4861_v33  ;;  %4882 = vrcp.f32 %v4418_v45 }
 0x98a   : > { %v4865_v21 = vpop.eup %4864  ;;  %v4421_v8 = vadd.f32 1.0, %v4863_v40  ;;  %4884 = vrcp.f32 %v4419_v11 }
 0x98b   : > { %v4867_v52 = vpop.eup %4866  ;;  %v4422_v1 = vadd.f32 1.0, %v4865_v21  ;;  %4886 = vrcp.f32 %v4420_v31 }
 0x98c   : > { %v4869_v35 = vpop.eup %4868  ;;  %v4423_v12 = vadd.f32 1.0, %v4867_v52  ;;  %4888 = vrcp.f32 %v4421_v8 }
 0x98d   : > { %v4871_v32 = vpop.eup %4870  ;;  %4890 = vrcp.f32 %v4422_v1  ;;  %v4445_v7 = vmul.f32 %v4905_v14, %v4869_v35 }
 0x98e   : > { %v4873_v50 = vpop.eup %4872  ;;  %4892 = vrcp.f32 %v4423_v12  ;;  %v4442_v59 = vmul.f32 %v4902_v63, %v4871_v32 }
 0x98f   : > { %v4875_v13 = vpop.eup %4874  ;;  %v4443_v2 = vmul.f32 %v4903_v29, %v4873_v50 }
 0x990   : > { %v4877_v41 = vpop.eup %4876  ;;  %v4446_v43 = vmul.f32 %v4906_v55, %v4875_v13 }
 0x991   : > { %v4879_v56 = vpop.eup %4878  ;;  %v4447_v39 = vmul.f32 %v4907_v15, %v4877_v41 }
 0x992   : > { %v4881_v44 = vpop.eup %4880  ;;  %v4448_v47 = vmul.f32 %v4879_v56, %v4440_v37 }
 0x993   : > { %v4883_v10 = vpop.eup %4882  ;;  %v4449_v36 = vmul.f32 %v4881_v44, %v4441_v30 }
 0x994   : > { %v4885_v0 = vpop.eup %4884  ;;  %v4450_v38 = vmul.f32 %v4883_v10, %v4442_v59  ;;  %4456 = vst [vmem:[%s6810_s25] sm:$0xff] %v4448_v47 }
 0x995   : > { %v4887_v34 = vpop.eup %4886  ;;  %v4451_v6 = vmul.f32 %v4885_v0, %v4443_v2  ;;  %4457 = vst [vmem:[%s6810_s25 + $0x8] sm:$0xff] %v4449_v36 }
 0x996   : > { %v4889_v5 = vpop.eup %4888  ;;  %v4452_v58 = vmul.f32 %v4887_v34, %v4444_v53  ;;  %4458 = vst [vmem:[%s6810_s25 + $0x10] sm:$0xff] %v4450_v38 }
 0x997   : > { %v4891_v42 = vpop.eup %4890  ;;  %v4453_v16 = vmul.f32 %v4889_v5, %v4445_v7  ;;  %4459 = vst [vmem:[%s6810_s25 + $0x18] sm:$0xff] %v4451_v6 }
 0x998   : > { %v4893_v27 = vpop.eup %4892  ;;  %v4454_v3 = vmul.f32 %v4891_v42, %v4446_v43  ;;  %4460 = vst [vmem:[%s6810_s25 + $0x20] sm:$0xff] %v4452_v58 }
 0x999   : > { %v4455_v57 = vmul.f32 %v4893_v27, %v4447_v39  ;;  %4461 = vst [vmem:[%s6810_s25 + $0x28] sm:$0xff] %v4453_v16 }
 0x99a   : > { %4462 = vst [vmem:[%s6810_s25 + $0x30] sm:$0xff] %v4454_v3 }
 0x99b   : > { %4463 = vst [vmem:[%s6810_s25 + $0x38] sm:$0xff] %v4455_v57 }
 0x99c PF: > { %s24_s29 = sadd.s32 1, %s4914_s29  }
 0x99d   : > { %p21_p4 = scmp.ge.s32.totalorder %s24_s29, 4  }
 0x99f   :  { %23 = sbr.rel (!%p21_p4) target bundleno = 6 (0x6), region = 106 }

</bundles_post_ra>
